<compile_context>
chip_gen: v7x
topology: tpu7x:2x2x1
jax: 0.10.0
libtpu: 0.0.40
codegen_flags: <defaults>
</compile_context>

<pallas_src>
import functools

import jax
import jax.numpy as jnp
from jax.experimental import pallas as pl
from jax.experimental.pallas import tpu as pltpu


def _msae_kernel(x_ref, enc_ref, dec_ref, pre_b_ref, lat_b_ref,
                 recon_ref, lat_ref, xc_ref, *acc_scratch, compute_dtype):
    # x_ref:     (bm, n_inputs)   x dtype, resident across the j loop
    # enc_ref:   (n_inputs, tn)   compute_dtype (streamed over j)
    # dec_ref:   (tn, n_inputs)   compute_dtype (streamed over j)
    # pre_b_ref: (1, n_inputs) f32;  lat_b_ref: (1, tn) f32
    # recon_ref: (bm, n_inputs)   accumulated over j (block index constant in j)
    # lat_ref:   (bm, tn)         latents output tile
    # xc_ref:    (bm, n_inputs)   compute_dtype scratch: centered x, hoisted
    # acc_scratch: () when recon dtype is f32 (accumulate directly into recon),
    #              else a single f32 VMEM scratch accumulator.
    acc_ref = acc_scratch[0] if acc_scratch else recon_ref

    j = pl.program_id(1)

    @pl.when(j == 0)
    def _():
        # Hoist: center x and cast to the MXU dtype once per batch tile.
        xc_ref[...] = (x_ref[...] - pre_b_ref[...]).astype(compute_dtype)
        acc_ref[...] = jnp.zeros_like(acc_ref)

    # Encoder matmul on the MXU with f32 accumulation; bias + ReLU in f32.
    lat = jnp.dot(xc_ref[...], enc_ref[...], preferred_element_type=jnp.float32)
    lat = jnp.maximum(lat + lat_b_ref[...], 0.0)

    # Store the latents and reuse the *stored* precision for the decoder matmul
    # so that reconstruction == returned_latents @ decoder + pre_bias exactly.
    lat_st = lat.astype(lat_ref.dtype)
    lat_ref[...] = lat_st
    acc_ref[...] += jnp.dot(lat_st.astype(compute_dtype), dec_ref[...],
                            preferred_element_type=jnp.float32
                            ).astype(acc_ref.dtype)

    @pl.when(j == pl.num_programs(1) - 1)
    def _():
        recon_ref[...] = (acc_ref[...].astype(jnp.float32)
                          + pre_b_ref[...]).astype(recon_ref.dtype)


def _pick_tile(total, target, align, prefer_min_steps=1):
    """Largest multiple of `align` dividing `total` and <= `target`, preferring a
    choice that leaves at least `prefer_min_steps` grid steps."""
    if total <= align or total % align != 0:
        return total  # single full-extent block (always legal)
    hi = min(target, total)
    hi -= hi % align
    best = None
    for cand in range(hi, 0, -align):
        if total % cand != 0:
            continue
        if best is None:
            best = cand
        if total // cand >= prefer_min_steps:
            return cand
    return best if best is not None else total


def msae_forward(x, encoder, decoder, pre_bias, latent_bias, *,
                 batch_tile=None, latent_tile=None,
                 compute_dtype=jnp.bfloat16, latents_dtype=jnp.bfloat16):
    """Pallas forward pass. Returns (reconstruction, latents).

    latents_dtype defaults to bf16 (fast path: halves the largest HBM writeback
    and the largest VMEM output tile); pass jnp.float32 for exact-dtype parity
    with the PyTorch module.
    """
    B, n_inputs = x.shape
    n_latents = encoder.shape[1]
    recon_dtype = x.dtype

    # Sublane alignment: 16 for any 16-bit array touched by the batch axis.
    two_byte = any(jnp.dtype(d).itemsize == 2
                   for d in (x.dtype, recon_dtype, latents_dtype, compute_dtype))
    sub_align = 16 if two_byte else 8

    if batch_tile is None:
        # Target >= v6e/v7x compute-bound crossover (~640-768 rows of weight
        # reuse per stream), but keep >= 2 batch steps so both v7x TCs get work.
        batch_tile = _pick_tile(B, target=768, align=sub_align, prefer_min_steps=2)
    if latent_tile is None:
        latent_tile = _pick_tile(n_latents, target=2048, align=128,
                                 prefer_min_steps=1)

    assert B % batch_tile == 0, "batch must divide by batch_tile"
    assert n_latents % latent_tile == 0, "n_latents must divide by latent_tile"
    assert batch_tile % sub_align == 0 or batch_tile == B
    assert latent_tile % 128 == 0 or latent_tile == n_latents

    # Cast weights once in the wrapper: halves weight DMA bytes and VMEM.
    enc_c = encoder.astype(compute_dtype)
    dec_c = decoder.astype(compute_dtype)
    pre_b = pre_bias.reshape(1, n_inputs).astype(jnp.float32)
    lat_b = latent_bias.reshape(1, n_latents).astype(jnp.float32)

    grid = (B // batch_tile, n_latents // latent_tile)

    need_acc_scratch = jnp.dtype(recon_dtype) != jnp.dtype(jnp.float32)

    # VMEM budget: double-buffered streamed tiles + scratch, no double counting,
    # capped at 48 MiB (headroom on v7x's 64 MiB physical VMEM per TC).
    w_item = jnp.dtype(compute_dtype).itemsize
    lat_item = jnp.dtype(latents_dtype).itemsize
    x_item = jnp.dtype(x.dtype).itemsize
    r_item = jnp.dtype(recon_dtype).itemsize
    est = (2 * batch_tile * n_inputs * x_item          # x tile
           + batch_tile * n_inputs * w_item            # centered-x scratch
           + 2 * n_inputs * latent_tile * w_item       # encoder tile
           + 2 * latent_tile * n_inputs * w_item       # decoder tile
           + 2 * (n_inputs + latent_tile) * 4          # biases
           + 2 * batch_tile * n_inputs * r_item        # recon out tile
           + 2 * batch_tile * latent_tile * lat_item)  # latents out tile
    if need_acc_scratch:
        est += batch_tile * n_inputs * 4
    vmem_limit = int(min(max(int(est * 1.25), 32 * 2**20), 48 * 2**20))

    scratch_shapes = [pltpu.VMEM((batch_tile, n_inputs), compute_dtype)]
    if need_acc_scratch:
        scratch_shapes.append(pltpu.VMEM((batch_tile, n_inputs), jnp.float32))

    kernel = functools.partial(_msae_kernel, compute_dtype=compute_dtype)

    recon, latents = pl.pallas_call(
        kernel,
        out_shape=(
            jax.ShapeDtypeStruct((B, n_inputs), recon_dtype),     # reconstruction
            jax.ShapeDtypeStruct((B, n_latents), latents_dtype),  # latents
        ),
        grid_spec=pltpu.PrefetchScalarGridSpec(
            num_scalar_prefetch=0,
            grid=grid,
            in_specs=[
                pl.BlockSpec((batch_tile, n_inputs), lambda i, j: (i, 0)),   # x
                pl.BlockSpec((n_inputs, latent_tile), lambda i, j: (0, j)),  # encoder
                pl.BlockSpec((latent_tile, n_inputs), lambda i, j: (j, 0)),  # decoder
                pl.BlockSpec((1, n_inputs), lambda i, j: (0, 0)),            # pre_bias
                pl.BlockSpec((1, latent_tile), lambda i, j: (0, j)),         # latent_bias
            ],
            out_specs=[
                # recon is accumulated across j (block index constant in j).
                pl.BlockSpec((batch_tile, n_inputs), lambda i, j: (i, 0)),
                pl.BlockSpec((batch_tile, latent_tile), lambda i, j: (i, j)),
            ],
            scratch_shapes=scratch_shapes,
        ),
        compiler_params=pltpu.CompilerParams(
            dimension_semantics=("parallel", "arbitrary"),
            vmem_limit_bytes=vmem_limit,
        ),
    )(x, enc_c, dec_c, pre_b, lat_b)

    return recon, latents


def msae_forward_ref(x, encoder, decoder, pre_bias, latent_bias,
                     compute_dtype=jnp.float32, latents_dtype=jnp.float32):
    """Pure-JAX reference. compute_dtype/latents_dtype mirror the kernel casts."""
    enc = encoder.astype(compute_dtype)
    dec = decoder.astype(compute_dtype)
    x_c = (x - pre_bias).astype(compute_dtype)
    latents = jnp.maximum(
        jnp.dot(x_c, enc, preferred_element_type=jnp.float32) + latent_bias, 0.0)
    latents = latents.astype(latents_dtype)
    recon = jnp.dot(latents.astype(compute_dtype), dec,
                    preferred_element_type=jnp.float32) + pre_bias
    return recon, latents


if __name__ == "__main__":
    # Small-but-MXU-friendly shapes for the demo.
    B, n_inputs, n_latents = 512, 256, 2048

    key = jax.random.PRNGKey(0)
    k_x, k_enc, k_dec, k_pb, k_lb = jax.random.split(key, 5)

    x = jax.random.normal(k_x, (B, n_inputs), dtype=jnp.float32)
    encoder = jax.random.normal(k_enc, (n_inputs, n_latents), dtype=jnp.float32) * 0.05
    decoder = jax.random.normal(k_dec, (n_latents, n_inputs), dtype=jnp.float32) * 0.05
    pre_bias = jax.random.normal(k_pb, (n_inputs,), dtype=jnp.float32) * 0.1
    latent_bias = jax.random.normal(k_lb, (n_latents,), dtype=jnp.float32) * 0.1

    # batch_tile default picks 256 (2 parallel steps -> one per v7x TC);
    # latent_tile=1024 forces 2 reduction steps to exercise the accumulate-over-j
    # path (the default would use a single 2048-wide step here).
    recon, latents = msae_forward(x, encoder, decoder, pre_bias, latent_bias,
                                  latent_tile=1024)
    jax.block_until_ready((recon, latents))

    # Reference mirroring the kernel's bf16 MXU casts and bf16-stored latents.
    recon_ref, latents_ref = msae_forward_ref(
        x, encoder, decoder, pre_bias, latent_bias,
        compute_dtype=jnp.bfloat16, latents_dtype=jnp.bfloat16)
    assert jnp.allclose(recon, recon_ref, atol=2e-3, rtol=2e-3)
    assert jnp.allclose(latents.astype(jnp.float32),
                        latents_ref.astype(jnp.float32), atol=2e-3, rtol=2e-3)

    # Loose check against exact f32 PyTorch-module semantics
    # (difference is only the bf16 operand/latent casts).
    recon_f32, latents_f32 = msae_forward_ref(
        x, encoder, decoder, pre_bias, latent_bias,
        compute_dtype=jnp.float32, latents_dtype=jnp.float32)
    assert jnp.allclose(recon, recon_f32, atol=5e-2, rtol=5e-2)
    assert jnp.allclose(latents.astype(jnp.float32), latents_f32,
                        atol=5e-2, rtol=5e-2)

    # Module identity now holds in the stored precision:
    #   reconstruction == returned_latents @ decoder + pre_bias
    recon_from_lat = jnp.dot(latents.astype(jnp.bfloat16),
                             decoder.astype(jnp.bfloat16),
                             preferred_element_type=jnp.float32) + pre_bias
    assert jnp.allclose(recon, recon_from_lat, atol=2e-3, rtol=2e-3)

    print("KERNEL_OK")
</pallas_src>

<mosaic_0001>
module attributes {stable_mosaic.version = 11 : i64} {
  func.func @_msae_kernel(%arg0: i32, %arg1: i32, %arg2: memref<256x256xf32, #tpu.memory_space<vmem>>, %arg3: memref<256x1024xbf16, #tpu.memory_space<vmem>>, %arg4: memref<1024x256xbf16, #tpu.memory_space<vmem>>, %arg5: memref<1x256xf32, #tpu.memory_space<vmem>>, %arg6: memref<1x1024xf32, #tpu.memory_space<vmem>>, %arg7: memref<256x256xf32, #tpu.memory_space<vmem>>, %arg8: memref<256x1024xbf16, #tpu.memory_space<vmem>>, %arg9: memref<256x256xbf16, #tpu.memory_space<vmem>>) attributes {dimension_semantics = [#tpu.dimension_semantics<parallel>, #tpu.dimension_semantics<arbitrary>], iteration_bounds = array<i64: 2, 2>, scalar_prefetch = 0 : i64, scratch_operands = 1 : i64, tpu.core_type = #tpu.core_type<tc>, window_params = [{transform_indices = @transform_0, window_bounds = array<i64: 256, 256>}, {transform_indices = @transform_1, window_bounds = array<i64: 256, 1024>}, {transform_indices = @transform_2, window_bounds = array<i64: 1024, 256>}, {pipeline_mode = #tpu.pipeline_mode<synchronous>, transform_indices = @transform_3, window_bounds = array<i64: 1, 256>}, {transform_indices = @transform_4, window_bounds = array<i64: 1, 1024>}, {transform_indices = @transform_5, window_bounds = array<i64: 256, 256>}, {transform_indices = @transform_6, window_bounds = array<i64: 256, 1024>}]} {
    %c0_i32 = arith.constant 0 : i32
    %0 = arith.cmpi eq, %arg1, %c0_i32 : i32
    %1 = arith.extui %0 : i1 to i32
    %c0_i32_0 = arith.constant 0 : i32
    %2 = arith.cmpi ne, %1, %c0_i32_0 : i32
    scf.if %2 {
      %c0_17 = arith.constant 0 : index
      %c0_18 = arith.constant 0 : index
      %21 = vector.load %arg2[%c0_17, %c0_18] : memref<256x256xf32, #tpu.memory_space<vmem>>, vector<256x256xf32>
      %c0_19 = arith.constant 0 : index
      %c0_20 = arith.constant 0 : index
      %22 = vector.load %arg5[%c0_19, %c0_20] : memref<1x256xf32, #tpu.memory_space<vmem>>, vector<1x256xf32>
      %23 = vector.broadcast %22 : vector<1x256xf32> to vector<256x256xf32>
      %24 = arith.subf %21, %23 : vector<256x256xf32>
      %25 = arith.truncf %24 : vector<256x256xf32> to vector<256x256xbf16>
      %c0_21 = arith.constant 0 : index
      %c0_22 = arith.constant 0 : index
      %26 = vector.load %arg9[%c0_21, %c0_22] : memref<256x256xbf16, #tpu.memory_space<vmem>>, vector<256x256xbf16>
      tpu.vector_store %arg9[%c0_21, %c0_22], %25 {strides = array<i32>} : memref<256x256xbf16, #tpu.memory_space<vmem>>, vector<256x256xbf16>,
      %cst_23 = arith.constant 0.000000e+00 : f32
      %27 = vector.broadcast %cst_23 : f32 to vector<256x256xf32>
      %c0_24 = arith.constant 0 : index
      %c0_25 = arith.constant 0 : index
      %28 = vector.load %arg7[%c0_24, %c0_25] : memref<256x256xf32, #tpu.memory_space<vmem>>, vector<256x256xf32>
      tpu.vector_store %arg7[%c0_24, %c0_25], %27 {strides = array<i32>} : memref<256x256xf32, #tpu.memory_space<vmem>>, vector<256x256xf32>,
    } else {
    }
    %c0 = arith.constant 0 : index
    %c0_1 = arith.constant 0 : index
    %3 = vector.load %arg9[%c0, %c0_1] : memref<256x256xbf16, #tpu.memory_space<vmem>>, vector<256x256xbf16>
    %c0_2 = arith.constant 0 : index
    %c0_3 = arith.constant 0 : index
    %4 = vector.load %arg3[%c0_2, %c0_3] : memref<256x1024xbf16, #tpu.memory_space<vmem>>, vector<256x1024xbf16>
    %cst = arith.constant dense<0.000000e+00> : vector<256x1024xf32>
    %5 = tpu.matmul %3, %4, %cst {dimension_numbers = #tpu.dot_dimension_numbers<[1], [0], [0], [1], [0, 0, 1, 1], [], []>} : vector<256x256xbf16>, vector<256x1024xbf16>, vector<256x1024xf32> -> vector<256x1024xf32>
    %c0_4 = arith.constant 0 : index
    %c0_5 = arith.constant 0 : index
    %6 = vector.load %arg6[%c0_4, %c0_5] : memref<1x1024xf32, #tpu.memory_space<vmem>>, vector<1x1024xf32>
    %7 = vector.broadcast %6 : vector<1x1024xf32> to vector<256x1024xf32>
    %8 = arith.addf %5, %7 : vector<256x1024xf32>
    %cst_6 = arith.constant 0.000000e+00 : f32
    %9 = vector.broadcast %cst_6 : f32 to vector<256x1024xf32>
    %10 = arith.maximumf %8, %9 : vector<256x1024xf32>
    %11 = arith.truncf %10 : vector<256x1024xf32> to vector<256x1024xbf16>
    %c0_7 = arith.constant 0 : index
    %c0_8 = arith.constant 0 : index
    %12 = vector.load %arg8[%c0_7, %c0_8] : memref<256x1024xbf16, #tpu.memory_space<vmem>>, vector<256x1024xbf16>
    tpu.vector_store %arg8[%c0_7, %c0_8], %11 {strides = array<i32>} : memref<256x1024xbf16, #tpu.memory_space<vmem>>, vector<256x1024xbf16>,
    %c0_9 = arith.constant 0 : index
    %c0_10 = arith.constant 0 : index
    %13 = vector.load %arg7[%c0_9, %c0_10] : memref<256x256xf32, #tpu.memory_space<vmem>>, vector<256x256xf32>
    %c0_11 = arith.constant 0 : index
    %c0_12 = arith.constant 0 : index
    %14 = vector.load %arg4[%c0_11, %c0_12] : memref<1024x256xbf16, #tpu.memory_space<vmem>>, vector<1024x256xbf16>
    %cst_13 = arith.constant dense<0.000000e+00> : vector<256x256xf32>
    %15 = tpu.matmul %11, %14, %cst_13 {dimension_numbers = #tpu.dot_dimension_numbers<[1], [0], [0], [1], [0, 0, 1, 1], [], []>} : vector<256x1024xbf16>, vector<1024x256xbf16>, vector<256x256xf32> -> vector<256x256xf32>
    %16 = arith.addf %13, %15 : vector<256x256xf32>
    %c0_14 = arith.constant 0 : index
    %c0_15 = arith.constant 0 : index
    %17 = vector.load %arg7[%c0_14, %c0_15] : memref<256x256xf32, #tpu.memory_space<vmem>>, vector<256x256xf32>
    tpu.vector_store %arg7[%c0_14, %c0_15], %16 {strides = array<i32>} : memref<256x256xf32, #tpu.memory_space<vmem>>, vector<256x256xf32>,
    %c1_i32 = arith.constant 1 : i32
    %18 = arith.cmpi eq, %arg1, %c1_i32 : i32
    %19 = arith.extui %18 : i1 to i32
    %c0_i32_16 = arith.constant 0 : i32
    %20 = arith.cmpi ne, %19, %c0_i32_16 : i32
    scf.if %20 {
      %c0_17 = arith.constant 0 : index
      %c0_18 = arith.constant 0 : index
      %21 = vector.load %arg7[%c0_17, %c0_18] : memref<256x256xf32, #tpu.memory_space<vmem>>, vector<256x256xf32>
      %c0_19 = arith.constant 0 : index
      %c0_20 = arith.constant 0 : index
      %22 = vector.load %arg5[%c0_19, %c0_20] : memref<1x256xf32, #tpu.memory_space<vmem>>, vector<1x256xf32>
      %23 = vector.broadcast %22 : vector<1x256xf32> to vector<256x256xf32>
      %24 = arith.addf %21, %23 : vector<256x256xf32>
      %c0_21 = arith.constant 0 : index
      %c0_22 = arith.constant 0 : index
      %25 = vector.load %arg7[%c0_21, %c0_22] : memref<256x256xf32, #tpu.memory_space<vmem>>, vector<256x256xf32>
      tpu.vector_store %arg7[%c0_21, %c0_22], %24 {strides = array<i32>} : memref<256x256xf32, #tpu.memory_space<vmem>>, vector<256x256xf32>,
    } else {
    }
    return
  }
  func.func @transform_0(%arg0: i32, %arg1: i32) -> (i32, i32) {
    %c0_i32 = arith.constant 0 : i32
    %c0_i32_0 = arith.constant 0 : i32
    return %arg0, %c0_i32 : i32, i32
  }
  func.func @transform_1(%arg0: i32, %arg1: i32) -> (i32, i32) {
    %c0_i32 = arith.constant 0 : i32
    %c0_i32_0 = arith.constant 0 : i32
    return %c0_i32, %arg1 : i32, i32
  }
  func.func @transform_2(%arg0: i32, %arg1: i32) -> (i32, i32) {
    %c0_i32 = arith.constant 0 : i32
    %c0_i32_0 = arith.constant 0 : i32
    return %arg1, %c0_i32 : i32, i32
  }
  func.func @transform_3(%arg0: i32, %arg1: i32) -> (i32, i32) {
    %c0_i32 = arith.constant 0 : i32
    %c0_i32_0 = arith.constant 0 : i32
    %c0_i32_1 = arith.constant 0 : i32
    return %c0_i32, %c0_i32_0 : i32, i32
  }
  func.func @transform_4(%arg0: i32, %arg1: i32) -> (i32, i32) {
    %c0_i32 = arith.constant 0 : i32
    %c0_i32_0 = arith.constant 0 : i32
    return %c0_i32, %arg1 : i32, i32
  }
  func.func @transform_5(%arg0: i32, %arg1: i32) -> (i32, i32) {
    %c0_i32 = arith.constant 0 : i32
    %c0_i32_0 = arith.constant 0 : i32
    return %arg0, %c0_i32 : i32, i32
  }
  func.func @transform_6(%arg0: i32, %arg1: i32) -> (i32, i32) {
    %c0_i32 = arith.constant 0 : i32
    return %arg0, %arg1 : i32, i32
  }
}

</mosaic_0001>

<bundles_post_ra>
// kernel: tpu_custom_call.1
= control target key start
LH: loop header
LB: loop body
LE: loop exit
PB: predicated region body
PF: predicated region fallthrough
CT: control target
= control target key end

     0   :  { %s9255_s0 = inlined_call_operand.hbm [shape: f32[512,256], index: 0, kind: input, shape index: {}]   ;;  %s9256_s1 = inlined_call_operand.hbm [shape: bf16[256,2048], index: 1, kind: input, shape index: {}]   ;;  %s9257_s2 = inlined_call_operand.hbm [shape: bf16[2048,256], index: 2, kind: input, shape index: {}]   ;;  %s9258_s3 = inlined_call_operand.hbm [shape: f32[1,256], index: 3, kind: input, shape index: {}]   ;;  %s9259_s4 = inlined_call_operand.hbm [shape: f32[1,2048], index: 4, kind: input, shape index: {}]   ;;  %s9260_s5 = inlined_call_operand.hbm [shape: f32[512,256], index: 5, kind: output, shape index: {0}]   ;;  %s9261_s6 = inlined_call_operand.hbm [shape: bf16[512,2048], index: 6, kind: output, shape index: {1}]  }
   0x1   :  { %9291 = sst [smem:[#allocation36_spill]] %s9255_s0 }
   0x2   :  { %9292 = sst [smem:[#allocation37_spill]] %s9256_s1 }
   0x3   :  { %9293 = sst [smem:[#allocation38_spill]] %s9259_s4 }
   0x4   :  { %9294 = sst [smem:[#allocation39_spill]] %s9260_s5 }
   0x5   :  { %9295 = sst [smem:[#allocation40_spill]] %s9261_s6 }
   0x6   :  { %12 = vsyncpa [#allocation4], 0 }
   0x7   :  { %14 = vsyncpa [#allocation4 + $0x1], 0 }
   0x8   :  { %15 = vsyncpa [#allocation7], 0 }
   0x9   :  { %17 = vsyncpa [#allocation7 + $0x1], 0 }
   0xa   :  { %18 = vsyncpa [#allocation10], 0 }
   0xb   :  { %19 = vsyncpa [#allocation5], 0 }
   0xc   :  { %21 = vsyncpa [#allocation5 + $0x1], 0 }
   0xd   :  { %22 = vsyncpa [#allocation14], 0 }
   0xe   :  { %24 = vsyncpa [#allocation14 + $0x1], 0  ;;  %s7181_s21 = smov 0   ;;  %s7183_s22 = smov 0  }
   0xf   :  { %s7185_s23 = smov 0   ;;  %s7187_s24 = smov 0  }
  0x10   :  { %s7189_s25 = smov 0   ;;  %s7191_s26 = smov 0  }
  0x11   :  { %s7193_s27 = smov 0   ;;  %s7195_s28 = smov 0  }
  0x12   :  { %s7197_s29 = smov 0   ;;  %s7199_s30 = smov 0  }
  0x13   :  { %s7201_s7 = smov 0   ;;  %s7203_s8 = smov 0  }
  0x14   :  { %s7205_s9 = smov 0   ;;  %s7207_s10 = smov 0  }
  0x15 LB: > { %9296 = sst [smem:[#allocation21_spill]] %s7072_s21  ;;  %s39_s11 = sadd.s32 1, %s7116_s8  ;;  %s7124_s10 = sphi %s7207_s10, %s30_s10   ;;  %s7120_s9 = sphi %s7205_s9, %s9367_s9   ;;  %s7116_s8 = sphi %s7203_s8, %s9377_s8   ;;  %s7112_s7 = sphi %s7201_s7, %s9365_s7   ;;  %s7108_s30 = sphi %s7199_s30, %s9376_s30   ;;  %s7104_s29 = sphi %s7197_s29, %s9375_s29   ;;  %s7100_s28 = sphi %s7195_s28, %s9374_s28   ;;  %s7096_s27 = sphi %s7193_s27, %s9373_s27   ;;  %s7092_s26 = sphi %s7191_s26, %s9372_s26   ;;  %s7088_s25 = sphi %s7189_s25, %s9371_s25   ;;  %s7084_s24 = sphi %s7187_s24, %s9370_s24   ;;  %s7080_s23 = sphi %s7185_s23, %s9361_s23   ;;  %s7076_s22 = sphi %s7183_s22, %s9369_s22   ;;  %s7072_s21 = sphi %s7181_s21, %s9368_s21  }
  0x16   : > { %9297 = sst [smem:[#allocation22_spill]] %s7080_s23  ;;  %s42_s12 = sadd.s32 1, %s7120_s9 }
  0x17   : > { %9298 = sst [smem:[#allocation23_spill]] %s7096_s27  ;;  %p40_p0 = scmp.ge.s32.totalorder %s39_s11, 2 }
  0x18   : > { %9299 = sst [smem:[#allocation24_spill]] %s7104_s29  ;;  %s49_s13 = sadd.s32 1, %s7104_s29 }
  0x19   : > { %9300 = sst [smem:[#allocation25_spill]] %s7108_s30  ;;  %p9268_p1 = scmp.ne.s32.totalorder %s7104_s29, %s7100_s28 }
  0x1a   : > { %9301 = sst [smem:[#allocation26_spill]] %s7112_s7  ;;  %p9270_p2 = scmp.eq.s32.totalorder %s7124_s10, 0 }
  0x1b   : > { %9302 = sst [smem:[#allocation27_spill]] %s7120_s9  ;;  %s9379_s11 = smov (%p40_p0, %s39_s11), 0 }
  0x1c   : > { %9303 = sst [smem:[#allocation28_spill]] %s7124_s10  ;;  %s9381_s12 = smov (!%p40_p0, %s42_s12), %s7120_s9 }
  0x1d   : > { %9304 = sst [smem:[#allocation29_spill]] %s9379_s11  ;;  %p7265_p3 = por %p9270_p2, %p9268_p1 }
  0x1e   : > { %s7271_s15 = ssub.s32 %s7116_s8, %s9379_s11  ;;  %p44_p4 = scmp.ge.s32.totalorder %s9381_s12, 2 }
  0x1f   : > { %p9269_p6 = scmp.lt.s32.totalorder %s7124_s10, 4  ;;  %s252_s17 = sand.u32 1, %s7104_s29  }
  0x20   : > { %s9383_s12 = smov (%p44_p4, %s9381_s12), 0  ;;  %s5643_s11 = sshll.u32 %s252_s17, 9 }
  0x21   : > { %9306 = sst [smem:[#allocation30_spill]] %s9383_s12  ;;  %s46_s18 = ssub.s32 %s7120_s9, %s9383_s12 }
  0x22   : > { %p47_p7 = scmp.eq.s32.totalorder %s46_s18, 0  ;;  %s199_s19 = sor.u32 %s7271_s15, %s46_s18 }
  0x23   : > { %p7282_p8 = scmp.eq.s32.totalorder %s199_s19, 0  ;;  %s6063_s5 = sshll.u32 %s7120_s9, 13 }
  0x24   : > { %s7287_s6 = scalar_select %p47_p7, %s7104_s29, %s49_s13  }
  0x25   : > { %s9307_s20 = scalar_select %p7282_p8, 1, 0 }
  0x26   : > { %9308 = sst [smem:[#allocation31_spill]] %s7287_s6  ;;  %s9309_s0 = sld [smem:[#allocation36_spill]] }
  0x27   : > { %s254_s16 = scalar_lea.vmem [#allocation3], %s5643_s11  ;;  %p7301_p9 = pnand %p9269_p6, %p7265_p3 }
  0x28   : > { %s262_s12 = sshll.u32 %s254_s16, 4  ;;  %s9311_s13 = sand.u32 1, %s7124_s10   ;;  %s7295_s12 = int_to_ptr.vmem [resolvable:$true] %s262_s12 }
  0x29   : > { %s7307_s30 = scalar_lea.sflag [#allocation4], %s9311_s13  ;;  %p6788_p11 = pneg %p7301_p9 }
  0x2c   : > { %s7293_s4 = scalar_lea.hbm %s9309_s0, %s6063_s5  ;;  %s6791_s14 = scalar_lea.hbm %s9309_s0, 16384 }
  0x2d   : > { %s6786_s5 = scalar_lea.hbm %s7293_s4, 8192  ;;  %p6792_p0 = scmp.lt.u32.totalorder %s7293_s4, %s9309_s0 }
  0x2e   : > { %p6787_p10 = scmp.ne.s32.totalorder %s7293_s4, %s6786_s5  ;;  %p6793_p3 = scmp.lt.u32.totalorder %s6791_s14, %s6786_s5 }
  0x2f   : > { %p6795_p7 = scmp.lt.u32.totalorder %s6786_s5, %s7293_s4 }
  0x30   : > { %p6789_p12 = pnand %p6788_p11, %p6787_p10  ;;  %p6794_p4 = por %p6793_p3, %p6792_p0 }
  0x32   : > { %p6790_p13 = pneg %p6789_p12  ;;  %p6796_p1 = por %p6795_p7, %p6794_p4 }
  0x34   : > { %p6797_p6 = pnand %p6796_p1, %p6790_p13 }
  0x36   : > { %6800 = shalt.err (!%p6797_p6)
}
  0x37   : > { %s6801_s19 = scalar_lea.vmem %s7295_s12, 8192  ;;  %s7126_s13 = smov [#allocation3]  }
  0x38   : > { %p6802_p10 = scmp.ne.s32.totalorder %s7295_s12, %s6801_s19  ;;  %s6806_s7 = sshll.u32 %s7126_s13, 4  ;;  %s6807_s7 = int_to_ptr.vmem [resolvable:$false] %s6806_s7 }
  0x39   : > { %s6808_s11 = scalar_lea.vmem %s6807_s7, 16384  ;;  %p6809_p5 = scmp.lt.s32.totalorder %s7295_s12, %s6807_s7 }
  0x3a   : > { %p6804_p12 = pnand %p6802_p10, %p6788_p11  ;;  %p6810_p0 = scmp.lt.s32.totalorder %s6808_s11, %s6801_s19 }
  0x3c   : > { %p6805_p2 = pneg %p6804_p12  ;;  %p6811_p3 = por %p6810_p0, %p6809_p5 }
  0x3e   : > { %p6812_p4 = pnand %p6811_p3, %p6805_p2 }
  0x40   : > { %6815 = shalt.err (!%p6812_p4)
}
  0x41   : > { %s7127_s5 = smov 256   ;;  %s7128_s14 = smov 16  }
  0x42   : > { %6414 = dma.hbm_to_vmem [thread:$0]  (!%p7301_p9), %s7293_s4, 8192, %s7295_s12, %s7307_s30, %s7127_s5, %s7127_s5, %s7128_s14  }
  0x43   : > { %s75_s16 = sadd.s32 1, %s7092_s26  ;;  %p82_p1 = scmp.ne.s32.totalorder %s7092_s26, %s7088_s25 }
  0x44   : > { %p9312_p2 = scmp.eq.s32.totalorder %s7271_s15, 0  ;;  %p9314_p5 = scmp.eq.s32.totalorder %s7124_s10, 0 }
  0x45   : > { %s9272_s19 = sand.u32 1, %s7092_s26   ;;  %s6064_s7 = sshll.u32 %s7116_s8, 9 }
  0x46   : > { %s7341_s18 = scalar_select %p9312_p2, %s7092_s26, %s75_s16  }
  0x47   : > { %p84_p6 = por %p82_p1, %p9314_p5  ;;  %s7348_s13 = sshll.u32 %s9272_s19, 10 }
  0x48   : > { %9313 = sst [smem:[#allocation32_spill]] %s7341_s18  ;;  %s9315_s1 = sld [smem:[#allocation37_spill]] }
  0x49   : > { %s276_s4 = scalar_lea.vmem [#allocation6], %s7348_s13  ;;  %p9316_p9 = scmp.lt.s32.totalorder %s7124_s10, 4 }
  0x4a   : > { %s283_s12 = sshll.u32 %s276_s4, 4  ;;  %s9318_s17 = sand.u32 1, %s7124_s10   ;;  %s7363_s12 = int_to_ptr.vmem [resolvable:$true] %s283_s12 }
  0x4b   : > { %p7359_p11 = pnand %p9316_p9, %p84_p6  ;;  %s7367_s5 = scalar_lea.sflag [#allocation7], %s9318_s17 }
  0x4d   : > { %s9317_s15 = scalar_select %p7359_p11, 1, 0 }
  0x4e   : > { %s7354_s9 = scalar_lea.hbm %s9315_s1, %s6064_s7  ;;  %p7373_p7 = pneg %p7359_p11 }
  0x4f   : > { %s6816_s0 = scalar_lea.hbm %s7354_s9, 16384  ;;  %s6821_s11 = scalar_lea.hbm %s9315_s1, 32768 }
  0x50   : > { %p6817_p13 = scmp.ne.s32.totalorder %s7354_s9, %s6816_s0  ;;  %p6822_p0 = scmp.lt.u32.totalorder %s7354_s9, %s9315_s1 }
  0x51   : > { %s9319_s14 = scalar_select %p7373_p7, 1, 0 }
  0x52   : > { %p6819_p10 = pnand %p7373_p7, %p6817_p13  ;;  %p6823_p3 = scmp.lt.u32.totalorder %s6821_s11, %s6816_s0 }
  0x53   : > { %p6825_p1 = scmp.lt.u32.totalorder %s6816_s0, %s7354_s9 }
  0x54   : > { %p6820_p12 = pneg %p6819_p10  ;;  %p6824_p4 = por %p6823_p3, %p6822_p0 }
  0x56   : > { %p6826_p2 = por %p6825_p1, %p6824_p4 }
  0x58   : > { %p6827_p5 = pnand %p6826_p2, %p6820_p12 }
  0x5a   : > { %6830 = shalt.err (!%p6827_p5)
}
  0x5b   : > { %s6831_s17 = scalar_lea.vmem %s7363_s12, 16384  ;;  %s7129_s16 = smov [#allocation6]  }
  0x5c   : > { %p6832_p6 = scmp.ne.s32.totalorder %s7363_s12, %s6831_s17  ;;  %s6836_s7 = sshll.u32 %s7129_s16, 4  ;;  %s6837_s7 = int_to_ptr.vmem [resolvable:$false] %s6836_s7 }
  0x5d   : > { %s6838_s19 = scalar_lea.vmem %s6837_s7, 32768  ;;  %p6839_p10 = scmp.lt.s32.totalorder %s7363_s12, %s6837_s7 }
  0x5e   : > { %p6834_p9 = pnand %p6832_p6, %p7373_p7  ;;  %p6840_p8 = scmp.lt.s32.totalorder %s6838_s19, %s6831_s17 }
  0x60   : > { %p6835_p13 = pneg %p6834_p9  ;;  %p6841_p0 = por %p6840_p8, %p6839_p10 }
  0x62   : > { %p6842_p3 = pnand %p6841_p0, %p6835_p13 }
  0x64   : > { %6845 = shalt.err (!%p6842_p3)
}
  0x65   : > { %s7130_s0 = smov 1024   ;;  %s7131_s11 = smov 512  }
  0x66   : > { %s7132_s4 = smov 32   ;;  %s7398_s17 = sadd.s32 4294967295, %s7124_s10  }
  0x67   : > { %6417 = dma.hbm_to_vmem [thread:$0]  (!%p7359_p11), %s7354_s9, 16384, %s7363_s12, %s7367_s5, %s7130_s0, %s7131_s11, %s7132_s4  }
  0x68   : > { %s5639_s16 = sadd.s32 4294967294, %s7124_s10   ;;  %p62_p8 = scmp.ne.s32.totalorder %s7100_s28, %s7096_s27 }
  0x69   : > { %p9273_p12 = scmp.eq.s32.totalorder %s7398_s17, 0  ;;  %p88_p4 = scmp.ne.s32.totalorder %s7088_s25, %s7084_s24 }
  0x6a   : > { %p185_p1 = scmp.eq.s32.totalorder %s7398_s17, 3  ;;  %p191_p2 = scmp.eq.s32.totalorder %s5639_s16, 3 }
  0x6b   : > { %p7409_p5 = por %p9273_p12, %p62_p8  ;;  %p7415_p6 = por %p88_p4, %p9273_p12 }
  0x6c   : > { %p9322_p9 = scmp.ne.s32.totalorder %s7104_s29, %s7100_s28  ;;  %p7426_p10 = por %p191_p2, %p62_p8 }
  0x6d   : > { %s9320_s7 = scalar_select %p7409_p5, 1, 0 }
  0x6e   : > { %s9321_s9 = scalar_select %p7415_p6, 1, 0 }
  0x6f   : > { %p7422_p13 = por %p185_p1, %p9322_p9  ;;  %s202_s19 = sadd.s32 1, %s7080_s23 }
  0x70   : > { %s9324_s24 = scalar_select %p7426_p10, 1, 0 }
  0x71   : > { %s9323_s12 = scalar_select %p7422_p13, 1, 0 }
  0x72   : > { %9325 = sst [smem:[#allocation33_spill]] %s9324_s24  ;;  %p212_p0 = scmp.ne.s32.totalorder %s7080_s23, %s7076_s22 }
  0x73   : > { %p9326_p3 = scmp.ne.s32.totalorder %s9307_s20, 0  ;;  %p218_p12 = scmp.ne.s32.totalorder %s7076_s22, %s7072_s21 }
  0x74   : > { %p7438_p4 = por %p212_p0, %p185_p1  ;;  %p5640_p9 = scmp.ge.s32.totalorder %s7124_s10, 1 }
  0x75   : > { %s7436_s0 = scalar_select %p9326_p3, %s7080_s23, %s202_s19  }
  0x76   : > { %s9328_s11 = scalar_select %p7438_p4, 1, 0 }
  0x77   : > { %9327 = sst [smem:[#allocation34_spill]] %s7436_s0  ;;  %p226_p6 = scmp.lt.s32.totalorder %s7124_s10, 5 }
  0x78   : > { %p7446_p5 = por %p218_p12, %p191_p2  ;;  %s7133_s1 = smov [#allocation9]  }
  0x79   : > { %p7450_p8 = pnand %p5640_p9, %p226_p6  ;;  %s239_s20 = sshll.u32 %s7133_s1, 4  ;;  %s240_s20 = int_to_ptr.vmem [resolvable:$true] %s239_s20 }
  0x7a   : > { %s9329_s4 = scalar_select %p7446_p5, 1, 0 }
  0x7b   : > { %s9331_s16 = scalar_select %p7450_p8, 1, 0 }
  0x7c   : > { %9330 = sst [smem:[#allocation35_spill]] %s9329_s4  ;;  %p6407_p3 = pneg %p7450_p8 }
  0x7d   : > { %s6066_s19 = sshll.u32 %s7116_s8, 14  ;;  %s297_s6 = scalar_lea.vmem [#allocation8], %s7348_s13 }
  0x7e   : > { %s305_s29 = sshll.u32 %s297_s6, 4  ;;  %p9332_p1 = scmp.eq.s32.totalorder %s7398_s17, 0  ;;  %s7469_s29 = int_to_ptr.vmem [resolvable:$true] %s305_s29 }
  0x7f   : > { %s7467_s4 = scalar_lea.hbm %s9257_s2, %s6066_s19  ;;  %s6846_s24 = scalar_lea.hbm %s9258_s3, 32 }
  0x80   : > { %p7460_p0 = pnand %p6407_p3, %p9332_p1  ;;  %p6847_p12 = scmp.ne.s32.totalorder %s9258_s3, %s6846_s24 }
  0x81   : > { %p6853_p3 = scmp.lt.u32.totalorder %s6846_s24, %s9258_s3 }
  0x82   : > { %p6848_p2 = pneg %p7460_p0 }
  0x84   : > { %p6849_p6 = pnand %p6848_p2, %p6847_p12 }
  0x86   : > { %p6850_p9 = pneg %p6849_p6 }
  0x88   : > { %p6855_p1 = pnand %p6853_p3, %p6850_p9 }
  0x8a   : > { %6858 = shalt.err (!%p6855_p1)
}
  0x8b   : > { %s6859_s23 = scalar_lea.vmem %s240_s20, 32  ;;  %p6867_p13 = scmp.lt.s32.totalorder %s240_s20, %s240_s20 }
  0x8c   : > { %p6860_p5 = scmp.ne.s32.totalorder %s240_s20, %s6859_s23  ;;  %p6868_p8 = scmp.lt.s32.totalorder %s6859_s23, %s6859_s23 }
  0x8e   : > { %p6862_p10 = pnand %p6860_p5, %p6848_p2  ;;  %p6869_p11 = por %p6868_p8, %p6867_p13 }
  0x90   : > { %p6863_p4 = pneg %p6862_p10 }
  0x92   : > { %p6870_p7 = pnand %p6869_p11, %p6863_p4 }
  0x94   : > { %6873 = shalt.err (!%p6870_p7)
}
  0x95   : > { %6410 = dma.hbm_to_vmem [thread:$0]  (!%p7460_p0), %s9258_s3, 32, %s240_s20, [#allocation10]  }
  0x96   : > { %s6874_s10 = scalar_lea.hbm %s7467_s4, 16384  ;;  %p9334_p5 = scmp.ne.s32.totalorder %s9319_s14, 0 }
  0x97   : > { %p6875_p12 = scmp.ne.s32.totalorder %s7467_s4, %s6874_s10  ;;  %s6879_s19 = scalar_lea.hbm %s9257_s2, 32768 }
  0x98   : > { %p6880_p11 = scmp.lt.u32.totalorder %s7467_s4, %s9257_s2  ;;  %p6881_p7 = scmp.lt.u32.totalorder %s6879_s19, %s6874_s10 }
  0x99   : > { %p6877_p10 = pnand %p6875_p12, %p9334_p5  ;;  %p6883_p4 = scmp.lt.u32.totalorder %s6874_s10, %s7467_s4 }
  0x9a   : > { %p6882_p13 = por %p6881_p7, %p6880_p11 }
  0x9b   : > { %p6878_p2 = pneg %p6877_p10 }
  0x9c   : > { %p6884_p8 = por %p6883_p4, %p6882_p13 }
  0x9e   : > { %p6885_p6 = pnand %p6884_p8, %p6878_p2 }
  0xa0   : > { %6888 = shalt.err (!%p6885_p6)
}
  0xa1   : > { %s6889_s20 = scalar_lea.vmem %s7469_s29, 16384  ;;  %s7134_s13 = smov [#allocation8]  }
  0xa2   : > { %p6890_p0 = scmp.ne.s32.totalorder %s7469_s29, %s6889_s20  ;;  %s6894_s6 = sshll.u32 %s7134_s13, 4  ;;  %s6895_s6 = int_to_ptr.vmem [resolvable:$false] %s6894_s6 }
  0xa3   : > { %s6896_s23 = scalar_lea.vmem %s6895_s6, 32768  ;;  %p6897_p1 = scmp.lt.s32.totalorder %s7469_s29, %s6895_s6 }
  0xa4   : > { %p6892_p9 = pnand %p6890_p0, %p9334_p5  ;;  %p6898_p12 = scmp.lt.s32.totalorder %s6896_s23, %s6889_s20 }
  0xa6   : > { %p6893_p3 = pneg %p6892_p9  ;;  %p6899_p10 = por %p6898_p12, %p6897_p1 }
  0xa8   : > { %p6900_p11 = pnand %p6899_p10, %p6893_p3 }
  0xaa   : > { %6903 = shalt.err (!%p6900_p11)
}
  0xab   : > { %s7135_s21 = smov 128   ;;  %s7136_s27 = smov 8  }
  0xac   : > { %p9335_p2 = scmp.ne.s32.totalorder %s9317_s15, 0  ;;  %s9336_s10 = sand.u32 1, %s7092_s26  }
  0xad   : > { %s5654_s24 = sshll.u32 %s9336_s10, 3  ;;  %s6067_s0 = sshll.u32 %s7116_s8, 7 }
  0xae   : > { %6420 = dma.hbm_to_vmem [thread:$0]  (!%p9335_p2), %s7467_s4, 16384, %s7469_s29, %s7367_s5, %s7135_s21, %s7135_s21, %s7136_s27  }
  0xaf   : > { %s9337_s18 = sld [smem:[#allocation38_spill]]  ;;  %s319_s13 = scalar_lea.vmem [#allocation11], %s5654_s24 }
  0xb0   : > { %s327_s6 = sshll.u32 %s319_s13, 4  ;;  %s328_s6 = int_to_ptr.vmem [resolvable:$true] %s327_s6 }
  0xb5   : > { %s7515_s20 = scalar_lea.hbm %s9337_s18, %s6067_s0  ;;  %s6909_s4 = scalar_lea.hbm %s9337_s18, 256 }
  0xb6   : > { %s6904_s23 = scalar_lea.hbm %s7515_s20, 128  ;;  %p6910_p8 = scmp.lt.u32.totalorder %s7515_s20, %s9337_s18 }
  0xb7   : > { %p6905_p7 = scmp.ne.s32.totalorder %s7515_s20, %s6904_s23  ;;  %p6911_p6 = scmp.lt.u32.totalorder %s6909_s4, %s6904_s23 }
  0xb8   : > { %p6913_p9 = scmp.lt.u32.totalorder %s6904_s23, %s7515_s20 }
  0xb9   : > { %p6907_p13 = pnand %p6905_p7, %p9334_p5  ;;  %p6912_p0 = por %p6911_p6, %p6910_p8 }
  0xbb   : > { %p6908_p4 = pneg %p6907_p13  ;;  %p6914_p3 = por %p6913_p9, %p6912_p0 }
  0xbd   : > { %p6915_p1 = pnand %p6914_p3, %p6908_p4 }
  0xbf   : > { %6918 = shalt.err (!%p6915_p1)
}
  0xc0   : > { %s6919_s10 = scalar_lea.vmem %s328_s6, 128  ;;  %s7137_s24 = smov [#allocation11]  }
  0xc1   : > { %p6920_p12 = scmp.ne.s32.totalorder %s328_s6, %s6919_s10  ;;  %s6924_s0 = sshll.u32 %s7137_s24, 4  ;;  %s6925_s0 = int_to_ptr.vmem [resolvable:$false] %s6924_s0 }
  0xc2   : > { %s6926_s19 = scalar_lea.vmem %s6925_s0, 256  ;;  %p6927_p7 = scmp.lt.s32.totalorder %s328_s6, %s6925_s0 }
  0xc3   : > { %p6922_p10 = pnand %p6920_p12, %p9334_p5  ;;  %p6928_p13 = scmp.lt.s32.totalorder %s6926_s19, %s6919_s10 }
  0xc5   : > { %p6923_p11 = pneg %p6922_p10  ;;  %p6929_p2 = por %p6928_p13, %p6927_p7 }
  0xc7   : > { %p6930_p6 = pnand %p6929_p2, %p6923_p11 }
  0xc9   : > { %6933 = shalt.err (!%p6930_p6)
}
  0xca   : > { %p9338_p8 = scmp.ne.s32.totalorder %s9317_s15, 0  ;;  %p9339_p4 = scmp.ne.s32.totalorder %s9331_s16, 0 }
  0xcb   : > { %s338_s14 = sand.u32 (!%p9339_p4), 1, %s7398_s17   ;;  %s340_s1 = sand.u32 (!%p9339_p4), 1, %s7100_s28  }
  0xcc   : > { %6423 = dma.hbm_to_vmem [thread:$0]  (!%p9338_p8), %s7515_s20, 128, %s328_s6, %s7307_s30  }
  0xcd   : > { %336 = sbr.rel (%p9339_p4) target bundleno = 1360 (0x550), region = 40  ;;  %s5658_s13 = sshll.u32 (!%p9339_p4), %s340_s1, 9 }
  0xce   : > { %s339_s23 = scalar_lea.sflag (!%p9339_p4), [#allocation4], %s338_s14  ;;  %s7541_s29 = scalar_lea.vmem (!%p9339_p4), [#allocation3], %s5658_s13 }
  0xcf   : > { %p9340_p5 = scmp.ne.s32.totalorder (!%p9339_p4), %s9320_s7, 0 }
  0xd4   : > { %7047 = dma.done.wait (%p9340_p5), %s339_s23, 8192  }
  0xd5   : > { %7049 = vsyncadd (%p9340_p5), %s339_s23, 4294959104  ;;  %s349_s30 = sand.u32 1, %s7088_s25   ;;  %s348_s16 = scalar_lea.sflag [#allocation7], %s338_s14 }
  0xd6   : > { %s5659_s15 = sshll.u32 %s349_s30, 10  ;;  %p9341_p2 = scmp.ne.s32.totalorder %s9321_s9, 0 }
  0xd7   : > { %s7548_s20 = scalar_lea.vmem [#allocation6], %s5659_s15 }
  0xd8   : > { %7051 = dma.done.wait (%p9341_p2), %s348_s16, 32768  }
  0xd9   : > { %7053 = vsyncadd (%p9341_p2), %s348_s16, 4294934528  ;;  %s7554_s6 = scalar_lea.vmem [#allocation8], %s5659_s15  ;;  %p9342_p0 = scmp.eq.s32.totalorder %s7398_s17, 0 }
  0xdb   : > { %7055 = dma.done.wait (%p9342_p0), [#allocation10], 32   ;;  %p9343_p9 = pmov %p9342_p0 }
  0xdc   : > { %s7560_s7 = sshll.u32 %s349_s30, 3 }
  0xdd   : > { %7057 = vsyncadd (%p9343_p9), [#allocation10], 4294967264  ;;  %s373_s5 = scalar_lea.vmem [#allocation11], %s7560_s7 }
  0xde   : > { %7059 = dma.done.wait (%p9341_p2), %s339_s23, 128  }
  0xdf   : > { %7061 = vsyncadd (%p9341_p2), %s339_s23, 4294967168  ;;  %s419_s4 = sand.u32 1, %s7076_s22   ;;  %s7570_s27 = scalar_lea.vmem [#allocation12], %s5658_s13 }
  0xe0   : > { %s5664_s21 = sshll.u32 %s419_s4, 10  ;;  %s9344_s17 = sld [smem:[#allocation25_spill]] }
  0xe1   : > { %s7572_s10 = scalar_lea.vmem [#allocation13], %s5664_s21 }
  0xe6   : > { %p5665_p3 = scmp.ne.s32.totalorder %s9344_s17, 0 }
  0xe7   : > { %v499_v0 = vlaneseq (!%p5665_p3)  ;;  %v7138_v1 = vmov (!%p5665_p3), 0.0   ;;  %v497_v3 = vld [vmem:[#allocation9] sm:$0x3] (!%p5665_p3)  ;;  %v435_v5 = vld [vmem:[%s7541_s29 + $0x10] sm:$0xff] (!%p5665_p3)  ;;  %v434_v8 = vld [vmem:[%s7541_s29 + $0x8] sm:$0xff] (!%p5665_p3) }
  0xe8   : > { %432 = sbr.rel (%p5665_p3) target bundleno = 280 (0x118), region = 64  ;;  %637 = vst [vmem:[%s7570_s27] sm:$0xff] (!%p5665_p3), %v7138_v1  ;;  %638 = vst [vmem:[%s7570_s27 + $0x8] sm:$0xff] (!%p5665_p3), %v7138_v1  ;;  %v433_v4 = vld [vmem:[%s7541_s29] sm:$0xff] (!%p5665_p3)  ;;  %v436_v9 = vld [vmem:[%s7541_s29 + $0x18] sm:$0xff] (!%p5665_p3) }
  0xe9   : > { %639 = vst [vmem:[%s7570_s27 + $0x10] sm:$0xff] (!%p5665_p3), %v7138_v1  ;;  %640 = vst [vmem:[%s7570_s27 + $0x18] sm:$0xff] (!%p5665_p3), %v7138_v1  ;;  %v500_v2 = vshrl.u32 (!%p5665_p3), %v499_v0, 7  ;;  %v437_v10 = vld [vmem:[%s7541_s29 + $0x20] sm:$0xff] (!%p5665_p3)  ;;  %v439_v13 = vld [vmem:[%s7541_s29 + $0x30] sm:$0xff] (!%p5665_p3) }
  0xea   : > { %641 = vst [vmem:[%s7570_s27 + $0x20] sm:$0xff] (!%p5665_p3), %v7138_v1  ;;  %642 = vst [vmem:[%s7570_s27 + $0x28] sm:$0xff] (!%p5665_p3), %v7138_v1  ;;  %v438_v14 = vld [vmem:[%s7541_s29 + $0x28] sm:$0xff] (!%p5665_p3)  ;;  %v440_v15 = vld [vmem:[%s7541_s29 + $0x38] sm:$0xff] (!%p5665_p3) }
  0xeb   : > { %643 = vst [vmem:[%s7570_s27 + $0x30] sm:$0xff] (!%p5665_p3), %v7138_v1  ;;  %644 = vst [vmem:[%s7570_s27 + $0x38] sm:$0xff] (!%p5665_p3), %v7138_v1  ;;  %v501_v6 = vsub.s32 (!%p5665_p3), 0, %v500_v2  ;;  %v505_v7 = vsub.s32 (!%p5665_p3), 1, %v500_v2  ;;  %v441_v16 = vld [vmem:[%s7541_s29 + $0x40] sm:$0xff] (!%p5665_p3)  ;;  %v443_v17 = vld [vmem:[%s7541_s29 + $0x50] sm:$0xff] (!%p5665_p3) }
  0xec   : > { %645 = vst [vmem:[%s7570_s27 + $0x40] sm:$0xff] (!%p5665_p3), %v7138_v1  ;;  %646 = vst [vmem:[%s7570_s27 + $0x48] sm:$0xff] (!%p5665_p3), %v7138_v1  ;;  %v442_v22 = vld [vmem:[%s7541_s29 + $0x48] sm:$0xff] (!%p5665_p3)  ;;  %v444_v23 = vld [vmem:[%s7541_s29 + $0x58] sm:$0xff] (!%p5665_p3) }
  0xed   : > { %647 = vst [vmem:[%s7570_s27 + $0x50] sm:$0xff] (!%p5665_p3), %v7138_v1  ;;  %648 = vst [vmem:[%s7570_s27 + $0x58] sm:$0xff] (!%p5665_p3), %v7138_v1  ;;  %v7709_v11 = vrot.slane (!%p5665_p3), %v497_v3, %v501_v6  ;;  %v7711_v12 = vrot.slane (!%p5665_p3), %v497_v3, %v505_v7  ;;  %v445_v28 = vld [vmem:[%s7541_s29 + $0x60] sm:$0xff] (!%p5665_p3)  ;;  %v447_v29 = vld [vmem:[%s7541_s29 + $0x70] sm:$0xff] (!%p5665_p3) }
  0xee   : > { %649 = vst [vmem:[%s7570_s27 + $0x60] sm:$0xff] (!%p5665_p3), %v7138_v1  ;;  %650 = vst [vmem:[%s7570_s27 + $0x68] sm:$0xff] (!%p5665_p3), %v7138_v1  ;;  %v446_v30 = vld [vmem:[%s7541_s29 + $0x68] sm:$0xff] (!%p5665_p3)  ;;  %v448_v35 = vld [vmem:[%s7541_s29 + $0x78] sm:$0xff] (!%p5665_p3) }
  0xef   : > { %651 = vst [vmem:[%s7570_s27 + $0x70] sm:$0xff] %v7138_v1  ;;  %652 = vst [vmem:[%s7570_s27 + $0x78] sm:$0xff] %v7138_v1  ;;  %v509_v18 = vsub.f32 %v433_v4, %v7709_v11  ;;  %v511_v19 = vsub.f32 %v435_v5, %v7709_v11  ;;  %v510_v20 = vsub.f32 %v434_v8, %v7711_v12  ;;  %v449_v36 = vld [vmem:[%s7541_s29 + $0x80] sm:$0xff]  ;;  %v451_v37 = vld [vmem:[%s7541_s29 + $0x90] sm:$0xff] }
  0xf0   : > { %653 = vst [vmem:[%s7570_s27 + $0x80] sm:$0xff] %v7138_v1  ;;  %654 = vst [vmem:[%s7570_s27 + $0x88] sm:$0xff] %v7138_v1  ;;  %v512_v21 = vsub.f32 %v436_v9, %v7711_v12  ;;  %v513_v24 = vsub.f32 %v437_v10, %v7709_v11  ;;  %v515_v25 = vsub.f32 %v439_v13, %v7709_v11  ;;  %v450_v42 = vld [vmem:[%s7541_s29 + $0x88] sm:$0xff]  ;;  %v452_v43 = vld [vmem:[%s7541_s29 + $0x98] sm:$0xff] }
  0xf1   : > { %655 = vst [vmem:[%s7570_s27 + $0x90] sm:$0xff] %v7138_v1  ;;  %656 = vst [vmem:[%s7570_s27 + $0x98] sm:$0xff] %v7138_v1  ;;  %v514_v26 = vsub.f32 %v438_v14, %v7711_v12  ;;  %v516_v27 = vsub.f32 %v440_v15, %v7711_v12  ;;  %v573_v31 = vpack.c.bf16 %v511_v19, %v509_v18  ;;  %v453_v44 = vld [vmem:[%s7541_s29 + $0xa0] sm:$0xff]  ;;  %v455_v49 = vld [vmem:[%s7541_s29 + $0xb0] sm:$0xff] }
  0xf2   : > { %657 = vst [vmem:[%s7570_s27 + $0xa0] sm:$0xff] %v7138_v1  ;;  %658 = vst [vmem:[%s7570_s27 + $0xa8] sm:$0xff] %v7138_v1  ;;  %v574_v32 = vpack.c.bf16 %v512_v21, %v510_v20  ;;  %v517_v33 = vsub.f32 %v441_v16, %v7709_v11  ;;  %v519_v34 = vsub.f32 %v443_v17, %v7709_v11  ;;  %v454_v50 = vld [vmem:[%s7541_s29 + $0xa8] sm:$0xff]  ;;  %v456_v55 = vld [vmem:[%s7541_s29 + $0xb8] sm:$0xff] }
  0xf3   : > { %659 = vst [vmem:[%s7570_s27 + $0xb0] sm:$0xff] %v7138_v1  ;;  %660 = vst [vmem:[%s7570_s27 + $0xb8] sm:$0xff] %v7138_v1  ;;  %v575_v38 = vpack.c.bf16 %v515_v25, %v513_v24  ;;  %v576_v39 = vpack.c.bf16 %v516_v27, %v514_v26  ;;  %v518_v40 = vsub.f32 %v442_v22, %v7711_v12  ;;  %v457_v56 = vld [vmem:[%s7541_s29 + $0xc0] sm:$0xff]  ;;  %v459_v57 = vld [vmem:[%s7541_s29 + $0xd0] sm:$0xff] }
  0xf4   : > { %661 = vst [vmem:[%s7570_s27 + $0xc0] sm:$0xff] %v7138_v1  ;;  %662 = vst [vmem:[%s7570_s27 + $0xc8] sm:$0xff] %v7138_v1  ;;  %v520_v41 = vsub.f32 %v444_v23, %v7711_v12  ;;  %v577_v45 = vpack.c.bf16 %v519_v34, %v517_v33  ;;  %v521_v46 = vsub.f32 %v445_v28, %v7709_v11  ;;  %v458_v62 = vld [vmem:[%s7541_s29 + $0xc8] sm:$0xff]  ;;  %v460_v63 = vld [vmem:[%s7541_s29 + $0xd8] sm:$0xff] }
  0xf5   : > { %663 = vst [vmem:[%s7570_s27 + $0xd0] sm:$0xff] %v7138_v1  ;;  %664 = vst [vmem:[%s7570_s27 + $0xd8] sm:$0xff] %v7138_v1  ;;  %v523_v47 = vsub.f32 %v447_v29, %v7709_v11  ;;  %v522_v48 = vsub.f32 %v446_v30, %v7711_v12  ;;  %v524_v52 = vsub.f32 %v448_v35, %v7711_v12  ;;  %v461_v0 = vld [vmem:[%s7541_s29 + $0xe0] sm:$0xff]  ;;  %v463_v5 = vld [vmem:[%s7541_s29 + $0xf0] sm:$0xff] }
  0xf6   : > { %665 = vst [vmem:[%s7570_s27 + $0xe0] sm:$0xff] %v7138_v1  ;;  %666 = vst [vmem:[%s7570_s27 + $0xe8] sm:$0xff] %v7138_v1  ;;  %v578_v51 = vpack.c.bf16 %v520_v41, %v518_v40  ;;  %v525_v53 = vsub.f32 %v449_v36, %v7709_v11  ;;  %v527_v54 = vsub.f32 %v451_v37, %v7709_v11  ;;  %v462_v6 = vld [vmem:[%s7541_s29 + $0xe8] sm:$0xff]  ;;  %v464_v13 = vld [vmem:[%s7541_s29 + $0xf8] sm:$0xff] }
  0xf7   : > { %667 = vst [vmem:[%s7570_s27 + $0xf0] sm:$0xff] %v7138_v1  ;;  %668 = vst [vmem:[%s7570_s27 + $0xf8] sm:$0xff] %v7138_v1  ;;  %v579_v58 = vpack.c.bf16 %v523_v47, %v521_v46  ;;  %v526_v59 = vsub.f32 %v450_v42, %v7711_v12  ;;  %v528_v60 = vsub.f32 %v452_v43, %v7711_v12  ;;  %v465_v14 = vld [vmem:[%s7541_s29 + $0x100] sm:$0xff]  ;;  %v467_v15 = vld [vmem:[%s7541_s29 + $0x110] sm:$0xff] }
  0xf8   : > { %669 = vst [vmem:[%s7570_s27 + $0x100] sm:$0xff] %v7138_v1  ;;  %670 = vst [vmem:[%s7570_s27 + $0x108] sm:$0xff] %v7138_v1  ;;  %v529_v61 = vsub.f32 %v453_v44, %v7709_v11  ;;  %v581_v2 = vpack.c.bf16 %v527_v54, %v525_v53  ;;  %v531_v3 = vsub.f32 %v455_v49, %v7709_v11  ;;  %v466_v20 = vld [vmem:[%s7541_s29 + $0x108] sm:$0xff]  ;;  %v468_v21 = vld [vmem:[%s7541_s29 + $0x118] sm:$0xff] }
  0xf9   : > { %671 = vst [vmem:[%s7570_s27 + $0x110] sm:$0xff] %v7138_v1  ;;  %672 = vst [vmem:[%s7570_s27 + $0x118] sm:$0xff] %v7138_v1  ;;  %v530_v4 = vsub.f32 %v454_v50, %v7711_v12  ;;  %v582_v7 = vpack.c.bf16 %v528_v60, %v526_v59  ;;  %v532_v8 = vsub.f32 %v456_v55, %v7711_v12  ;;  %v469_v22 = vld [vmem:[%s7541_s29 + $0x120] sm:$0xff]  ;;  %v471_v27 = vld [vmem:[%s7541_s29 + $0x130] sm:$0xff] }
  0xfa   : > { %673 = vst [vmem:[%s7570_s27 + $0x120] sm:$0xff] %v7138_v1  ;;  %674 = vst [vmem:[%s7570_s27 + $0x128] sm:$0xff] %v7138_v1  ;;  %v533_v9 = vsub.f32 %v457_v56, %v7709_v11  ;;  %v535_v10 = vsub.f32 %v459_v57, %v7709_v11  ;;  %v583_v16 = vpack.c.bf16 %v531_v3, %v529_v61  ;;  %v470_v28 = vld [vmem:[%s7541_s29 + $0x128] sm:$0xff]  ;;  %v472_v33 = vld [vmem:[%s7541_s29 + $0x138] sm:$0xff] }
  0xfb   : > { %675 = vst [vmem:[%s7570_s27 + $0x130] sm:$0xff] %v7138_v1  ;;  %676 = vst [vmem:[%s7570_s27 + $0x138] sm:$0xff] %v7138_v1  ;;  %v534_v17 = vsub.f32 %v458_v62, %v7711_v12  ;;  %v536_v18 = vsub.f32 %v460_v63, %v7711_v12  ;;  %v537_v19 = vsub.f32 %v461_v0, %v7709_v11  ;;  %v473_v34 = vld [vmem:[%s7541_s29 + $0x140] sm:$0xff]  ;;  %v475_v35 = vld [vmem:[%s7541_s29 + $0x150] sm:$0xff] }
  0xfc   : > { %677 = vst [vmem:[%s7570_s27 + $0x140] sm:$0xff] %v7138_v1  ;;  %678 = vst [vmem:[%s7570_s27 + $0x148] sm:$0xff] %v7138_v1  ;;  %v584_v23 = vpack.c.bf16 %v532_v8, %v530_v4  ;;  %v585_v24 = vpack.c.bf16 %v535_v10, %v533_v9  ;;  %v539_v25 = vsub.f32 %v463_v5, %v7709_v11  ;;  %v474_v40 = vld [vmem:[%s7541_s29 + $0x148] sm:$0xff]  ;;  %v476_v41 = vld [vmem:[%s7541_s29 + $0x158] sm:$0xff] }
  0xfd   : > { %679 = vst [vmem:[%s7570_s27 + $0x150] sm:$0xff] %v7138_v1  ;;  %680 = vst [vmem:[%s7570_s27 + $0x158] sm:$0xff] %v7138_v1  ;;  %v538_v26 = vsub.f32 %v462_v6, %v7711_v12  ;;  %v586_v29 = vpack.c.bf16 %v536_v18, %v534_v17  ;;  %v540_v30 = vsub.f32 %v464_v13, %v7711_v12  ;;  %v477_v42 = vld [vmem:[%s7541_s29 + $0x160] sm:$0xff]  ;;  %v479_v47 = vld [vmem:[%s7541_s29 + $0x170] sm:$0xff] }
  0xfe   : > { %681 = vst [vmem:[%s7570_s27 + $0x160] sm:$0xff] %v7138_v1  ;;  %682 = vst [vmem:[%s7570_s27 + $0x168] sm:$0xff] %v7138_v1  ;;  %v587_v36 = vpack.c.bf16 %v539_v25, %v537_v19  ;;  %v542_v37 = vsub.f32 %v466_v20, %v7711_v12  ;;  %v546_v46 = vsub.f32 %v470_v28, %v7711_v12  ;;  %v480_v53 = vld [vmem:[%s7541_s29 + $0x178] sm:$0xff]  ;;  %v481_v54 = vld [vmem:[%s7541_s29 + $0x180] sm:$0xff] }
  0xff   : > { %683 = vst [vmem:[%s7570_s27 + $0x170] sm:$0xff] %v7138_v1  ;;  %684 = vst [vmem:[%s7570_s27 + $0x178] sm:$0xff] %v7138_v1  ;;  %v588_v43 = vpack.c.bf16 %v540_v30, %v538_v26  ;;  %v548_v50 = vsub.f32 %v472_v33, %v7711_v12  ;;  %v483_v55 = vld [vmem:[%s7541_s29 + $0x190] sm:$0xff]  ;;  %v550_v57 = vsub.f32 %v474_v40, %v7711_v12  ;;  %v482_v60 = vld [vmem:[%s7541_s29 + $0x188] sm:$0xff] }
 0x100   : > { %685 = vst [vmem:[%s7570_s27 + $0x180] sm:$0xff] %v7138_v1  ;;  %686 = vst [vmem:[%s7570_s27 + $0x188] sm:$0xff] %v7138_v1  ;;  %v553_v59 = vsub.f32 %v477_v42, %v7709_v11  ;;  %v484_v61 = vld [vmem:[%s7541_s29 + $0x198] sm:$0xff]  ;;  %v485_v62 = vld [vmem:[%s7541_s29 + $0x1a0] sm:$0xff]  ;;  %v556_v6 = vsub.f32 %v480_v53, %v7711_v12  ;;  %v559_v8 = vsub.f32 %v483_v55, %v7709_v11 }
 0x101   : > { %687 = vst [vmem:[%s7570_s27 + $0x190] sm:$0xff] %v7138_v1  ;;  %688 = vst [vmem:[%s7570_s27 + $0x198] sm:$0xff] %v7138_v1  ;;  %v592_v63 = vpack.c.bf16 %v548_v50, %v546_v46  ;;  %v487_v3 = vld [vmem:[%s7541_s29 + $0x1b0] sm:$0xff]  ;;  %v486_v4 = vld [vmem:[%s7541_s29 + $0x1a8] sm:$0xff]  ;;  %v561_v17 = vsub.f32 %v485_v62, %v7709_v11 }
 0x102   : > { %689 = vst [vmem:[%s7570_s27 + $0x1a0] sm:$0xff] %v7138_v1  ;;  %690 = vst [vmem:[%s7570_s27 + $0x1a8] sm:$0xff] %v7138_v1  ;;  %v488_v9 = vld [vmem:[%s7541_s29 + $0x1b8] sm:$0xff]  ;;  %v489_v10 = vld [vmem:[%s7541_s29 + $0x1c0] sm:$0xff] }
 0x103   : > { %691 = vst [vmem:[%s7570_s27 + $0x1b0] sm:$0xff] %v7138_v1  ;;  %692 = vst [vmem:[%s7570_s27 + $0x1b8] sm:$0xff] %v7138_v1  ;;  %v491_v13 = vld [vmem:[%s7541_s29 + $0x1d0] sm:$0xff]  ;;  %v490_v18 = vld [vmem:[%s7541_s29 + $0x1c8] sm:$0xff]  ;;  %v564_v28 = vsub.f32 %v488_v9, %v7711_v12 }
 0x104   : > { %693 = vst [vmem:[%s7570_s27 + $0x1c0] sm:$0xff] %v7138_v1  ;;  %694 = vst [vmem:[%s7570_s27 + $0x1c8] sm:$0xff] %v7138_v1  ;;  %v492_v19 = vld [vmem:[%s7541_s29 + $0x1d8] sm:$0xff]  ;;  %v493_v20 = vld [vmem:[%s7541_s29 + $0x1e0] sm:$0xff]  ;;  %v567_v30 = vsub.f32 %v491_v13, %v7709_v11  ;;  %v566_v33 = vsub.f32 %v490_v18, %v7711_v12 }
 0x105   : > { %695 = vst [vmem:[%s7570_s27 + $0x1d0] sm:$0xff] %v7138_v1  ;;  %696 = vst [vmem:[%s7570_s27 + $0x1d8] sm:$0xff] %v7138_v1  ;;  %v495_v25 = vld [vmem:[%s7541_s29 + $0x1f0] sm:$0xff]  ;;  %v494_v26 = vld [vmem:[%s7541_s29 + $0x1e8] sm:$0xff] }
 0x106   : > { %697 = vst [vmem:[%s7570_s27 + $0x1e0] sm:$0xff] %v7138_v1  ;;  %698 = vst [vmem:[%s7570_s27 + $0x1e8] sm:$0xff] %v7138_v1 }
 0x107   : > { %699 = vst [vmem:[%s7570_s27 + $0x1f0] sm:$0xff] %v7138_v1  ;;  %700 = vst [vmem:[%s7570_s27 + $0x1f8] sm:$0xff] %v7138_v1  ;;  %v580_v1 = vpack.c.bf16 %v524_v52, %v522_v48  ;;  %v478_v48 = vld [vmem:[%s7541_s29 + $0x168] sm:$0xff]  ;;  %v551_v52 = vsub.f32 %v475_v35, %v7709_v11  ;;  %v569_v35 = vsub.f32 %v493_v20, %v7709_v11 }
 0x108   : > { %605 = vst [vmem:[#allocation2] sm:$0xff] %v573_v31  ;;  %606 = vst [vmem:[#allocation2 + $0x8] sm:$0xff] %v574_v32  ;;  %v541_v31 = vsub.f32 %v465_v14, %v7709_v11  ;;  %v543_v32 = vsub.f32 %v467_v15, %v7709_v11  ;;  %v558_v15 = vsub.f32 %v482_v60, %v7711_v12 }
 0x109   : > { %607 = vst [vmem:[#allocation2 + $0x10] sm:$0xff] %v575_v38  ;;  %608 = vst [vmem:[#allocation2 + $0x18] sm:$0xff] %v576_v39  ;;  %v544_v38 = vsub.f32 %v468_v21, %v7711_v12  ;;  %v545_v39 = vsub.f32 %v469_v22, %v7709_v11 }
 0x10a   : > { %609 = vst [vmem:[#allocation2 + $0x20] sm:$0xff] %v577_v45  ;;  %610 = vst [vmem:[#allocation2 + $0x28] sm:$0xff] %v578_v51  ;;  %v589_v44 = vpack.c.bf16 %v543_v32, %v541_v31  ;;  %v547_v45 = vsub.f32 %v471_v27, %v7709_v11  ;;  %v549_v51 = vsub.f32 %v473_v34, %v7709_v11  ;;  %v496_v31 = vld [vmem:[%s7541_s29 + $0x1f8] sm:$0xff] }
 0x10b   : > { %611 = vst [vmem:[#allocation2 + $0x30] sm:$0xff] %v579_v58  ;;  %612 = vst [vmem:[#allocation2 + $0x38] sm:$0xff] %v580_v1  ;;  %v590_v49 = vpack.c.bf16 %v544_v38, %v542_v37  ;;  %v552_v58 = vsub.f32 %v476_v41, %v7711_v12  ;;  %v555_v1 = vsub.f32 %v479_v47, %v7709_v11 }
 0x10c   : > { %613 = vst [vmem:[#allocation2 + $0x40] sm:$0xff] %v581_v2  ;;  %614 = vst [vmem:[#allocation2 + $0x48] sm:$0xff] %v582_v7  ;;  %v591_v56 = vpack.c.bf16 %v547_v45, %v545_v39  ;;  %v593_v0 = vpack.c.bf16 %v551_v52, %v549_v51  ;;  %v554_v2 = vsub.f32 %v478_v48, %v7711_v12 }
 0x10d   : > { %615 = vst [vmem:[#allocation2 + $0x50] sm:$0xff] %v583_v16  ;;  %616 = vst [vmem:[#allocation2 + $0x58] sm:$0xff] %v584_v23  ;;  %v594_v5 = vpack.c.bf16 %v552_v58, %v550_v57  ;;  %v557_v7 = vsub.f32 %v481_v54, %v7709_v11  ;;  %v595_v14 = vpack.c.bf16 %v555_v1, %v553_v59 }
 0x10e   : > { %617 = vst [vmem:[#allocation2 + $0x60] sm:$0xff] %v585_v24  ;;  %618 = vst [vmem:[#allocation2 + $0x68] sm:$0xff] %v586_v29  ;;  %v560_v16 = vsub.f32 %v484_v61, %v7711_v12  ;;  %v596_v21 = vpack.c.bf16 %v556_v6, %v554_v2  ;;  %v563_v23 = vsub.f32 %v487_v3, %v7709_v11 }
 0x10f   : > { %619 = vst [vmem:[#allocation2 + $0x70] sm:$0xff] %v587_v36  ;;  %620 = vst [vmem:[#allocation2 + $0x78] sm:$0xff] %v588_v43  ;;  %v597_v22 = vpack.c.bf16 %v559_v8, %v557_v7  ;;  %v562_v24 = vsub.f32 %v486_v4, %v7711_v12  ;;  %v565_v29 = vsub.f32 %v489_v10, %v7709_v11 }
 0x110   : > { %621 = vst [vmem:[#allocation2 + $0x80] sm:$0xff] %v589_v44  ;;  %622 = vst [vmem:[#allocation2 + $0x88] sm:$0xff] %v590_v49  ;;  %v598_v27 = vpack.c.bf16 %v560_v16, %v558_v15  ;;  %v599_v32 = vpack.c.bf16 %v563_v23, %v561_v17  ;;  %v568_v34 = vsub.f32 %v492_v19, %v7711_v12 }
 0x111   : > { %623 = vst [vmem:[#allocation2 + $0x90] sm:$0xff] %v591_v56  ;;  %624 = vst [vmem:[#allocation2 + $0x98] sm:$0xff] %v592_v63  ;;  %v600_v36 = vpack.c.bf16 %v564_v28, %v562_v24  ;;  %v601_v37 = vpack.c.bf16 %v567_v30, %v565_v29  ;;  %v571_v38 = vsub.f32 %v495_v25, %v7709_v11 }
 0x112   : > { %625 = vst [vmem:[#allocation2 + $0xa0] sm:$0xff] %v593_v0  ;;  %626 = vst [vmem:[#allocation2 + $0xa8] sm:$0xff] %v594_v5  ;;  %v570_v39 = vsub.f32 %v494_v26, %v7711_v12  ;;  %v602_v40 = vpack.c.bf16 %v568_v34, %v566_v33  ;;  %v572_v41 = vsub.f32 %v496_v31, %v7711_v12 }
 0x113   : > { %627 = vst [vmem:[#allocation2 + $0xb0] sm:$0xff] %v595_v14  ;;  %628 = vst [vmem:[#allocation2 + $0xb8] sm:$0xff] %v596_v21  ;;  %v603_v42 = vpack.c.bf16 %v571_v38, %v569_v35 }
 0x114   : > { %629 = vst [vmem:[#allocation2 + $0xc0] sm:$0xff] %v597_v22  ;;  %630 = vst [vmem:[#allocation2 + $0xc8] sm:$0xff] %v598_v27  ;;  %v604_v43 = vpack.c.bf16 %v572_v41, %v570_v39 }
 0x115   : > { %631 = vst [vmem:[#allocation2 + $0xd0] sm:$0xff] %v599_v32  ;;  %632 = vst [vmem:[#allocation2 + $0xd8] sm:$0xff] %v600_v36 }
 0x116   : > { %633 = vst [vmem:[#allocation2 + $0xe0] sm:$0xff] %v601_v37  ;;  %634 = vst [vmem:[#allocation2 + $0xe8] sm:$0xff] %v602_v40 }
 0x117   : > { %635 = vst [vmem:[#allocation2 + $0xf0] sm:$0xff] %v603_v42  ;;  %636 = vst [vmem:[#allocation2 + $0xf8] sm:$0xff] %v604_v43 }
 0x118 PF: > { %v733_v11 = vld [vmem:[%s7548_s20] sm:$0xff]  ;;  %v7846_v59 = vld [vmem:[#allocation2 + $0x8] sm:$0xff]  ;;  %s9345_s9 = sld [smem:[#allocation25_spill]] }
 0x119   : > { %v737_v44 = vld [vmem:[%s7548_s20 + $0x20] sm:$0xff]  ;;  %1575 = vmatprep.mubr.bf16.mxu1 %v7846_v59  ;;  %v734_v43 = vld [vmem:[%s7548_s20 + $0x8] sm:$0xff] }
 0x11a   : > { %v741_v45 = vld [vmem:[%s7548_s20 + $0x40] sm:$0xff]  ;;  %v5667_v12 = vcombine.high %v733_v11, %v737_v44  ;;  %v5666_v46 = vcombine.low %v733_v11, %v737_v44  ;;  %v738_v11 = vld [vmem:[%s7548_s20 + $0x28] sm:$0xff] }
 0x11b   : > { %v745_v47 = vld [vmem:[%s7548_s20 + $0x60] sm:$0xff] }
 0x11c   : > { %v5675_v48 = vcombine.high %v741_v45, %v745_v47  ;;  %v749_v49 = vld [vmem:[%s7548_s20 + $0x80] sm:$0xff]  ;;  %1543 = vmatprep.subr.bf16.mxu1 %v5667_v12  ;;  %v5674_v51 = vcombine.low %v741_v45, %v745_v47  ;;  %v742_v12 = vld [vmem:[%s7548_s20 + $0x48] sm:$0xff]  ;;  %v5669_v47 = vcombine.high %v734_v43, %v738_v11 }
 0x11d   : > { %v753_v50 = vld [vmem:[%s7548_s20 + $0xa0] sm:$0xff]  ;;  %1544 = vmatpush1.bf16.msra.mxu1 %v5666_v46  ;;  %v746_v46 = vld [vmem:[%s7548_s20 + $0x68] sm:$0xff] }
 0x11e   : > { %1545 = vmatprep.subr.bf16.mxu1 %v5675_v48  ;;  %v5683_v52 = vcombine.high %v749_v49, %v753_v50  ;;  %v757_v53 = vld [vmem:[%s7548_s20 + $0xc0] sm:$0xff]  ;;  %v5682_v55 = vcombine.low %v749_v49, %v753_v50  ;;  %v7877_v49 = vld [vmem:[#allocation2 + $0x18] sm:$0xff]  ;;  %v5668_v50 = vcombine.low %v734_v43, %v738_v11  ;;  %v822_v43 = vld [vmem:[%s7548_s20 + $0x2c8] sm:$0xff]  ;;  %p6050_p1 = scmp.ne.s32.totalorder %s9345_s9, 1 }
 0x11f   : > { %v761_v54 = vld [vmem:[%s7548_s20 + $0xe0] sm:$0xff]  ;;  %v826_v11 = vld [vmem:[%s7548_s20 + $0x2e8] sm:$0xff] }
 0x120   : > { %v5691_v56 = vcombine.high %v757_v53, %v761_v54  ;;  %v765_v57 = vld [vmem:[%s7548_s20 + $0x100] sm:$0xff]  ;;  %v5690_v60 = vcombine.low %v757_v53, %v761_v54  ;;  %v5677_v53 = vcombine.high %v742_v12, %v746_v46  ;;  %v7883_v54 = vld [vmem:[%s7548_s20 + $0x10] sm:$0xff] }
 0x121   : > { %1546 = vmatpush1.bf16.msra.mxu1 %v5674_v51  ;;  %v769_v58 = vld [vmem:[%s7548_s20 + $0x120] sm:$0xff]  ;;  %v750_v51 = vld [vmem:[%s7548_s20 + $0x88] sm:$0xff] }
 0x122   : > { %1547 = vmatprep.subr.bf16.mxu1 %v5683_v52  ;;  %v5699_v61 = vcombine.high %v765_v57, %v769_v58  ;;  %v773_v62 = vld [vmem:[%s7548_s20 + $0x140] sm:$0xff]  ;;  %v5698_v0 = vcombine.low %v765_v57, %v769_v58  ;;  %v754_v52 = vld [vmem:[%s7548_s20 + $0xa8] sm:$0xff] }
 0x123   : > { %v777_v63 = vld [vmem:[%s7548_s20 + $0x160] sm:$0xff]  ;;  %v758_v57 = vld [vmem:[%s7548_s20 + $0xc8] sm:$0xff] }
 0x124   : > { %v5707_v1 = vcombine.high %v773_v62, %v777_v63  ;;  %v781_v2 = vld [vmem:[%s7548_s20 + $0x180] sm:$0xff]  ;;  %v5706_v4 = vcombine.low %v773_v62, %v777_v63  ;;  %v762_v58 = vld [vmem:[%s7548_s20 + $0xe8] sm:$0xff]  ;;  %v7893_v62 = vld [vmem:[#allocation2 + $0x10] sm:$0xff] }
 0x125   : > { %1548 = vmatpush1.bf16.msra.mxu1 %v5682_v55  ;;  %v785_v3 = vld [vmem:[%s7548_s20 + $0x1a0] sm:$0xff]  ;;  %v7886_v55 = vld [vmem:[%s7548_s20 + $0x30] sm:$0xff]  ;;  %v7895_v63 = vld [vmem:[#allocation2 + $0x28] sm:$0xff] }
 0x126   : > { %1549 = vmatprep.subr.bf16.mxu1 %v5691_v56  ;;  %v5715_v5 = vcombine.high %v781_v2, %v785_v3  ;;  %v789_v6 = vld [vmem:[%s7548_s20 + $0x1c0] sm:$0xff]  ;;  %v5714_v8 = vcombine.low %v781_v2, %v785_v3  ;;  %v5676_v56 = vcombine.low %v742_v12, %v746_v46  ;;  %v770_v2 = vld [vmem:[%s7548_s20 + $0x128] sm:$0xff]  ;;  %v5693_v3 = vcombine.high %v758_v57, %v762_v58 }
 0x127   : > { %v793_v7 = vld [vmem:[%s7548_s20 + $0x1e0] sm:$0xff]  ;;  %v7941_v46 = vld [vmem:[#allocation2 + $0x68] sm:$0xff] }
 0x128   : > { %v5723_v9 = vcombine.high %v789_v6, %v793_v7  ;;  %v797_v10 = vld [vmem:[%s7548_s20 + $0x200] sm:$0xff]  ;;  %v5722_v14 = vcombine.low %v789_v6, %v793_v7  ;;  %v774_v6 = vld [vmem:[%s7548_s20 + $0x148] sm:$0xff] }
 0x129   : > { %1550 = vmatpush1.bf16.msra.mxu1 %v5690_v60  ;;  %v801_v13 = vld [vmem:[%s7548_s20 + $0x220] sm:$0xff]  ;;  %v5670_v60 = vcombine.low %v7883_v54, %v7886_v55  ;;  %v778_v7 = vld [vmem:[%s7548_s20 + $0x168] sm:$0xff] }
 0x12a   : > { %1551 = vmatprep.subr.bf16.mxu1 %v5699_v61  ;;  %v805_v15 = vld [vmem:[%s7548_s20 + $0x240] sm:$0xff]  ;;  %v5731_v17 = vcombine.high %v797_v10, %v801_v13  ;;  %v5730_v18 = vcombine.low %v797_v10, %v801_v13  ;;  %v5685_v61 = vcombine.high %v750_v51, %v754_v52  ;;  %v7905_v10 = vld [vmem:[#allocation2 + $0x38] sm:$0xff]  ;;  %v5709_v13 = vcombine.high %v774_v6, %v778_v7 }
 0x12b   : > { %v809_v16 = vld [vmem:[%s7548_s20 + $0x260] sm:$0xff] }
 0x12c   : > { %v813_v19 = vld [vmem:[%s7548_s20 + $0x280] sm:$0xff]  ;;  %v5739_v21 = vcombine.high %v805_v15, %v809_v16  ;;  %v5738_v22 = vcombine.low %v805_v15, %v809_v16  ;;  %v786_v15 = vld [vmem:[%s7548_s20 + $0x1a8] sm:$0xff]  ;;  %v5708_v16 = vcombine.low %v774_v6, %v778_v7 }
 0x12d   : > { %1552 = vmatpush1.bf16.msra.mxu1 %v5698_v0  ;;  %v817_v20 = vld [vmem:[%s7548_s20 + $0x2a0] sm:$0xff]  ;;  %v5684_v0 = vcombine.low %v750_v51, %v754_v52  ;;  %v834_v51 = vld [vmem:[%s7548_s20 + $0x328] sm:$0xff]  ;;  %v6570_v52 = vld [vmem:[%s7554_s6 + $0x34] ss:$8 sps:$4 sm:$0xff]  }
 0x12e   : > { %1553 = vmatprep.subr.bf16.mxu1 %v5707_v1  ;;  %v821_v23 = vld [vmem:[%s7548_s20 + $0x2c0] sm:$0xff]  ;;  %v5747_v25 = vcombine.high %v813_v19, %v817_v20  ;;  %v5746_v26 = vcombine.low %v813_v19, %v817_v20  ;;  %v766_v1 = vld [vmem:[%s7548_s20 + $0x108] sm:$0xff]  ;;  %v7913_v20 = vld [vmem:[#allocation2 + $0x30] sm:$0xff] }
 0x12f   : > { %v825_v24 = vld [vmem:[%s7548_s20 + $0x2e0] sm:$0xff]  ;;  %v794_v19 = vld [vmem:[%s7548_s20 + $0x1e8] sm:$0xff] }
 0x130   : > { %v829_v27 = vld [vmem:[%s7548_s20 + $0x300] sm:$0xff]  ;;  %v5755_v29 = vcombine.high %v821_v23, %v825_v24  ;;  %v5754_v30 = vcombine.low %v821_v23, %v825_v24  ;;  %v798_v24 = vld [vmem:[%s7548_s20 + $0x208] sm:$0xff] }
 0x131   : > { %1554 = vmatpush1.bf16.msra.mxu1 %v5706_v4  ;;  %v833_v28 = vld [vmem:[%s7548_s20 + $0x320] sm:$0xff]  ;;  %v5692_v4 = vcombine.low %v758_v57, %v762_v58  ;;  %v846_v6 = vld [vmem:[%s7548_s20 + $0x388] sm:$0xff] }
 0x132   : > { %1555 = vmatprep.subr.bf16.mxu1 %v5715_v5  ;;  %v837_v31 = vld [vmem:[%s7548_s20 + $0x340] sm:$0xff]  ;;  %v5763_v33 = vcombine.high %v829_v27, %v833_v28  ;;  %v5762_v34 = vcombine.low %v829_v27, %v833_v28  ;;  %v5701_v5 = vcombine.high %v766_v1, %v770_v2  ;;  %v850_v7 = vld [vmem:[%s7548_s20 + $0x3a8] sm:$0xff] }
 0x133   : > { %v841_v32 = vld [vmem:[%s7548_s20 + $0x360] sm:$0xff] }
 0x134   : > { %v845_v35 = vld [vmem:[%s7548_s20 + $0x380] sm:$0xff]  ;;  %v5771_v37 = vcombine.high %v837_v31, %v841_v32  ;;  %v5770_v38 = vcombine.low %v837_v31, %v841_v32  ;;  %v810_v31 = vld [vmem:[%s7548_s20 + $0x268] sm:$0xff] }
 0x135   : > { %1556 = vmatpush1.bf16.msra.mxu1 %v5714_v8  ;;  %v849_v36 = vld [vmem:[%s7548_s20 + $0x3a0] sm:$0xff] }
 0x136   : > { %1557 = vmatprep.subr.bf16.mxu1 %v5723_v9  ;;  %v853_v39 = vld [vmem:[%s7548_s20 + $0x3c0] sm:$0xff]  ;;  %v5779_v41 = vcombine.high %v845_v35, %v849_v36  ;;  %v5778_v42 = vcombine.low %v845_v35, %v849_v36  ;;  %v5700_v9 = vcombine.low %v766_v1, %v770_v2  ;;  %v814_v36 = vld [vmem:[%s7548_s20 + $0x288] sm:$0xff] }
 0x137   : > { %v857_v40 = vld [vmem:[%s7548_s20 + $0x3e0] sm:$0xff] }
 0x138   : > { %v5787_v44 = vcombine.high %v853_v39, %v857_v40  ;;  %v5786_v45 = vcombine.low %v853_v39, %v857_v40  ;;  %v7875_v48 = vld [vmem:[#allocation2] sm:$0xff]  ;;  %v6566_v40 = vld [vmem:[%s7554_s6 + $0x10] ss:$8 sps:$4 sm:$0xff]  }
 0x139   : > { %1558 = vmatpush1.bf16.msra.mxu1 %v5722_v14  ;;  %v7903_v8 = vld [vmem:[#allocation2 + $0x20] sm:$0xff]  ;;  %v782_v14 = vld [vmem:[%s7548_s20 + $0x188] sm:$0xff] }
 0x13a   : > { %1559 = vmatprep.subr.bf16.mxu1 %v5731_v17  ;;  %v5717_v17 = vcombine.high %v782_v14, %v786_v15  ;;  %v6563_v28 = vld [vmem:[%s7554_s6] ss:$8 sps:$4 sm:$0xff]   ;;  %v6573_v57 = vld [vmem:[%s7554_s6 + $0x44] ss:$8 sps:$4 sm:$0xff]  }
 0x13b   : > { %v7925_v32 = vld [vmem:[#allocation2 + $0x40] sm:$0xff] }
 0x13c   : > { %v6575_v1 = vld [vmem:[%s7554_s6 + $0x40] ss:$8 sps:$4 sm:$0xff]  }
 0x13d   : > { %1560 = vmatpush1.bf16.msra.mxu1 %v5730_v18  ;;  %v790_v18 = vld [vmem:[%s7548_s20 + $0x1c8] sm:$0xff]  ;;  %v7953_v2 = vld [vmem:[#allocation2 + $0x60] sm:$0xff] }
 0x13e   : > { %1561 = vmatprep.subr.bf16.mxu1 %v5739_v21  ;;  %v5716_v21 = vcombine.low %v782_v14, %v786_v15  ;;  %v5725_v23 = vcombine.high %v790_v18, %v794_v19  ;;  %v5724_v27 = vcombine.low %v790_v18, %v794_v19  ;;  %v6578_v14 = vld [vmem:[%s7554_s6 + $0x50] ss:$8 sps:$4 sm:$0xff]   ;;  %v6579_v15 = vld [vmem:[%s7554_s6 + $0x64] ss:$8 sps:$4 sm:$0xff]   ;;  %v6581_v19 = vld [vmem:[%s7554_s6 + $0x60] ss:$8 sps:$4 sm:$0xff]  }
 0x13f   : > { %v858_v18 = vld [vmem:[%s7548_s20 + $0x3e8] sm:$0xff] }
 0x141   : > { %1562 = vmatpush1.bf16.msra.mxu1 %v5738_v22  ;;  %v7915_v22 = vld [vmem:[#allocation2 + $0x48] sm:$0xff] }
 0x142   : > { %1563 = vmatprep.subr.bf16.mxu1 %v5747_v25  ;;  %v802_v25 = vld [vmem:[%s7548_s20 + $0x228] sm:$0xff] }
 0x145   : > { %1564 = vmatpush1.bf16.msra.mxu1 %v5746_v26  ;;  %v6561_v26 = vld [vmem:[%s7554_s6 + $0x4] ss:$8 sps:$4 sm:$0xff]  }
 0x146   : > { %1565 = vmatprep.subr.bf16.mxu1 %v5755_v29  ;;  %v5733_v29 = vcombine.high %v798_v24, %v802_v25  ;;  %4299 = vmatprep.subr.bf16.mxu0 %v6561_v26  ;;  %v6582_v26 = vld [vmem:[%s7554_s6 + $0x74] ss:$8 sps:$4 sm:$0xff]  }
 0x147   : > { %4300 = vmatpush1.bf16.msra.mxu0 %v6563_v28  ;;  %v6584_v28 = vld [vmem:[%s7554_s6 + $0x70] ss:$8 sps:$4 sm:$0xff]  }
 0x149   : > { %1566 = vmatpush1.bf16.msra.mxu1 %v5754_v30  ;;  %v806_v30 = vld [vmem:[%s7548_s20 + $0x248] sm:$0xff] }
 0x14a   : > { %1567 = vmatprep.subr.bf16.mxu1 %v5763_v33  ;;  %v5732_v33 = vcombine.low %v798_v24, %v802_v25  ;;  %v5741_v35 = vcombine.high %v806_v30, %v810_v31  ;;  %v5740_v39 = vcombine.low %v806_v30, %v810_v31  ;;  %v7969_v24 = vld [vmem:[#allocation2 + $0x88] sm:$0xff]  ;;  %v5671_v30 = vcombine.high %v7883_v54, %v7886_v55  ;;  %v767_v54 = vld [vmem:[%s7548_s20 + $0x110] sm:$0xff] }
 0x14b   : > { %v6587_v31 = vld [vmem:[%s7554_s6 + $0x80] ss:$8 sps:$4 sm:$0xff]   ;;  %v771_v55 = vld [vmem:[%s7548_s20 + $0x130] sm:$0xff] }
 0x14d   : > { %1568 = vmatpush1.bf16.msra.mxu1 %v5762_v34  ;;  %v7927_v34 = vld [vmem:[#allocation2 + $0x58] sm:$0xff] }
 0x14e   : > { %1569 = vmatprep.subr.bf16.mxu1 %v5771_v37  ;;  %v818_v37 = vld [vmem:[%s7548_s20 + $0x2a8] sm:$0xff] }
 0x14f   : > { %v5748_v12 = vcombine.low %v814_v36, %v818_v37 }
 0x151   : > { %1570 = vmatpush1.bf16.msra.mxu1 %v5770_v38  ;;  %v6564_v38 = vld [vmem:[%s7554_s6 + $0x14] ss:$8 sps:$4 sm:$0xff]  }
 0x152   : > { %1571 = vmatprep.subr.bf16.mxu1 %v5779_v41  ;;  %v6567_v41 = vld [vmem:[%s7554_s6 + $0x24] ss:$8 sps:$4 sm:$0xff]   ;;  %4301 = vmatprep.subr.bf16.mxu0 %v6564_v38 }
 0x153   : > { %4302 = vmatpush1.bf16.msra.mxu0 %v6566_v40  ;;  %v6591_v38 = vld [vmem:[%s7554_s6 + $0xa4] ss:$8 sps:$4 sm:$0xff]   ;;  %v7989_v40 = vld [vmem:[#allocation2 + $0x90] sm:$0xff] }
 0x154   : > { %4303 = vmatprep.subr.bf16.mxu0 %v6567_v41  ;;  %v7991_v41 = vld [vmem:[#allocation2 + $0xa8] sm:$0xff] }
 0x155   : > { %1572 = vmatpush1.bf16.msra.mxu1 %v5778_v42  ;;  %v5749_v42 = vcombine.high %v814_v36, %v818_v37  ;;  %v6588_v36 = vld [vmem:[%s7554_s6 + $0x94] ss:$8 sps:$4 sm:$0xff]   ;;  %v6590_v37 = vld [vmem:[%s7554_s6 + $0x90] ss:$8 sps:$4 sm:$0xff]  }
 0x156   : > { %1573 = vmatprep.subr.bf16.mxu1 %v5787_v44  ;;  %v6569_v44 = vld [vmem:[%s7554_s6 + $0x20] ss:$8 sps:$4 sm:$0xff]  }
 0x157   : > { %4304 = vmatpush1.bf16.msra.mxu0 %v6569_v44  ;;  %v6599_v44 = vld [vmem:[%s7554_s6 + $0xc0] ss:$8 sps:$4 sm:$0xff]  }
 0x158   : > { %4305 = vmatprep.subr.bf16.mxu0 %v6570_v52  ;;  %v6603_v52 = vld [vmem:[%s7554_s6 + $0xe4] ss:$8 sps:$4 sm:$0xff]  }
 0x159   : > { %1574 = vmatpush1.bf16.msra.mxu1 %v5786_v45  ;;  %v7939_v45 = vld [vmem:[#allocation2 + $0x50] sm:$0xff] }
 0x15a   : > { %1736 = vmatprep.subr.bf16.mxu1 %v5669_v47  ;;  %v5757_v47 = vcombine.high %v822_v43, %v826_v11 }
 0x15c   : > { %1576 = vmatmul.mubr.bf16.vlgmr.msra.gmra.mrb[0].mxu1 %v7875_v48 }
 0x15d   : > { %1737 = vmatpush1.bf16.msra.mxu1 %v5668_v50  ;;  %1585 = vmatprep.mubr.bf16.mxu1 %v7877_v49  ;;  %v830_v50 = vld [vmem:[%s7548_s20 + $0x308] sm:$0xff] }
 0x15e   : > { %1738 = vmatprep.subr.bf16.mxu1 %v5677_v53  ;;  %v5756_v53 = vcombine.low %v822_v43, %v826_v11  ;;  %v5765_v58 = vcombine.high %v830_v50, %v834_v51  ;;  %v6596_v43 = vld [vmem:[%s7554_s6 + $0xb0] ss:$8 sps:$4 sm:$0xff]   ;;  %v6597_v11 = vld [vmem:[%s7554_s6 + $0xc4] ss:$8 sps:$4 sm:$0xff]  }
 0x161   : > { %1739 = vmatpush1.bf16.msra.mxu1 %v5676_v56  ;;  %v6572_v56 = vld [vmem:[%s7554_s6 + $0x30] ss:$8 sps:$4 sm:$0xff]  }
 0x162   : > { %1740 = vmatprep.subr.bf16.mxu1 %v5685_v61  ;;  %v838_v61 = vld [vmem:[%s7548_s20 + $0x348] sm:$0xff]  ;;  %4306 = vmatpush1.bf16.msra.mxu0 %v6572_v56 }
 0x163   : > { %4307 = vmatprep.subr.bf16.mxu0 %v6573_v57  ;;  %v6605_v56 = vld [vmem:[%s7554_s6 + $0xe0] ss:$8 sps:$4 sm:$0xff]  }
 0x164   : > { %1586 = vmatmul.mubr.bf16.gmra.mrb[4].mxu1 %v7893_v62  ;;  %v8011_v57 = vld [vmem:[#allocation2 + $0xc8] sm:$0xff] }
 0x165   : > { %1595 = vmatprep.mubr.bf16.mxu1 %v7895_v63  ;;  %1741 = vmatpush1.bf16.msra.mxu1 %v5684_v0  ;;  %v842_v0 = vld [vmem:[%s7548_s20 + $0x368] sm:$0xff] }
 0x166   : > { %1742 = vmatprep.subr.bf16.mxu1 %v5693_v3  ;;  %v5764_v3 = vcombine.low %v830_v50, %v834_v51  ;;  %4308 = vmatpush1.bf16.msra.mxu0 %v6575_v1  ;;  %v6600_v50 = vld [vmem:[%s7554_s6 + $0xd4] ss:$8 sps:$4 sm:$0xff]   ;;  %v6602_v51 = vld [vmem:[%s7554_s6 + $0xd0] ss:$8 sps:$4 sm:$0xff]  }
 0x167   : > { %v8019_v1 = vld [vmem:[#allocation2 + $0xd8] sm:$0xff] }
 0x169   : > { %1743 = vmatpush1.bf16.msra.mxu1 %v5692_v4  ;;  %v7955_v4 = vld [vmem:[#allocation2 + $0x78] sm:$0xff] }
 0x16a   : > { %1744 = vmatprep.subr.bf16.mxu1 %v5701_v5  ;;  %v5773_v5 = vcombine.high %v838_v61, %v842_v0 }
 0x16c   : > { %1596 = vmatmul.mubr.bf16.gmra.mrb[8].mxu1 %v7903_v8 }
 0x16d   : > { %1605 = vmatprep.mubr.bf16.mxu1 %v7905_v10  ;;  %1745 = vmatpush1.bf16.msra.mxu1 %v5700_v9  ;;  %v6576_v9 = vld [vmem:[%s7554_s6 + $0x54] ss:$8 sps:$4 sm:$0xff]  }
 0x16e   : > { %1746 = vmatprep.subr.bf16.mxu1 %v5709_v13  ;;  %v5772_v13 = vcombine.low %v838_v61, %v842_v0  ;;  %4309 = vmatprep.subr.bf16.mxu0 %v6576_v9  ;;  %v6608_v61 = vld [vmem:[%s7554_s6 + $0xf0] ss:$8 sps:$4 sm:$0xff]   ;;  %v8017_v0 = vld [vmem:[#allocation2 + $0xc0] sm:$0xff] }
 0x16f   : > { %4310 = vmatpush1.bf16.msra.mxu0 %v6578_v14  ;;  %v8032_v9 = vld [vmem:[#allocation2 + $0xf8] sm:$0xff]  ;;  %v743_v14 = vld [vmem:[%s7548_s20 + $0x50] sm:$0xff] }
 0x170   : > { %4311 = vmatprep.subr.bf16.mxu0 %v6579_v15  ;;  %v747_v15 = vld [vmem:[%s7548_s20 + $0x70] sm:$0xff] }
 0x171   : > { %1747 = vmatpush1.bf16.msra.mxu1 %v5708_v16  ;;  %v5781_v16 = vcombine.high %v846_v6, %v850_v7 }
 0x172   : > { %1748 = vmatprep.subr.bf16.mxu1 %v5717_v17  ;;  %v854_v17 = vld [vmem:[%s7548_s20 + $0x3c8] sm:$0xff] }
 0x173   : > { %v5789_v25 = vcombine.high %v854_v17, %v858_v18  ;;  %4312 = vmatpush1.bf16.msra.mxu0 %v6581_v19  ;;  %v5678_v19 = vcombine.low %v743_v14, %v747_v15 }
 0x174   : > { %1606 = vmatmul.mubr.bf16.gmra.mrb[12].mxu1 %v7913_v20  ;;  %4313 = vmatprep.subr.bf16.mxu0 %v6582_v26 }
 0x175   : > { %1615 = vmatprep.mubr.bf16.mxu1 %v7915_v22  ;;  %1749 = vmatpush1.bf16.msra.mxu1 %v5716_v21  ;;  %v7967_v21 = vld [vmem:[#allocation2 + $0x70] sm:$0xff] }
 0x176   : > { %1750 = vmatprep.subr.bf16.mxu1 %v5725_v23  ;;  %v5780_v23 = vcombine.low %v846_v6, %v850_v7  ;;  %v8026_v6 = vld [vmem:[#allocation2 + $0xe8] sm:$0xff]  ;;  %v8030_v7 = vld [vmem:[#allocation2 + $0xe0] sm:$0xff] }
 0x177   : > { %4314 = vmatpush1.bf16.msra.mxu0 %v6584_v28 }
 0x179   : > { %1751 = vmatpush1.bf16.msra.mxu1 %v5724_v27  ;;  %v5788_v27 = vcombine.low %v854_v17, %v858_v18  ;;  %v751_v17 = vld [vmem:[%s7548_s20 + $0x90] sm:$0xff] }
 0x17a   : > { %1752 = vmatprep.subr.bf16.mxu1 %v5733_v29  ;;  %v6585_v29 = vld [vmem:[%s7554_s6 + $0x84] ss:$8 sps:$4 sm:$0xff]   ;;  %v755_v18 = vld [vmem:[%s7548_s20 + $0xb0] sm:$0xff] }
 0x17b   : > { %4315 = vmatprep.subr.bf16.mxu0 %v6585_v29  ;;  %v5686_v26 = vcombine.low %v751_v17, %v755_v18  ;;  %v5703_v29 = vcombine.high %v767_v54, %v771_v55 }
 0x17c   : > { %1616 = vmatmul.mubr.bf16.gmra.mrb[16].mxu1 %v7925_v32  ;;  %4316 = vmatpush1.bf16.msra.mxu0 %v6587_v31  ;;  %v779_v31 = vld [vmem:[%s7548_s20 + $0x170] sm:$0xff] }
 0x17d   : > { %1625 = vmatprep.mubr.bf16.mxu1 %v7927_v34  ;;  %1753 = vmatpush1.bf16.msra.mxu1 %v5732_v33  ;;  %v7979_v33 = vld [vmem:[#allocation2 + $0x80] sm:$0xff] }
 0x17e   : > { %1754 = vmatprep.subr.bf16.mxu1 %v5741_v35  ;;  %v7981_v35 = vld [vmem:[#allocation2 + $0x98] sm:$0xff]  ;;  %4317 = vmatprep.subr.bf16.mxu0 %v6588_v36  ;;  %v5702_v36 = vcombine.low %v767_v54, %v771_v55  ;;  %v847_v54 = vld [vmem:[%s7548_s20 + $0x390] sm:$0xff] }
 0x17f   : > { %v851_v55 = vld [vmem:[%s7548_s20 + $0x3b0] sm:$0xff] }
 0x180   : > { %4318 = vmatpush1.bf16.msra.mxu0 %v6590_v37 }
 0x181   : > { %1755 = vmatpush1.bf16.msra.mxu1 %v5740_v39  ;;  %v6593_v39 = vld [vmem:[%s7554_s6 + $0xa0] ss:$8 sps:$4 sm:$0xff]   ;;  %4319 = vmatprep.subr.bf16.mxu0 %v6591_v38  ;;  %v783_v38 = vld [vmem:[%s7548_s20 + $0x190] sm:$0xff] }
 0x182   : > { %1756 = vmatprep.subr.bf16.mxu1 %v5749_v42  ;;  %v6594_v42 = vld [vmem:[%s7554_s6 + $0xb4] ss:$8 sps:$4 sm:$0xff]  }
 0x184   : > { %1626 = vmatmul.mubr.bf16.gmra.mrb[20].mxu1 %v7939_v45  ;;  %4320 = vmatpush1.bf16.msra.mxu0 %v6593_v39  ;;  %v787_v39 = vld [vmem:[%s7548_s20 + $0x1b0] sm:$0xff] }
 0x185   : > { %1635 = vmatprep.mubr.bf16.mxu1 %v7941_v46  ;;  %1757 = vmatpush1.bf16.msra.mxu1 %v5748_v12  ;;  %v7999_v12 = vld [vmem:[#allocation2 + $0xa0] sm:$0xff] }
 0x186   : > { %1758 = vmatprep.subr.bf16.mxu1 %v5757_v47  ;;  %4321 = vmatprep.subr.bf16.mxu0 %v6594_v42  ;;  %v8001_v47 = vld [vmem:[#allocation2 + $0xb8] sm:$0xff]  ;;  %v791_v42 = vld [vmem:[%s7548_s20 + $0x1d0] sm:$0xff] }
 0x188   : > { %4322 = vmatpush1.bf16.msra.mxu0 %v6596_v43  ;;  %v795_v43 = vld [vmem:[%s7548_s20 + $0x1f0] sm:$0xff] }
 0x189   : > { %1759 = vmatpush1.bf16.msra.mxu1 %v5756_v53  ;;  %4323 = vmatprep.subr.bf16.mxu0 %v6597_v11  ;;  %v8008_v53 = vld [vmem:[#allocation2 + $0xb0] sm:$0xff]  ;;  %v5718_v11 = vcombine.low %v783_v38, %v787_v39 }
 0x18a   : > { %1760 = vmatprep.subr.bf16.mxu1 %v5765_v58  ;;  %v6606_v58 = vld [vmem:[%s7554_s6 + $0xf4] ss:$8 sps:$4 sm:$0xff]  }
 0x18c   : > { %1636 = vmatmul.mubr.bf16.gmra.mrb[24].mxu1 %v7953_v2  ;;  %4324 = vmatpush1.bf16.msra.mxu0 %v6599_v44  ;;  %v5727_v44 = vcombine.high %v791_v42, %v795_v43 }
 0x18d   : > { %1645 = vmatprep.mubr.bf16.mxu1 %v7955_v4  ;;  %1761 = vmatpush1.bf16.msra.mxu1 %v5764_v3  ;;  %v8023_v3 = vld [vmem:[#allocation2 + $0xd0] sm:$0xff] }
 0x18e   : > { %1762 = vmatprep.subr.bf16.mxu1 %v5773_v5  ;;  %4325 = vmatprep.subr.bf16.mxu0 %v6600_v50  ;;  %v6611_v5 = vld [vmem:[%s7554_s6 + $0x104] ss:$8 sps:$4 sm:$0xff]   ;;  %v799_v50 = vld [vmem:[%s7548_s20 + $0x210] sm:$0xff] }
 0x190   : > { %4326 = vmatpush1.bf16.msra.mxu0 %v6602_v51  ;;  %v803_v51 = vld [vmem:[%s7548_s20 + $0x230] sm:$0xff] }
 0x191   : > { %1763 = vmatpush1.bf16.msra.mxu1 %v5772_v13  ;;  %4327 = vmatprep.subr.bf16.mxu0 %v6603_v52  ;;  %v8036_v13 = vld [vmem:[#allocation2 + $0xf0] sm:$0xff] }
 0x192   : > { %1764 = vmatprep.subr.bf16.mxu1 %v5781_v16  ;;  %v5679_v16 = vcombine.high %v743_v14, %v747_v15  ;;  %v807_v52 = vld [vmem:[%s7548_s20 + $0x250] sm:$0xff] }
 0x193   : > { %v819_v14 = vld [vmem:[%s7548_s20 + $0x2b0] sm:$0xff] }
 0x194   : > { %1646 = vmatmul.mubr.bf16.gmra.mrb[28].mxu1 %v7967_v21  ;;  %4328 = vmatpush1.bf16.msra.mxu0 %v6605_v56  ;;  %v811_v56 = vld [vmem:[%s7548_s20 + $0x270] sm:$0xff] }
 0x195   : > { %1655 = vmatprep.mubr.bf16.mxu1 %v7969_v24  ;;  %1765 = vmatpush1.bf16.msra.mxu1 %v5780_v23  ;;  %v759_v23 = vld [vmem:[%s7548_s20 + $0xd0] sm:$0xff] }
 0x196   : > { %1766 = vmatprep.subr.bf16.mxu1 %v5789_v25  ;;  %4329 = vmatprep.subr.bf16.mxu0 %v6606_v58  ;;  %v763_v25 = vld [vmem:[%s7548_s20 + $0xf0] sm:$0xff]  ;;  %v5734_v58 = vcombine.low %v799_v50, %v803_v51 }
 0x197   : > { %v5695_v28 = vcombine.high %v759_v23, %v763_v25  ;;  %v823_v15 = vld [vmem:[%s7548_s20 + $0x2d0] sm:$0xff] }
 0x198   : > { %4330 = vmatpush1.bf16.msra.mxu0 %v6608_v61  ;;  %v5743_v61 = vcombine.high %v807_v52, %v811_v56 }
 0x199   : > { %1767 = vmatpush1.bf16.msra.mxu1 %v5788_v27  ;;  %4492 = vmatprep.subr.bf16.mxu0 %v6611_v5  ;;  %v8052_v27 = vld [vmem:[%s7548_s20 + $0x18] sm:$0xff]  ;;  %v815_v5 = vld [vmem:[%s7548_s20 + $0x290] sm:$0xff] }
 0x19a   : > { %1929 = vmatprep.subr.bf16.mxu1 %v5671_v30  ;;  %v775_v30 = vld [vmem:[%s7548_s20 + $0x150] sm:$0xff] }
 0x19b   : > { %v5711_v37 = vcombine.high %v775_v30, %v779_v31 }
 0x19c   : > { %1656 = vmatmul.mubr.bf16.gmra.mrb[32].mxu1 %v7979_v33 }
 0x19d   : > { %1665 = vmatprep.mubr.bf16.mxu1 %v7981_v35 }
 0x1a4   : > { %1666 = vmatmul.mubr.bf16.gmra.mrb[36].mxu1 %v7989_v40 }
 0x1a5   : > { %1675 = vmatprep.mubr.bf16.mxu1 %v7991_v41 }
 0x1ac   : > { %1676 = vmatmul.mubr.bf16.gmra.mrb[40].mxu1 %v7999_v12 }
 0x1ad   : > { %1685 = vmatprep.mubr.bf16.mxu1 %v8001_v47 }
 0x1b4   : > { %1686 = vmatmul.mubr.bf16.gmra.mrb[44].mxu1 %v8008_v53 }
 0x1b5   : > { %1695 = vmatprep.mubr.bf16.mxu1 %v8011_v57 }
 0x1bc   : > { %1696 = vmatmul.mubr.bf16.gmra.mrb[48].mxu1 %v8017_v0 }
 0x1bd   : > { %1705 = vmatprep.mubr.bf16.mxu1 %v8019_v1 }
 0x1c4   : > { %1706 = vmatmul.mubr.bf16.gmra.mrb[52].mxu1 %v8023_v3 }
 0x1c5   : > { %1715 = vmatprep.mubr.bf16.mxu1 %v8026_v6 }
 0x1cc   : > { %1716 = vmatmul.mubr.bf16.gmra.mrb[56].mxu1 %v8030_v7 }
 0x1cd   : > { %1725 = vmatprep.mubr.bf16.mxu1 %v8032_v9 }
 0x1d4   : > { %1726 = vmatmul.mubr.bf16.gmra.mrb[60].mxu1 %v8036_v13 }
 0x1d5   : > { %1768 = vmatprep.mubr.bf16.mxu1 %v7846_v59  ;;  %v5687_v59 = vcombine.high %v751_v17, %v755_v18  ;;  %v5750_v17 = vcombine.low %v815_v5, %v819_v14 }
 0x1dc   : > { %1769 = vmatmul.mubr.bf16.vlgmr.msra.gmra.mrb[64].mxu1 %v7875_v48  ;;  %v8055_v48 = vld [vmem:[%s7548_s20 + $0x38] sm:$0xff] }
 0x1dd   : > { %1930 = vmatpush1.bf16.msra.mxu1 %v5670_v60  ;;  %1778 = vmatprep.mubr.bf16.mxu1 %v7877_v49  ;;  %v5672_v49 = vcombine.low %v8052_v27, %v8055_v48  ;;  %v5694_v60 = vcombine.low %v759_v23, %v763_v25  ;;  %v839_v23 = vld [vmem:[%s7548_s20 + $0x350] sm:$0xff] }
 0x1de   : > { %1931 = vmatprep.subr.bf16.mxu1 %v5679_v16  ;;  %v827_v16 = vld [vmem:[%s7548_s20 + $0x2f0] sm:$0xff] }
 0x1df   : > { %v5759_v18 = vcombine.high %v823_v15, %v827_v16  ;;  %v843_v25 = vld [vmem:[%s7548_s20 + $0x370] sm:$0xff] }
 0x1e1   : > { %1932 = vmatpush1.bf16.msra.mxu1 %v5678_v19  ;;  %v831_v19 = vld [vmem:[%s7548_s20 + $0x310] sm:$0xff] }
 0x1e2   : > { %1933 = vmatprep.subr.bf16.mxu1 %v5687_v59  ;;  %v835_v59 = vld [vmem:[%s7548_s20 + $0x330] sm:$0xff] }
 0x1e4   : > { %1779 = vmatmul.mubr.bf16.gmra.mrb[68].mxu1 %v7893_v62  ;;  %v5710_v62 = vcombine.low %v775_v30, %v779_v31  ;;  %v5782_v30 = vcombine.low %v847_v54, %v851_v55 }
 0x1e5   : > { %1788 = vmatprep.mubr.bf16.mxu1 %v7895_v63  ;;  %1934 = vmatpush1.bf16.msra.mxu1 %v5686_v26  ;;  %v5719_v63 = vcombine.high %v783_v38, %v787_v39  ;;  %v5766_v26 = vcombine.low %v831_v19, %v835_v59 }
 0x1e6   : > { %1935 = vmatprep.subr.bf16.mxu1 %v5695_v28  ;;  %v5775_v28 = vcombine.high %v839_v23, %v843_v25 }
 0x1e9   : > { %1936 = vmatpush1.bf16.msra.mxu1 %v5694_v60  ;;  %v855_v60 = vld [vmem:[%s7548_s20 + $0x3d0] sm:$0xff] }
 0x1ea   : > { %1937 = vmatprep.subr.bf16.mxu1 %v5703_v29  ;;  %v859_v29 = vld [vmem:[%s7548_s20 + $0x3f0] sm:$0xff] }
 0x1eb   : > { %v5791_v31 = vcombine.high %v855_v60, %v859_v29 }
 0x1ec   : > { %1789 = vmatmul.mubr.bf16.gmra.mrb[72].mxu1 %v7903_v8  ;;  %v5726_v8 = vcombine.low %v791_v42, %v795_v43 }
 0x1ed   : > { %1798 = vmatprep.mubr.bf16.mxu1 %v7905_v10  ;;  %1938 = vmatpush1.bf16.msra.mxu1 %v5702_v36  ;;  %v5735_v10 = vcombine.high %v799_v50, %v803_v51  ;;  %v5790_v36 = vcombine.low %v855_v60, %v859_v29 }
 0x1ee   : > { %1939 = vmatprep.subr.bf16.mxu1 %v5711_v37 }
 0x1f1   : > { %1940 = vmatpush1.bf16.msra.mxu1 %v5710_v62 }
 0x1f2   : > { %1941 = vmatprep.subr.bf16.mxu1 %v5719_v63 }
 0x1f4   : > { %1799 = vmatmul.mubr.bf16.gmra.mrb[76].mxu1 %v7913_v20  ;;  %v5742_v20 = vcombine.low %v807_v52, %v811_v56 }
 0x1f5   : > { %1808 = vmatprep.mubr.bf16.mxu1 %v7915_v22  ;;  %1942 = vmatpush1.bf16.msra.mxu1 %v5718_v11  ;;  %v5751_v22 = vcombine.high %v815_v5, %v819_v14  ;;  %v6614_v14 = vld [vmem:[%s7554_s6 + $0x114] ss:$8 sps:$4 sm:$0xff]  }
 0x1f6   : > { %1943 = vmatprep.subr.bf16.mxu1 %v5727_v44 }
 0x1f9   : > { %1944 = vmatpush1.bf16.msra.mxu1 %v5726_v8 }
 0x1fa   : > { %1945 = vmatprep.subr.bf16.mxu1 %v5735_v10 }
 0x1fc   : > { %1809 = vmatmul.mubr.bf16.gmra.mrb[80].mxu1 %v7925_v32  ;;  %v5758_v32 = vcombine.low %v823_v15, %v827_v16 }
 0x1fd   : > { %1818 = vmatprep.mubr.bf16.mxu1 %v7927_v34  ;;  %1946 = vmatpush1.bf16.msra.mxu1 %v5734_v58  ;;  %v5767_v34 = vcombine.high %v831_v19, %v835_v59  ;;  %v6609_v58 = vld [vmem:[%s7554_s6 + $0x100] ss:$8 sps:$4 sm:$0xff]   ;;  %v6617_v59 = vld [vmem:[%s7554_s6 + $0x124] ss:$8 sps:$4 sm:$0xff]  }
 0x1fe   : > { %1947 = vmatprep.subr.bf16.mxu1 %v5743_v61 }
 0x201   : > { %1948 = vmatpush1.bf16.msra.mxu1 %v5742_v20 }
 0x202   : > { %1949 = vmatprep.subr.bf16.mxu1 %v5751_v22 }
 0x204   : > { %1819 = vmatmul.mubr.bf16.gmra.mrb[84].mxu1 %v7939_v45  ;;  %v5774_v45 = vcombine.low %v839_v23, %v843_v25 }
 0x205   : > { %1828 = vmatprep.mubr.bf16.mxu1 %v7941_v46  ;;  %1950 = vmatpush1.bf16.msra.mxu1 %v5750_v17  ;;  %v5783_v46 = vcombine.high %v847_v54, %v851_v55  ;;  %v6615_v54 = vld [vmem:[%s7554_s6 + $0x120] ss:$8 sps:$4 sm:$0xff]  }
 0x206   : > { %1951 = vmatprep.subr.bf16.mxu1 %v5759_v18  ;;  %v6612_v18 = vld [vmem:[%s7554_s6 + $0x110] ss:$8 sps:$4 sm:$0xff]  }
 0x209   : > { %1952 = vmatpush1.bf16.msra.mxu1 %v5758_v32 }
 0x20a   : > { %1953 = vmatprep.subr.bf16.mxu1 %v5767_v34 }
 0x20c   : > { %1829 = vmatmul.mubr.bf16.gmra.mrb[88].mxu1 %v7953_v2  ;;  %v5673_v2 = vcombine.high %v8052_v27, %v8055_v48 }
 0x20d   : > { %1838 = vmatprep.mubr.bf16.mxu1 %v7955_v4  ;;  %1954 = vmatpush1.bf16.msra.mxu1 %v5766_v26  ;;  %v863_v4 = vlaneseq }
 0x20e   : > { %1955 = vmatprep.subr.bf16.mxu1 %v5775_v28 }
 0x20f   : > { %v8102_v37 = vshrl.u32 %v863_v4, 7 }
 0x211   : > { %1956 = vmatpush1.bf16.msra.mxu1 %v5774_v45  ;;  %v869_v38 = vsub.s32 1, %v8102_v37 }
 0x212   : > { %1957 = vmatprep.subr.bf16.mxu1 %v5783_v46 }
 0x214   : > { %1839 = vmatmul.mubr.bf16.gmra.mrb[92].mxu1 %v7967_v21  ;;  %v865_v21 = vsub.s32 0, %v8102_v37 }
 0x215   : > { %1848 = vmatprep.mubr.bf16.mxu1 %v7969_v24  ;;  %1958 = vmatpush1.bf16.msra.mxu1 %v5782_v30  ;;  %v8108_v24 = vld [vmem:[%s373_s5] sm:$0xff] }
 0x216   : > { %1959 = vmatprep.subr.bf16.mxu1 %v5791_v31 }
 0x219   : > { %1960 = vmatpush1.bf16.msra.mxu1 %v5790_v36 }
 0x21a   : > { %2122 = vmatprep.subr.bf16.mxu1 %v5673_v2  ;;  %v6618_v2 = vld [vmem:[%s7554_s6 + $0x130] ss:$8 sps:$4 sm:$0xff]  }
 0x21c   : > { %1849 = vmatmul.mubr.bf16.gmra.mrb[96].mxu1 %v7979_v33  ;;  %v8115_v33 = vrot.slane %v8108_v24, %v865_v21 }
 0x21d   : > { %1858 = vmatprep.mubr.bf16.mxu1 %v7981_v35  ;;  %v8120_v35 = vrot.slane %v8108_v24, %v869_v38 }
 0x224   : > { %1859 = vmatmul.mubr.bf16.gmra.mrb[100].mxu1 %v7989_v40 }
 0x225   : > { %1868 = vmatprep.mubr.bf16.mxu1 %v7991_v41 }
 0x22c   : > { %1869 = vmatmul.mubr.bf16.gmra.mrb[104].mxu1 %v7999_v12 }
 0x22d   : > { %1878 = vmatprep.mubr.bf16.mxu1 %v8001_v47 }
 0x22f   : > { %v1577_v40 = vpop.f32.mrb[0].mxu1 }
 0x230   : > { %v1578_v41 = vadd.f32 %v1577_v40, %v8115_v33  ;;  %v1579_v39 = vpop.f32.mrb[1].mxu1  ;;  %v6623_v40 = vld [vmem:[%s7554_s6 + $0x144] ss:$8 sps:$4 sm:$0xff]  }
 0x231   : > { %v1580_v62 = vadd.f32 %v1579_v39, %v8120_v35  ;;  %v1581_v12 = vpop.f32.mrb[2].mxu1 }
 0x232   : > { %v2315_v63 = vmax.f32 %v1578_v41, 0.0  ;;  %v1582_v42 = vadd.f32 %v1581_v12, %v8115_v33  ;;  %v1583_v43 = vpop.f32.mrb[3].mxu1 }
 0x233   : > { %v2316_v11 = vmax.f32 %v1580_v62, 0.0  ;;  %v1584_v44 = vadd.f32 %v1583_v43, %v8120_v35  ;;  %v6621_v43 = vld [vmem:[%s7554_s6 + $0x140] ss:$8 sps:$4 sm:$0xff]  }
 0x234   : > { %v2323_v50 = vmax.f32 %v1582_v42, 0.0  ;;  %1879 = vmatmul.mubr.bf16.gmra.mrb[108].mxu1 %v8008_v53 }
 0x235   : > { %v6068_v47 = vpack.c.bf16 %v2316_v11, %v2315_v63  ;;  %v2324_v51 = vmax.f32 %v1584_v44, 0.0  ;;  %1888 = vmatprep.mubr.bf16.mxu1 %v8011_v57 }
 0x236   : > { %v2571_v8 = vpack.c.bf16 %v2323_v50, %v2315_v63 }
 0x237   : > { %3339 = vst [vmem:[%s7572_s10] sm:$0xff] %v6068_v47  ;;  %v6072_v10 = vpack.c.bf16 %v2324_v51, %v2323_v50  ;;  %v1587_v52 = vpop.f32.mrb[4].mxu1  ;;  %v2572_v56 = vpack.c.bf16 %v2324_v51, %v2316_v11 }
 0x238   : > { %v1588_v61 = vadd.f32 %v1587_v52, %v8115_v33  ;;  %v1589_v5 = vpop.f32.mrb[5].mxu1 }
 0x239   : > { %3343 = vst [vmem:[%s7572_s10 + $0x20] sm:$0xff] %v6072_v10  ;;  %v1590_v20 = vadd.f32 %v1589_v5, %v8120_v35  ;;  %v1591_v53 = vpop.f32.mrb[6].mxu1  ;;  %4331 = vmatprep.mubr.bf16.mxu0 %v2572_v56  ;;  %v6624_v56 = vld [vmem:[%s7554_s6 + $0x150] ss:$8 sps:$4 sm:$0xff]  }
 0x23a   : > { %v2331_v22 = vmax.f32 %v1588_v61, 0.0  ;;  %v1592_v57 = vadd.f32 %v1591_v53, %v8115_v33  ;;  %v1593_v15 = vpop.f32.mrb[7].mxu1  ;;  %4332 = vmatmul.mubr.bf16.vlgmr.msra.gmra.mrb[0].mxu0 %v2571_v8  ;;  %v6629_v61 = vld [vmem:[%s7554_s6 + $0x164] ss:$8 sps:$4 sm:$0xff]  }
 0x23b   : > { %v2332_v16 = vmax.f32 %v1590_v20, 0.0  ;;  %v1594_v17 = vadd.f32 %v1593_v15, %v8120_v35  ;;  %4493 = vmatpush1.bf16.msra.mxu0 %v6609_v58  ;;  %v6627_v15 = vld [vmem:[%s7554_s6 + $0x160] ss:$8 sps:$4 sm:$0xff]  }
 0x23c   : > { %v2339_v19 = vmax.f32 %v1592_v57, 0.0  ;;  %1889 = vmatmul.mubr.bf16.gmra.mrb[112].mxu1 %v8017_v0  ;;  %4494 = vmatprep.subr.bf16.mxu0 %v6614_v14  ;;  %v6620_v0 = vld [vmem:[%s7554_s6 + $0x134] ss:$8 sps:$4 sm:$0xff]  }
 0x23d   : > { %v6076_v32 = vpack.c.bf16 %v2332_v16, %v2331_v22  ;;  %v2340_v34 = vmax.f32 %v1594_v17, 0.0  ;;  %1898 = vmatprep.mubr.bf16.mxu1 %v8019_v1 }
 0x23e   : > { %v2579_v23 = vpack.c.bf16 %v2339_v19, %v2331_v22 }
 0x23f   : > { %3347 = vst [vmem:[%s7572_s10 + $0x40] sm:$0xff] %v6076_v32  ;;  %v2580_v25 = vpack.c.bf16 %v2340_v34, %v2332_v16  ;;  %v6080_v26 = vpack.c.bf16 %v2340_v34, %v2339_v19  ;;  %v1597_v28 = vpop.f32.mrb[8].mxu1  ;;  %4495 = vmatpush1.bf16.msra.mxu0 %v6612_v18 }
 0x240   : > { %v1598_v55 = vadd.f32 %v1597_v28, %v8115_v33  ;;  %v1599_v45 = vpop.f32.mrb[9].mxu1  ;;  %4496 = vmatprep.subr.bf16.mxu0 %v6617_v59  ;;  %v6635_v28 = vld [vmem:[%s7554_s6 + $0x184] ss:$8 sps:$4 sm:$0xff]  }
 0x241   : > { %3351 = vst [vmem:[%s7572_s10 + $0x60] sm:$0xff] %v6080_v26  ;;  %v1600_v46 = vadd.f32 %v1599_v45, %v8120_v35  ;;  %v1601_v60 = vpop.f32.mrb[10].mxu1  ;;  %4341 = vmatprep.mubr.bf16.mxu0 %v2580_v25  ;;  %v6630_v25 = vld [vmem:[%s7554_s6 + $0x170] ss:$8 sps:$4 sm:$0xff]   ;;  %v8176_v45 = vld [vmem:[#allocation2 + $0x8] sm:$0xff] }
 0x242   : > { %v2347_v1 = vmax.f32 %v1598_v55, 0.0  ;;  %v1602_v29 = vadd.f32 %v1601_v60, %v8115_v33  ;;  %v1603_v30 = vpop.f32.mrb[11].mxu1  ;;  %4342 = vmatmul.mubr.bf16.gmra.mrb[4].mxu0 %v2579_v23 }
 0x243   : > { %v2348_v31 = vmax.f32 %v1600_v46, 0.0  ;;  %v1604_v36 = vadd.f32 %v1603_v30, %v8120_v35  ;;  %4497 = vmatpush1.bf16.msra.mxu0 %v6615_v54  ;;  %v748_v30 = vld [vmem:[%s7548_s20 + $0x78] sm:$0xff] }
 0x244   : > { %v2355_v4 = vmax.f32 %v1602_v29, 0.0  ;;  %1899 = vmatmul.mubr.bf16.gmra.mrb[116].mxu1 %v8023_v3  ;;  %4498 = vmatprep.subr.bf16.mxu0 %v6620_v0  ;;  %v6626_v3 = vld [vmem:[%s7554_s6 + $0x154] ss:$8 sps:$4 sm:$0xff]  }
 0x245   : > { %v6084_v41 = vpack.c.bf16 %v2348_v31, %v2347_v1  ;;  %v2356_v39 = vmax.f32 %v1604_v36, 0.0  ;;  %1908 = vmatprep.mubr.bf16.mxu1 %v8026_v6  ;;  %v744_v29 = vld [vmem:[%s7548_s20 + $0x58] sm:$0xff] }
 0x246   : > { %v2587_v62 = vpack.c.bf16 %v2355_v4, %v2347_v1 }
 0x247   : > { %3355 = vst [vmem:[%s7572_s10 + $0x80] sm:$0xff] %v6084_v41  ;;  %v2588_v12 = vpack.c.bf16 %v2356_v39, %v2348_v31  ;;  %v6088_v63 = vpack.c.bf16 %v2356_v39, %v2355_v4  ;;  %v1607_v42 = vpop.f32.mrb[12].mxu1  ;;  %4499 = vmatpush1.bf16.msra.mxu0 %v6618_v2  ;;  %v6633_v31 = vld [vmem:[%s7554_s6 + $0x180] ss:$8 sps:$4 sm:$0xff]   ;;  %v6638_v2 = vld [vmem:[%s7554_s6 + $0x194] ss:$8 sps:$4 sm:$0xff]  }
 0x248   : > { %v1608_v11 = vadd.f32 %v1607_v42, %v8115_v33  ;;  %v1609_v44 = vpop.f32.mrb[13].mxu1  ;;  %4500 = vmatprep.subr.bf16.mxu0 %v6623_v40 }
 0x249   : > { %3359 = vst [vmem:[%s7572_s10 + $0xa0] sm:$0xff] %v6088_v63  ;;  %v1610_v50 = vadd.f32 %v1609_v44, %v8120_v35  ;;  %v1611_v47 = vpop.f32.mrb[14].mxu1  ;;  %4351 = vmatprep.mubr.bf16.mxu0 %v2588_v12  ;;  %v5681_v12 = vcombine.high %v744_v29, %v748_v30  ;;  %v6636_v44 = vld [vmem:[%s7554_s6 + $0x190] ss:$8 sps:$4 sm:$0xff]  }
 0x24a   : > { %v2363_v6 = vmax.f32 %v1608_v11, 0.0  ;;  %v1612_v51 = vadd.f32 %v1611_v47, %v8115_v33  ;;  %v1613_v8 = vpop.f32.mrb[15].mxu1  ;;  %4352 = vmatmul.mubr.bf16.gmra.mrb[8].mxu0 %v2587_v62  ;;  %v756_v11 = vld [vmem:[%s7548_s20 + $0xb8] sm:$0xff]  ;;  %v6641_v47 = vld [vmem:[%s7554_s6 + $0x1a4] ss:$8 sps:$4 sm:$0xff]  }
 0x24b   : > { %v2364_v10 = vmax.f32 %v1610_v50, 0.0  ;;  %v1614_v52 = vadd.f32 %v1613_v8, %v8120_v35  ;;  %4501 = vmatpush1.bf16.msra.mxu0 %v6621_v43  ;;  %v752_v43 = vld [vmem:[%s7548_s20 + $0x98] sm:$0xff]  ;;  %v8192_v50 = vld [vmem:[#allocation2] sm:$0xff] }
 0x24c   : > { %v2371_v58 = vmax.f32 %v1612_v51, 0.0  ;;  %1909 = vmatmul.mubr.bf16.gmra.mrb[120].mxu1 %v8030_v7  ;;  %4502 = vmatprep.subr.bf16.mxu0 %v6626_v3  ;;  %v6632_v7 = vld [vmem:[%s7554_s6 + $0x174] ss:$8 sps:$4 sm:$0xff]  }
 0x24d   : > { %v6092_v5 = vpack.c.bf16 %v2364_v10, %v2363_v6  ;;  %v2372_v14 = vmax.f32 %v1614_v52, 0.0  ;;  %1918 = vmatprep.mubr.bf16.mxu1 %v8032_v9  ;;  %v8199_v8 = vld [vmem:[#allocation2 + $0x18] sm:$0xff] }
 0x24e   : > { %v2595_v20 = vpack.c.bf16 %v2371_v58, %v2363_v6 }
 0x24f   : > { %3363 = vst [vmem:[%s7572_s10 + $0xc0] sm:$0xff] %v6092_v5  ;;  %v2596_v53 = vpack.c.bf16 %v2372_v14, %v2364_v10  ;;  %v6096_v22 = vpack.c.bf16 %v2372_v14, %v2371_v58  ;;  %v1617_v57 = vpop.f32.mrb[16].mxu1  ;;  %4503 = vmatpush1.bf16.msra.mxu0 %v6624_v56  ;;  %v5680_v10 = vcombine.low %v744_v29, %v748_v30  ;;  %v760_v14 = vld [vmem:[%s7548_s20 + $0xd8] sm:$0xff] }
 0x250   : > { %v1618_v16 = vadd.f32 %v1617_v57, %v8115_v33  ;;  %v1619_v17 = vpop.f32.mrb[17].mxu1  ;;  %4504 = vmatprep.subr.bf16.mxu0 %v6629_v61  ;;  %v5689_v56 = vcombine.high %v752_v43, %v756_v11 }
 0x251   : > { %3367 = vst [vmem:[%s7572_s10 + $0xe0] sm:$0xff] %v6096_v22  ;;  %v1620_v18 = vadd.f32 %v1619_v17, %v8120_v35  ;;  %v1621_v19 = vpop.f32.mrb[18].mxu1  ;;  %4361 = vmatprep.mubr.bf16.mxu0 %v2596_v53  ;;  %v6639_v53 = vld [vmem:[%s7554_s6 + $0x1a0] ss:$8 sps:$4 sm:$0xff]  }
 0x252   : > { %v2379_v9 = vmax.f32 %v1618_v16, 0.0  ;;  %v1622_v59 = vadd.f32 %v1621_v19, %v8115_v33  ;;  %v1623_v32 = vpop.f32.mrb[19].mxu1  ;;  %4362 = vmatmul.mubr.bf16.gmra.mrb[12].mxu0 %v2595_v20  ;;  %v764_v20 = vld [vmem:[%s7548_s20 + $0xf8] sm:$0xff] }
 0x253   : > { %v2380_v34 = vmax.f32 %v1620_v18, 0.0  ;;  %v1624_v23 = vadd.f32 %v1623_v32, %v8120_v35  ;;  %4505 = vmatpush1.bf16.msra.mxu0 %v6627_v15  ;;  %v5688_v15 = vcombine.low %v752_v43, %v756_v11  ;;  %v5697_v18 = vcombine.high %v760_v14, %v764_v20  ;;  %v772_v32 = vld [vmem:[%s7548_s20 + $0x138] sm:$0xff] }
 0x254   : > { %v2387_v26 = vmax.f32 %v1622_v59, 0.0  ;;  %1919 = vmatmul.mubr.bf16.gmra.mrb[124].mxu1 %v8036_v13  ;;  %4506 = vmatprep.subr.bf16.mxu0 %v6632_v7  ;;  %v768_v59 = vld [vmem:[%s7548_s20 + $0x118] sm:$0xff] }
 0x255   : > { %v6100_v54 = vpack.c.bf16 %v2380_v34, %v2379_v9  ;;  %v2388_v55 = vmax.f32 %v1624_v23, 0.0  ;;  %1961 = vmatprep.mubr.bf16.mxu1 %v8176_v45 }
 0x256   : > { %v2603_v0 = vpack.c.bf16 %v2387_v26, %v2379_v9 }
 0x257   : > { %3371 = vst [vmem:[%s7572_s10 + $0x100] sm:$0xff] %v6100_v54  ;;  %v2604_v46 = vpack.c.bf16 %v2388_v55, %v2380_v34  ;;  %v6104_v60 = vpack.c.bf16 %v2388_v55, %v2387_v26  ;;  %v1627_v1 = vpop.f32.mrb[20].mxu1  ;;  %4507 = vmatpush1.bf16.msra.mxu0 %v6630_v25  ;;  %v6642_v34 = vld [vmem:[%s7554_s6 + $0x1b0] ss:$8 sps:$4 sm:$0xff]   ;;  %v6647_v26 = vld [vmem:[%s7554_s6 + $0x1c4] ss:$8 sps:$4 sm:$0xff]  }
 0x258   : > { %v1628_v13 = vadd.f32 %v1627_v1, %v8115_v33  ;;  %v1629_v36 = vpop.f32.mrb[21].mxu1  ;;  %4508 = vmatprep.subr.bf16.mxu0 %v6635_v28  ;;  %v8215_v25 = vld [vmem:[#allocation2 + $0x10] sm:$0xff]  ;;  %v8219_v55 = vld [vmem:[#allocation2 + $0x28] sm:$0xff] }
 0x259   : > { %3375 = vst [vmem:[%s7572_s10 + $0x120] sm:$0xff] %v6104_v60  ;;  %v1630_v4 = vadd.f32 %v1629_v36, %v8120_v35  ;;  %v1631_v40 = vpop.f32.mrb[22].mxu1  ;;  %4371 = vmatprep.mubr.bf16.mxu0 %v2604_v46  ;;  %v5705_v60 = vcombine.high %v768_v59, %v772_v32  ;;  %v6645_v36 = vld [vmem:[%s7554_s6 + $0x1c0] ss:$8 sps:$4 sm:$0xff]  }
 0x25a   : > { %v2395_v41 = vmax.f32 %v1628_v13, 0.0  ;;  %v1632_v39 = vadd.f32 %v1631_v40, %v8115_v33  ;;  %v1633_v62 = vpop.f32.mrb[23].mxu1  ;;  %4372 = vmatmul.mubr.bf16.gmra.mrb[16].mxu0 %v2603_v0  ;;  %v5696_v0 = vcombine.low %v760_v14, %v764_v20  ;;  %v780_v13 = vld [vmem:[%s7548_s20 + $0x178] sm:$0xff] }
 0x25b   : > { %v2396_v63 = vmax.f32 %v1630_v4, 0.0  ;;  %v1634_v42 = vadd.f32 %v1633_v62, %v8120_v35  ;;  %4509 = vmatpush1.bf16.msra.mxu0 %v6633_v31  ;;  %v776_v31 = vld [vmem:[%s7548_s20 + $0x158] sm:$0xff]  ;;  %v5704_v62 = vcombine.low %v768_v59, %v772_v32 }
 0x25c   : > { %v2403_v3 = vmax.f32 %v1632_v39, 0.0  ;;  %1962 = vmatmul.mubr.bf16.vlgmr.msra.gmra.mrb[128].mxu1 %v8192_v50  ;;  %4510 = vmatprep.subr.bf16.mxu0 %v6638_v2  ;;  %v6650_v40 = vld [vmem:[%s7554_s6 + $0x1d4] ss:$8 sps:$4 sm:$0xff]   ;;  %v5713_v43 = vcombine.high %v776_v31, %v780_v13 }
 0x25d   : > { %v6108_v6 = vpack.c.bf16 %v2396_v63, %v2395_v41  ;;  %v2404_v51 = vmax.f32 %v1634_v42, 0.0  ;;  %2123 = vmatpush1.bf16.msra.mxu1 %v5672_v49  ;;  %1971 = vmatprep.mubr.bf16.mxu1 %v8199_v8  ;;  %v6644_v49 = vld [vmem:[%s7554_s6 + $0x1b4] ss:$8 sps:$4 sm:$0xff]  }
 0x25e   : > { %v2611_v52 = vpack.c.bf16 %v2403_v3, %v2395_v41  ;;  %2124 = vmatprep.subr.bf16.mxu1 %v5681_v12 }
 0x25f   : > { %3379 = vst [vmem:[%s7572_s10 + $0x140] sm:$0xff] %v6108_v6  ;;  %v2612_v58 = vpack.c.bf16 %v2404_v51, %v2396_v63  ;;  %v6112_v61 = vpack.c.bf16 %v2404_v51, %v2403_v3  ;;  %v1637_v5 = vpop.f32.mrb[24].mxu1  ;;  %4511 = vmatpush1.bf16.msra.mxu0 %v6636_v44  ;;  %v784_v3 = vld [vmem:[%s7548_s20 + $0x198] sm:$0xff] }
 0x260   : > { %v1638_v27 = vadd.f32 %v1637_v5, %v8115_v33  ;;  %v1639_v48 = vpop.f32.mrb[25].mxu1  ;;  %4512 = vmatprep.subr.bf16.mxu0 %v6641_v47  ;;  %v788_v47 = vld [vmem:[%s7548_s20 + $0x1b8] sm:$0xff]  ;;  %v5712_v5 = vcombine.low %v776_v31, %v780_v13  ;;  %v8259_v31 = vld [vmem:[#allocation2 + $0x48] sm:$0xff] }
 0x261   : > { %3383 = vst [vmem:[%s7572_s10 + $0x160] sm:$0xff] %v6112_v61  ;;  %v1640_v22 = vadd.f32 %v1639_v48, %v8120_v35  ;;  %v1641_v57 = vpop.f32.mrb[26].mxu1  ;;  %4381 = vmatprep.mubr.bf16.mxu0 %v2612_v58  ;;  %2125 = vmatpush1.bf16.msra.mxu1 %v5680_v10  ;;  %v6648_v6 = vld [vmem:[%s7554_s6 + $0x1d0] ss:$8 sps:$4 sm:$0xff]   ;;  %v8235_v10 = vld [vmem:[#allocation2 + $0x20] sm:$0xff]  ;;  %v5721_v20 = vcombine.high %v784_v3, %v788_v47 }
 0x262   : > { %v2411_v16 = vmax.f32 %v1638_v27, 0.0  ;;  %v1642_v17 = vadd.f32 %v1641_v57, %v8115_v33  ;;  %v1643_v7 = vpop.f32.mrb[27].mxu1  ;;  %4382 = vmatmul.mubr.bf16.gmra.mrb[20].mxu0 %v2611_v52  ;;  %2126 = vmatprep.subr.bf16.mxu1 %v5689_v56  ;;  %v6653_v52 = vld [vmem:[%s7554_s6 + $0x1e4] ss:$8 sps:$4 sm:$0xff]   ;;  %v8239_v61 = vld [vmem:[#allocation2 + $0x38] sm:$0xff] }
 0x263   : > { %v2412_v19 = vmax.f32 %v1640_v22, 0.0  ;;  %v1644_v9 = vadd.f32 %v1643_v7, %v8120_v35  ;;  %4513 = vmatpush1.bf16.msra.mxu0 %v6639_v53  ;;  %v796_v22 = vld [vmem:[%s7548_s20 + $0x1f8] sm:$0xff]  ;;  %v6651_v57 = vld [vmem:[%s7554_s6 + $0x1e0] ss:$8 sps:$4 sm:$0xff]  }
 0x264   : > { %v2419_v23 = vmax.f32 %v1642_v17, 0.0  ;;  %1972 = vmatmul.mubr.bf16.gmra.mrb[132].mxu1 %v8215_v25  ;;  %4514 = vmatprep.subr.bf16.mxu0 %v6644_v49  ;;  %v792_v49 = vld [vmem:[%s7548_s20 + $0x1d8] sm:$0xff] }
 0x265   : > { %v6116_v28 = vpack.c.bf16 %v2412_v19, %v2411_v16  ;;  %v2420_v54 = vmax.f32 %v1644_v9, 0.0  ;;  %1981 = vmatprep.mubr.bf16.mxu1 %v8219_v55  ;;  %2127 = vmatpush1.bf16.msra.mxu1 %v5688_v15  ;;  %v6656_v17 = vld [vmem:[%s7554_s6 + $0x1f4] ss:$8 sps:$4 sm:$0xff]   ;;  %v5728_v13 = vcombine.low %v792_v49, %v796_v22 }
 0x266   : > { %v2619_v46 = vpack.c.bf16 %v2419_v23, %v2411_v16  ;;  %2128 = vmatprep.subr.bf16.mxu1 %v5697_v18 }
 0x267   : > { %3387 = vst [vmem:[%s7572_s10 + $0x180] sm:$0xff] %v6116_v28  ;;  %v2620_v1 = vpack.c.bf16 %v2420_v54, %v2412_v19  ;;  %v6120_v29 = vpack.c.bf16 %v2420_v54, %v2419_v23  ;;  %v1647_v30 = vpop.f32.mrb[28].mxu1  ;;  %4515 = vmatpush1.bf16.msra.mxu0 %v6642_v34  ;;  %v5720_v19 = vcombine.low %v784_v3, %v788_v47  ;;  %v800_v28 = vld [vmem:[%s7548_s20 + $0x218] sm:$0xff] }
 0x268   : > { %v1648_v2 = vadd.f32 %v1647_v30, %v8115_v33  ;;  %v1649_v4 = vpop.f32.mrb[29].mxu1  ;;  %4516 = vmatprep.subr.bf16.mxu0 %v6647_v26  ;;  %v5729_v34 = vcombine.high %v792_v49, %v796_v22  ;;  %v804_v54 = vld [vmem:[%s7548_s20 + $0x238] sm:$0xff] }
 0x269   : > { %3391 = vst [vmem:[%s7572_s10 + $0x1a0] sm:$0xff] %v6120_v29  ;;  %v1650_v41 = vadd.f32 %v1649_v4, %v8120_v35  ;;  %v1651_v39 = vpop.f32.mrb[30].mxu1  ;;  %4391 = vmatprep.mubr.bf16.mxu0 %v2620_v1  ;;  %2129 = vmatpush1.bf16.msra.mxu1 %v5696_v0  ;;  %v6654_v0 = vld [vmem:[%s7554_s6 + $0x1f0] ss:$8 sps:$4 sm:$0xff]   ;;  %v6659_v1 = vld [vmem:[%s7554_s6 + $0x204] ss:$8 sps:$4 sm:$0xff]  }
 0x26a   : > { %v2427_v12 = vmax.f32 %v1648_v2, 0.0  ;;  %v1652_v63 = vadd.f32 %v1651_v39, %v8115_v33  ;;  %v1653_v42 = vpop.f32.mrb[31].mxu1  ;;  %4392 = vmatmul.mubr.bf16.gmra.mrb[24].mxu0 %v2619_v46  ;;  %2130 = vmatprep.subr.bf16.mxu1 %v5705_v60  ;;  %v8255_v60 = vld [vmem:[#allocation2 + $0x30] sm:$0xff]  ;;  %v5737_v2 = vcombine.high %v800_v28, %v804_v54  ;;  %v808_v39 = vld [vmem:[%s7548_s20 + $0x258] sm:$0xff] }
 0x26b   : > { %v2428_v11 = vmax.f32 %v1650_v41, 0.0  ;;  %v1654_v44 = vadd.f32 %v1653_v42, %v8120_v35  ;;  %4517 = vmatpush1.bf16.msra.mxu0 %v6645_v36 }
 0x26c   : > { %v2435_v51 = vmax.f32 %v1652_v63, 0.0  ;;  %1982 = vmatmul.mubr.bf16.gmra.mrb[136].mxu1 %v8235_v10  ;;  %4518 = vmatprep.subr.bf16.mxu0 %v6650_v40 }
 0x26d   : > { %v6124_v56 = vpack.c.bf16 %v2428_v11, %v2427_v12  ;;  %v2436_v58 = vmax.f32 %v1654_v44, 0.0  ;;  %1991 = vmatprep.mubr.bf16.mxu1 %v8239_v61  ;;  %2131 = vmatpush1.bf16.msra.mxu1 %v5704_v62  ;;  %v812_v62 = vld [vmem:[%s7548_s20 + $0x278] sm:$0xff] }
 0x26e   : > { %v2627_v14 = vpack.c.bf16 %v2435_v51, %v2427_v12  ;;  %2132 = vmatprep.subr.bf16.mxu1 %v5713_v43 }
 0x26f   : > { %3395 = vst [vmem:[%s7572_s10 + $0x1c0] sm:$0xff] %v6124_v56  ;;  %v2628_v53 = vpack.c.bf16 %v2436_v58, %v2428_v11  ;;  %v6128_v27 = vpack.c.bf16 %v2436_v58, %v2435_v51  ;;  %v1657_v48 = vpop.f32.mrb[32].mxu1  ;;  %4519 = vmatpush1.bf16.msra.mxu0 %v6648_v6  ;;  %v5736_v11 = vcombine.low %v800_v28, %v804_v54  ;;  %v816_v56 = vld [vmem:[%s7548_s20 + $0x298] sm:$0xff] }
 0x270   : > { %v1658_v15 = vadd.f32 %v1657_v48, %v8115_v33  ;;  %v1659_v16 = vpop.f32.mrb[33].mxu1  ;;  %4520 = vmatprep.subr.bf16.mxu0 %v6653_v52  ;;  %v5745_v6 = vcombine.high %v808_v39, %v812_v62  ;;  %v820_v58 = vld [vmem:[%s7548_s20 + $0x2b8] sm:$0xff]  ;;  %v5744_v48 = vcombine.low %v808_v39, %v812_v62 }
 0x271   : > { %3399 = vst [vmem:[%s7572_s10 + $0x1e0] sm:$0xff] %v6128_v27  ;;  %v1660_v7 = vadd.f32 %v1659_v16, %v8120_v35  ;;  %v1661_v18 = vpop.f32.mrb[34].mxu1  ;;  %4401 = vmatprep.mubr.bf16.mxu0 %v2628_v53  ;;  %2133 = vmatpush1.bf16.msra.mxu1 %v5712_v5  ;;  %v8275_v27 = vld [vmem:[#allocation2 + $0x58] sm:$0xff]  ;;  %v5753_v22 = vcombine.high %v816_v56, %v820_v58 }
 0x272   : > { %v2443_v9 = vmax.f32 %v1658_v15, 0.0  ;;  %v1662_v59 = vadd.f32 %v1661_v18, %v8115_v33  ;;  %v1663_v32 = vpop.f32.mrb[35].mxu1  ;;  %4402 = vmatmul.mubr.bf16.gmra.mrb[28].mxu0 %v2627_v14  ;;  %2134 = vmatprep.subr.bf16.mxu1 %v5721_v20  ;;  %v8272_v14 = vld [vmem:[#allocation2 + $0x40] sm:$0xff] }
 0x273   : > { %v2444_v23 = vmax.f32 %v1660_v7, 0.0  ;;  %v1664_v26 = vadd.f32 %v1663_v32, %v8120_v35  ;;  %4521 = vmatpush1.bf16.msra.mxu0 %v6651_v57  ;;  %v828_v7 = vld [vmem:[%s7548_s20 + $0x2f8] sm:$0xff]  ;;  %v5752_v32 = vcombine.low %v816_v56, %v820_v58 }
 0x274   : > { %v2451_v46 = vmax.f32 %v1662_v59, 0.0  ;;  %1992 = vmatmul.mubr.bf16.gmra.mrb[140].mxu1 %v8255_v60  ;;  %4522 = vmatprep.subr.bf16.mxu0 %v6656_v17  ;;  %v824_v17 = vld [vmem:[%s7548_s20 + $0x2d8] sm:$0xff] }
 0x275   : > { %v6132_v29 = vpack.c.bf16 %v2444_v23, %v2443_v9  ;;  %v2452_v30 = vmax.f32 %v1664_v26, 0.0  ;;  %2001 = vmatprep.mubr.bf16.mxu1 %v8259_v31  ;;  %2135 = vmatpush1.bf16.msra.mxu1 %v5720_v19  ;;  %v5761_v28 = vcombine.high %v824_v17, %v828_v7 }
 0x276   : > { %v2635_v36 = vpack.c.bf16 %v2451_v46, %v2443_v9  ;;  %2136 = vmatprep.subr.bf16.mxu1 %v5729_v34 }
 0x277   : > { %3403 = vst [vmem:[%s7572_s10 + $0x200] sm:$0xff] %v6132_v29  ;;  %v2636_v4 = vpack.c.bf16 %v2452_v30, %v2444_v23  ;;  %v6136_v40 = vpack.c.bf16 %v2452_v30, %v2451_v46  ;;  %v1667_v41 = vpop.f32.mrb[36].mxu1  ;;  %4523 = vmatpush1.bf16.msra.mxu0 %v6654_v0  ;;  %v832_v46 = vld [vmem:[%s7548_s20 + $0x318] sm:$0xff]  ;;  %v8288_v30 = vld [vmem:[#allocation2 + $0x50] sm:$0xff] }
 0x278   : > { %v1668_v12 = vadd.f32 %v1667_v41, %v8115_v33  ;;  %v1669_v63 = vpop.f32.mrb[37].mxu1  ;;  %4685 = vmatprep.subr.bf16.mxu0 %v6659_v1  ;;  %v836_v1 = vld [vmem:[%s7548_s20 + $0x338] sm:$0xff] }
 0x279   : > { %3407 = vst [vmem:[%s7572_s10 + $0x220] sm:$0xff] %v6136_v40  ;;  %v1670_v42 = vadd.f32 %v1669_v63, %v8120_v35  ;;  %v1671_v43 = vpop.f32.mrb[38].mxu1  ;;  %4411 = vmatprep.mubr.bf16.mxu0 %v2636_v4  ;;  %2137 = vmatpush1.bf16.msra.mxu1 %v5728_v13  ;;  %v5760_v4 = vcombine.low %v824_v17, %v828_v7  ;;  %v840_v63 = vld [vmem:[%s7548_s20 + $0x358] sm:$0xff] }
 0x27a   : > { %v2459_v44 = vmax.f32 %v1668_v12, 0.0  ;;  %v1672_v3 = vadd.f32 %v1671_v43, %v8115_v33  ;;  %v1673_v47 = vpop.f32.mrb[39].mxu1  ;;  %4412 = vmatmul.mubr.bf16.gmra.mrb[32].mxu0 %v2635_v36  ;;  %2138 = vmatprep.subr.bf16.mxu1 %v5737_v2  ;;  %v8291_v2 = vld [vmem:[#allocation2 + $0x68] sm:$0xff]  ;;  %v5769_v41 = vcombine.high %v832_v46, %v836_v1 }
 0x27b   : > { %v2460_v51 = vmax.f32 %v1670_v42, 0.0  ;;  %v1674_v52 = vadd.f32 %v1673_v47, %v8120_v35  ;;  %v844_v42 = vld [vmem:[%s7548_s20 + $0x378] sm:$0xff]  ;;  %v5768_v47 = vcombine.low %v832_v46, %v836_v1 }
 0x27c   : > { %v2467_v5 = vmax.f32 %v1672_v3, 0.0  ;;  %2002 = vmatmul.mubr.bf16.gmra.mrb[144].mxu1 %v8272_v14  ;;  %v5777_v56 = vcombine.high %v840_v63, %v844_v42 }
 0x27d   : > { %v6140_v20 = vpack.c.bf16 %v2460_v51, %v2459_v44  ;;  %v2468_v53 = vmax.f32 %v1674_v52, 0.0  ;;  %2011 = vmatprep.mubr.bf16.mxu1 %v8275_v27  ;;  %2139 = vmatpush1.bf16.msra.mxu1 %v5736_v11 }
 0x27e   : > { %v2643_v49 = vpack.c.bf16 %v2467_v5, %v2459_v44  ;;  %2140 = vmatprep.subr.bf16.mxu1 %v5745_v6 }
 0x27f   : > { %3411 = vst [vmem:[%s7572_s10 + $0x240] sm:$0xff] %v6140_v20  ;;  %v2644_v57 = vpack.c.bf16 %v2468_v53, %v2460_v51  ;;  %v6144_v15 = vpack.c.bf16 %v2468_v53, %v2467_v5  ;;  %v1677_v16 = vpop.f32.mrb[40].mxu1  ;;  %v848_v20 = vld [vmem:[%s7548_s20 + $0x398] sm:$0xff] }
 0x280   : > { %v1678_v18 = vadd.f32 %v1677_v16, %v8115_v33  ;;  %v1679_v19 = vpop.f32.mrb[41].mxu1  ;;  %v852_v53 = vld [vmem:[%s7548_s20 + $0x3b8] sm:$0xff]  ;;  %v5776_v16 = vcombine.low %v840_v63, %v844_v42 }
 0x281   : > { %3415 = vst [vmem:[%s7572_s10 + $0x260] sm:$0xff] %v6144_v15  ;;  %v1680_v9 = vadd.f32 %v1679_v19, %v8120_v35  ;;  %v1681_v59 = vpop.f32.mrb[42].mxu1  ;;  %4421 = vmatprep.mubr.bf16.mxu0 %v2644_v57  ;;  %2141 = vmatpush1.bf16.msra.mxu1 %v5744_v48  ;;  %v8307_v15 = vld [vmem:[#allocation2 + $0x78] sm:$0xff]  ;;  %v5785_v7 = vcombine.high %v848_v20, %v852_v53 }
 0x282   : > { %v2475_v34 = vmax.f32 %v1678_v18, 0.0  ;;  %v1682_v23 = vadd.f32 %v1681_v59, %v8115_v33  ;;  %v1683_v26 = vpop.f32.mrb[43].mxu1  ;;  %4422 = vmatmul.mubr.bf16.gmra.mrb[36].mxu0 %v2643_v49  ;;  %2142 = vmatprep.subr.bf16.mxu1 %v5753_v22  ;;  %v8304_v49 = vld [vmem:[#allocation2 + $0x60] sm:$0xff]  ;;  %v856_v59 = vld [vmem:[%s7548_s20 + $0x3d8] sm:$0xff] }
 0x283   : > { %v2476_v54 = vmax.f32 %v1680_v9, 0.0  ;;  %v1684_v0 = vadd.f32 %v1683_v26, %v8120_v35 }
 0x284   : > { %v2483_v29 = vmax.f32 %v1682_v23, 0.0  ;;  %2012 = vmatmul.mubr.bf16.gmra.mrb[148].mxu1 %v8288_v30 }
 0x285   : > { %v6148_v13 = vpack.c.bf16 %v2476_v54, %v2475_v34  ;;  %v2484_v36 = vmax.f32 %v1684_v0, 0.0  ;;  %2021 = vmatprep.mubr.bf16.mxu1 %v8291_v2  ;;  %2143 = vmatpush1.bf16.msra.mxu1 %v5752_v32  ;;  %v860_v32 = vld [vmem:[%s7548_s20 + $0x3f8] sm:$0xff] }
 0x286   : > { %v2651_v40 = vpack.c.bf16 %v2483_v29, %v2475_v34  ;;  %2144 = vmatprep.subr.bf16.mxu1 %v5761_v28 }
 0x287   : > { %3419 = vst [vmem:[%s7572_s10 + $0x280] sm:$0xff] %v6148_v13  ;;  %v2652_v39 = vpack.c.bf16 %v2484_v36, %v2476_v54  ;;  %v6152_v62 = vpack.c.bf16 %v2484_v36, %v2483_v29  ;;  %v1687_v12 = vpop.f32.mrb[44].mxu1  ;;  %v5784_v54 = vcombine.low %v848_v20, %v852_v53  ;;  %v5793_v29 = vcombine.high %v856_v59, %v860_v32  ;;  %v8330_v53 = vld [vmem:[#allocation2 + $0x80] sm:$0xff] }
 0x288   : > { %v1688_v43 = vadd.f32 %v1687_v12, %v8115_v33  ;;  %v1689_v11 = vpop.f32.mrb[45].mxu1  ;;  %v5792_v12 = vcombine.low %v856_v59, %v860_v32 }
 0x289   : > { %3423 = vst [vmem:[%s7572_s10 + $0x2a0] sm:$0xff] %v6152_v62  ;;  %v1690_v44 = vadd.f32 %v1689_v11, %v8120_v35  ;;  %v1691_v3 = vpop.f32.mrb[46].mxu1  ;;  %4431 = vmatprep.mubr.bf16.mxu0 %v2652_v39  ;;  %2145 = vmatpush1.bf16.msra.mxu1 %v5760_v4  ;;  %v8321_v62 = vld [vmem:[#allocation2 + $0x88] sm:$0xff] }
 0x28a   : > { %v2491_v6 = vmax.f32 %v1688_v43, 0.0  ;;  %v1692_v51 = vadd.f32 %v1691_v3, %v8115_v33  ;;  %v1693_v52 = vpop.f32.mrb[47].mxu1  ;;  %4432 = vmatmul.mubr.bf16.gmra.mrb[40].mxu0 %v2651_v40  ;;  %2146 = vmatprep.subr.bf16.mxu1 %v5769_v41  ;;  %v8318_v40 = vld [vmem:[#allocation2 + $0x70] sm:$0xff] }
 0x28b   : > { %v2492_v58 = vmax.f32 %v1690_v44, 0.0  ;;  %v1694_v5 = vadd.f32 %v1693_v52, %v8120_v35 }
 0x28c   : > { %v2499_v48 = vmax.f32 %v1692_v51, 0.0  ;;  %2022 = vmatmul.mubr.bf16.gmra.mrb[152].mxu1 %v8304_v49 }
 0x28d   : > { %v6156_v22 = vpack.c.bf16 %v2492_v58, %v2491_v6  ;;  %v2500_v57 = vmax.f32 %v1694_v5, 0.0  ;;  %2031 = vmatprep.mubr.bf16.mxu1 %v8307_v15  ;;  %2147 = vmatpush1.bf16.msra.mxu1 %v5768_v47 }
 0x28e   : > { %v2659_v17 = vpack.c.bf16 %v2499_v48, %v2491_v6  ;;  %2148 = vmatprep.subr.bf16.mxu1 %v5777_v56 }
 0x28f   : > { %3427 = vst [vmem:[%s7572_s10 + $0x2c0] sm:$0xff] %v6156_v22  ;;  %v2660_v18 = vpack.c.bf16 %v2500_v57, %v2492_v58  ;;  %v6160_v19 = vpack.c.bf16 %v2500_v57, %v2499_v48  ;;  %v1697_v9 = vpop.f32.mrb[48].mxu1  ;;  %v8333_v57 = vld [vmem:[#allocation2 + $0x98] sm:$0xff] }
 0x290   : > { %v1698_v34 = vadd.f32 %v1697_v9, %v8115_v33  ;;  %v1699_v23 = vpop.f32.mrb[49].mxu1 }
 0x291   : > { %3431 = vst [vmem:[%s7572_s10 + $0x2e0] sm:$0xff] %v6160_v19  ;;  %v1700_v26 = vadd.f32 %v1699_v23, %v8120_v35  ;;  %v1701_v28 = vpop.f32.mrb[50].mxu1  ;;  %4441 = vmatprep.mubr.bf16.mxu0 %v2660_v18  ;;  %2149 = vmatpush1.bf16.msra.mxu1 %v5776_v16 }
 0x292   : > { %v2507_v0 = vmax.f32 %v1698_v34, 0.0  ;;  %v1702_v46 = vadd.f32 %v1701_v28, %v8115_v33  ;;  %v1703_v1 = vpop.f32.mrb[51].mxu1  ;;  %4442 = vmatmul.mubr.bf16.gmra.mrb[44].mxu0 %v2659_v17  ;;  %2150 = vmatprep.subr.bf16.mxu1 %v5785_v7 }
 0x293   : > { %v2508_v13 = vmax.f32 %v1700_v26, 0.0  ;;  %v1704_v36 = vadd.f32 %v1703_v1, %v8120_v35 }
 0x294   : > { %v2515_v4 = vmax.f32 %v1702_v46, 0.0  ;;  %2032 = vmatmul.mubr.bf16.gmra.mrb[156].mxu1 %v8318_v40  ;;  %v8342_v46 = vld [vmem:[#allocation2 + $0x90] sm:$0xff] }
 0x295   : > { %v6164_v41 = vpack.c.bf16 %v2508_v13, %v2507_v0  ;;  %v2516_v39 = vmax.f32 %v1704_v36, 0.0  ;;  %2041 = vmatprep.mubr.bf16.mxu1 %v8321_v62  ;;  %2151 = vmatpush1.bf16.msra.mxu1 %v5784_v54 }
 0x296   : > { %v2667_v63 = vpack.c.bf16 %v2515_v4, %v2507_v0  ;;  %2152 = vmatprep.subr.bf16.mxu1 %v5793_v29 }
 0x297   : > { %3435 = vst [vmem:[%s7572_s10 + $0x300] sm:$0xff] %v6164_v41  ;;  %v2668_v42 = vpack.c.bf16 %v2516_v39, %v2508_v13  ;;  %v6168_v43 = vpack.c.bf16 %v2516_v39, %v2515_v4  ;;  %v1707_v11 = vpop.f32.mrb[52].mxu1  ;;  %v8345_v13 = vld [vmem:[#allocation2 + $0xa8] sm:$0xff] }
 0x298   : > { %v1708_v44 = vadd.f32 %v1707_v11, %v8115_v33  ;;  %v1709_v3 = vpop.f32.mrb[53].mxu1 }
 0x299   : > { %3439 = vst [vmem:[%s7572_s10 + $0x320] sm:$0xff] %v6168_v43  ;;  %v1710_v47 = vadd.f32 %v1709_v3, %v8120_v35  ;;  %v1711_v6 = vpop.f32.mrb[54].mxu1  ;;  %4451 = vmatprep.mubr.bf16.mxu0 %v2668_v42  ;;  %2153 = vmatpush1.bf16.msra.mxu1 %v5792_v12  ;;  %v873_v42 = vsub.s32 2, %v8102_v37 }
 0x29a   : > { %v2523_v51 = vmax.f32 %v1708_v44, 0.0  ;;  %v1712_v52 = vadd.f32 %v1711_v6, %v8115_v33  ;;  %v1713_v56 = vpop.f32.mrb[55].mxu1  ;;  %4452 = vmatmul.mubr.bf16.gmra.mrb[48].mxu0 %v2667_v63  ;;  %v877_v44 = vsub.s32 3, %v8102_v37 }
 0x29b   : > { %v2524_v58 = vmax.f32 %v1710_v47, 0.0  ;;  %v1714_v5 = vadd.f32 %v1713_v56, %v8120_v35 }
 0x29c   : > { %v2531_v20 = vmax.f32 %v1712_v52, 0.0  ;;  %2042 = vmatmul.mubr.bf16.gmra.mrb[160].mxu1 %v8330_v53 }
 0x29d   : > { %v6172_v48 = vpack.c.bf16 %v2524_v58, %v2523_v51  ;;  %v2532_v22 = vmax.f32 %v1714_v5, 0.0  ;;  %2051 = vmatprep.mubr.bf16.mxu1 %v8333_v57  ;;  %v8360_v5 = vrot.slane %v8108_v24, %v873_v42 }
 0x29e   : > { %v2675_v16 = vpack.c.bf16 %v2531_v20, %v2523_v51 }
 0x29f   : > { %3443 = vst [vmem:[%s7572_s10 + $0x340] sm:$0xff] %v6172_v48  ;;  %v2676_v17 = vpack.c.bf16 %v2532_v22, %v2524_v58  ;;  %v6176_v7 = vpack.c.bf16 %v2532_v22, %v2531_v20  ;;  %v1717_v18 = vpop.f32.mrb[56].mxu1  ;;  %v8356_v58 = vld [vmem:[#allocation2 + $0xa0] sm:$0xff]  ;;  %v8363_v22 = vrot.slane %v8108_v24, %v877_v44 }
 0x2a0   : > { %v1718_v19 = vadd.f32 %v1717_v18, %v8115_v33  ;;  %v1719_v9 = vpop.f32.mrb[57].mxu1 }
 0x2a1   : > { %3447 = vst [vmem:[%s7572_s10 + $0x360] sm:$0xff] %v6176_v7  ;;  %v1720_v59 = vadd.f32 %v1719_v9, %v8120_v35  ;;  %v1721_v32 = vpop.f32.mrb[58].mxu1  ;;  %4461 = vmatprep.mubr.bf16.mxu0 %v2676_v17 }
 0x2a2   : > { %v2539_v34 = vmax.f32 %v1718_v19, 0.0  ;;  %v1722_v23 = vadd.f32 %v1721_v32, %v8115_v33  ;;  %v1723_v26 = vpop.f32.mrb[59].mxu1  ;;  %4462 = vmatmul.mubr.bf16.gmra.mrb[52].mxu0 %v2675_v16 }
 0x2a3   : > { %v2540_v28 = vmax.f32 %v1720_v59, 0.0  ;;  %v1724_v54 = vadd.f32 %v1723_v26, %v8120_v35 }
 0x2a4   : > { %v2547_v0 = vmax.f32 %v1722_v23, 0.0  ;;  %2052 = vmatmul.mubr.bf16.gmra.mrb[164].mxu1 %v8342_v46 }
 0x2a5   : > { %v6180_v1 = vpack.c.bf16 %v2540_v28, %v2539_v34  ;;  %v2548_v29 = vmax.f32 %v1724_v54, 0.0  ;;  %2061 = vmatprep.mubr.bf16.mxu1 %v8345_v13  ;;  %v8374_v54 = vld [vmem:[#allocation2 + $0xb0] sm:$0xff] }
 0x2a6   : > { %v2683_v36 = vpack.c.bf16 %v2547_v0, %v2539_v34 }
 0x2a7   : > { %3451 = vst [vmem:[%s7572_s10 + $0x380] sm:$0xff] %v6180_v1  ;;  %v2684_v4 = vpack.c.bf16 %v2548_v29, %v2540_v28  ;;  %v6184_v41 = vpack.c.bf16 %v2548_v29, %v2547_v0  ;;  %v1727_v39 = vpop.f32.mrb[60].mxu1  ;;  %v8377_v29 = vld [vmem:[#allocation2 + $0xc8] sm:$0xff] }
 0x2a8   : > { %v1728_v12 = vadd.f32 %v1727_v39, %v8115_v33  ;;  %v1729_v63 = vpop.f32.mrb[61].mxu1 }
 0x2a9   : > { %3455 = vst [vmem:[%s7572_s10 + $0x3a0] sm:$0xff] %v6184_v41  ;;  %v1730_v43 = vadd.f32 %v1729_v63, %v8120_v35  ;;  %v1731_v11 = vpop.f32.mrb[62].mxu1  ;;  %4471 = vmatprep.mubr.bf16.mxu0 %v2684_v4 }
 0x2aa   : > { %v2555_v3 = vmax.f32 %v1728_v12, 0.0  ;;  %v1732_v47 = vadd.f32 %v1731_v11, %v8115_v33  ;;  %v1733_v6 = vpop.f32.mrb[63].mxu1  ;;  %4472 = vmatmul.mubr.bf16.gmra.mrb[56].mxu0 %v2683_v36  ;;  %v8365_v33 = vld [vmem:[#allocation2 + $0xb8] sm:$0xff]  ;;  %v6657_v12 = vld [vmem:[%s7554_s6 + $0x200] ss:$8 sps:$4 sm:$0xff]  }
 0x2ab   : > { %v2556_v51 = vmax.f32 %v1730_v43, 0.0  ;;  %v1734_v52 = vadd.f32 %v1733_v6, %v8120_v35  ;;  %v6662_v43 = vld [vmem:[%s7554_s6 + $0x214] ss:$8 sps:$4 sm:$0xff]  }
 0x2ac   : > { %v2563_v56 = vmax.f32 %v1732_v47, 0.0  ;;  %2062 = vmatmul.mubr.bf16.gmra.mrb[168].mxu1 %v8356_v58 }
 0x2ad   : > { %v6188_v20 = vpack.c.bf16 %v2556_v51, %v2555_v3  ;;  %v2564_v48 = vmax.f32 %v1734_v52, 0.0  ;;  %2071 = vmatprep.mubr.bf16.mxu1 %v8365_v33 }
 0x2ae   : > { %v2691_v16 = vpack.c.bf16 %v2563_v56, %v2555_v3 }
 0x2af   : > { %3459 = vst [vmem:[%s7572_s10 + $0x3c0] sm:$0xff] %v6188_v20  ;;  %v2692_v35 = vpack.c.bf16 %v2564_v48, %v2556_v51  ;;  %v6192_v17 = vpack.c.bf16 %v2564_v48, %v2563_v56  ;;  %v1770_v7 = vpop.f32.mrb[64].mxu1  ;;  %v6660_v56 = vld [vmem:[%s7554_s6 + $0x210] ss:$8 sps:$4 sm:$0xff]   ;;  %v8389_v48 = vld [vmem:[#allocation2 + $0xc0] sm:$0xff] }
 0x2b0   : > { %v1771_v18 = vadd.f32 %v1770_v7, %v8360_v5  ;;  %v1772_v19 = vpop.f32.mrb[65].mxu1  ;;  %v8393_v7 = vld [vmem:[#allocation2 + $0xd8] sm:$0xff] }
 0x2b1   : > { %3463 = vst [vmem:[%s7572_s10 + $0x3e0] sm:$0xff] %v6192_v17  ;;  %v1773_v9 = vadd.f32 %v1772_v19, %v8363_v22  ;;  %v1774_v59 = vpop.f32.mrb[66].mxu1  ;;  %4481 = vmatprep.mubr.bf16.mxu0 %v2692_v35 }
 0x2b2   : > { %v2317_v24 = vmax.f32 %v1771_v18, 0.0  ;;  %v1775_v32 = vadd.f32 %v1774_v59, %v8360_v5  ;;  %v1776_v34 = vpop.f32.mrb[67].mxu1  ;;  %4482 = vmatmul.mubr.bf16.gmra.mrb[60].mxu0 %v2691_v16  ;;  %v6665_v16 = vld [vmem:[%s7554_s6 + $0x224] ss:$8 sps:$4 sm:$0xff]  }
 0x2b3   : > { %v2318_v23 = vmax.f32 %v1773_v9, 0.0  ;;  %v1777_v26 = vadd.f32 %v1776_v34, %v8363_v22 }
 0x2b4   : > { %v2325_v28 = vmax.f32 %v1775_v32, 0.0  ;;  %2072 = vmatmul.mubr.bf16.gmra.mrb[172].mxu1 %v8374_v54 }
 0x2b5   : > { %v6069_v0 = vpack.c.bf16 %v2318_v23, %v2317_v24  ;;  %v2326_v1 = vmax.f32 %v1777_v26, 0.0  ;;  %2081 = vmatprep.mubr.bf16.mxu1 %v8377_v29 }
 0x2b6   : > { %v2573_v36 = vpack.c.bf16 %v2325_v28, %v2317_v24  ;;  %v6663_v24 = vld [vmem:[%s7554_s6 + $0x220] ss:$8 sps:$4 sm:$0xff]  }
 0x2b7   : > { %3340 = vst [vmem:[%s7572_s10 + $0x8] sm:$0xff] %v6069_v0  ;;  %v2574_v4 = vpack.c.bf16 %v2326_v1, %v2318_v23  ;;  %v6073_v41 = vpack.c.bf16 %v2326_v1, %v2325_v28  ;;  %v1780_v39 = vpop.f32.mrb[68].mxu1  ;;  %v6668_v23 = vld [vmem:[%s7554_s6 + $0x234] ss:$8 sps:$4 sm:$0xff]  }
 0x2b8   : > { %v1781_v63 = vadd.f32 %v1780_v39, %v8360_v5  ;;  %v1782_v42 = vpop.f32.mrb[69].mxu1  ;;  %v6666_v39 = vld [vmem:[%s7554_s6 + $0x230] ss:$8 sps:$4 sm:$0xff]  }
 0x2b9   : > { %3344 = vst [vmem:[%s7572_s10 + $0x28] sm:$0xff] %v6073_v41  ;;  %v1783_v11 = vadd.f32 %v1782_v42, %v8363_v22  ;;  %v1784_v44 = vpop.f32.mrb[70].mxu1  ;;  %4524 = vmatprep.mubr.bf16.mxu0 %v2574_v4  ;;  %v6671_v42 = vld [vmem:[%s7554_s6 + $0x244] ss:$8 sps:$4 sm:$0xff]  }
 0x2ba   : > { %v2333_v3 = vmax.f32 %v1781_v63, 0.0  ;;  %v1785_v47 = vadd.f32 %v1784_v44, %v8360_v5  ;;  %v1786_v6 = vpop.f32.mrb[71].mxu1  ;;  %4525 = vmatmul.mubr.bf16.vlgmr.msra.gmra.mrb[0].mxu0 %v2573_v36  ;;  %v8405_v63 = vld [vmem:[#allocation2 + $0xd0] sm:$0xff]  ;;  %v8409_v44 = vld [vmem:[#allocation2 + $0xe8] sm:$0xff] }
 0x2bb   : > { %v2334_v51 = vmax.f32 %v1783_v11, 0.0  ;;  %v1787_v52 = vadd.f32 %v1786_v6, %v8363_v22  ;;  %4686 = vmatpush1.bf16.msra.mxu0 %v6657_v12 }
 0x2bc   : > { %v2341_v20 = vmax.f32 %v1785_v47, 0.0  ;;  %2082 = vmatmul.mubr.bf16.gmra.mrb[176].mxu1 %v8389_v48  ;;  %4687 = vmatprep.subr.bf16.mxu0 %v6662_v43 }
 0x2bd   : > { %v6077_v35 = vpack.c.bf16 %v2334_v51, %v2333_v3  ;;  %v2342_v17 = vmax.f32 %v1787_v52, 0.0  ;;  %2091 = vmatprep.mubr.bf16.mxu1 %v8393_v7  ;;  %v6669_v52 = vld [vmem:[%s7554_s6 + $0x240] ss:$8 sps:$4 sm:$0xff]  }
 0x2be   : > { %v2581_v18 = vpack.c.bf16 %v2341_v20, %v2333_v3 }
 0x2bf   : > { %3348 = vst [vmem:[%s7572_s10 + $0x48] sm:$0xff] %v6077_v35  ;;  %v2582_v19 = vpack.c.bf16 %v2342_v17, %v2334_v51  ;;  %v6081_v9 = vpack.c.bf16 %v2342_v17, %v2341_v20  ;;  %v1790_v59 = vpop.f32.mrb[72].mxu1  ;;  %4688 = vmatpush1.bf16.msra.mxu0 %v6660_v56 }
 0x2c0   : > { %v1791_v32 = vadd.f32 %v1790_v59, %v8360_v5  ;;  %v1792_v34 = vpop.f32.mrb[73].mxu1  ;;  %4689 = vmatprep.subr.bf16.mxu0 %v6665_v16  ;;  %v6674_v16 = vld [vmem:[%s7554_s6 + $0x254] ss:$8 sps:$4 sm:$0xff]  }
 0x2c1   : > { %3352 = vst [vmem:[%s7572_s10 + $0x68] sm:$0xff] %v6081_v9  ;;  %v1793_v26 = vadd.f32 %v1792_v34, %v8363_v22  ;;  %v1794_v28 = vpop.f32.mrb[74].mxu1  ;;  %4534 = vmatprep.mubr.bf16.mxu0 %v2582_v19 }
 0x2c2   : > { %v2349_v0 = vmax.f32 %v1791_v32, 0.0  ;;  %v1795_v1 = vadd.f32 %v1794_v28, %v8360_v5  ;;  %v1796_v36 = vpop.f32.mrb[75].mxu1  ;;  %4535 = vmatmul.mubr.bf16.gmra.mrb[4].mxu0 %v2581_v18  ;;  %v6672_v32 = vld [vmem:[%s7554_s6 + $0x250] ss:$8 sps:$4 sm:$0xff]  }
 0x2c3   : > { %v2350_v4 = vmax.f32 %v1793_v26, 0.0  ;;  %v1797_v41 = vadd.f32 %v1796_v36, %v8363_v22  ;;  %4690 = vmatpush1.bf16.msra.mxu0 %v6663_v24  ;;  %v6677_v26 = vld [vmem:[%s7554_s6 + $0x264] ss:$8 sps:$4 sm:$0xff]  }
 0x2c4   : > { %v2357_v12 = vmax.f32 %v1795_v1, 0.0  ;;  %2092 = vmatmul.mubr.bf16.gmra.mrb[180].mxu1 %v8405_v63  ;;  %4691 = vmatprep.subr.bf16.mxu0 %v6668_v23  ;;  %v8421_v23 = vld [vmem:[#allocation2 + $0xe0] sm:$0xff]  ;;  %v8425_v1 = vld [vmem:[#allocation2 + $0xf8] sm:$0xff] }
 0x2c5   : > { %v6085_v43 = vpack.c.bf16 %v2350_v4, %v2349_v0  ;;  %v2358_v11 = vmax.f32 %v1797_v41, 0.0  ;;  %2101 = vmatprep.mubr.bf16.mxu1 %v8409_v44 }
 0x2c6   : > { %v2589_v3 = vpack.c.bf16 %v2357_v12, %v2349_v0 }
 0x2c7   : > { %3356 = vst [vmem:[%s7572_s10 + $0x88] sm:$0xff] %v6085_v43  ;;  %v2590_v47 = vpack.c.bf16 %v2358_v11, %v2350_v4  ;;  %v6089_v6 = vpack.c.bf16 %v2358_v11, %v2357_v12  ;;  %v1800_v51 = vpop.f32.mrb[76].mxu1  ;;  %4692 = vmatpush1.bf16.msra.mxu0 %v6666_v39  ;;  %v6675_v12 = vld [vmem:[%s7554_s6 + $0x260] ss:$8 sps:$4 sm:$0xff]   ;;  %v6680_v11 = vld [vmem:[%s7554_s6 + $0x274] ss:$8 sps:$4 sm:$0xff]  }
 0x2c8   : > { %v1801_v56 = vadd.f32 %v1800_v51, %v8360_v5  ;;  %v1802_v20 = vpop.f32.mrb[77].mxu1  ;;  %4693 = vmatprep.subr.bf16.mxu0 %v6671_v42 }
 0x2c9   : > { %3360 = vst [vmem:[%s7572_s10 + $0xa8] sm:$0xff] %v6089_v6  ;;  %v1803_v35 = vadd.f32 %v1802_v20, %v8363_v22  ;;  %v1804_v17 = vpop.f32.mrb[78].mxu1  ;;  %4544 = vmatprep.mubr.bf16.mxu0 %v2590_v47 }
 0x2ca   : > { %v2365_v18 = vmax.f32 %v1801_v56, 0.0  ;;  %v1805_v19 = vadd.f32 %v1804_v17, %v8360_v5  ;;  %v1806_v9 = vpop.f32.mrb[79].mxu1  ;;  %4545 = vmatmul.mubr.bf16.gmra.mrb[8].mxu0 %v2589_v3  ;;  %v8437_v17 = vld [vmem:[#allocation2 + $0xf0] sm:$0xff] }
 0x2cb   : > { %v2366_v59 = vmax.f32 %v1803_v35, 0.0  ;;  %v1807_v24 = vadd.f32 %v1806_v9, %v8363_v22  ;;  %4694 = vmatpush1.bf16.msra.mxu0 %v6669_v52 }
 0x2cc   : > { %v2373_v34 = vmax.f32 %v1805_v19, 0.0  ;;  %2102 = vmatmul.mubr.bf16.gmra.mrb[184].mxu1 %v8421_v23  ;;  %4695 = vmatprep.subr.bf16.mxu0 %v6674_v16  ;;  %v6678_v16 = vld [vmem:[%s7554_s6 + $0x270] ss:$8 sps:$4 sm:$0xff]  }
 0x2cd   : > { %v6093_v28 = vpack.c.bf16 %v2366_v59, %v2365_v18  ;;  %v2374_v0 = vmax.f32 %v1807_v24, 0.0  ;;  %2111 = vmatprep.mubr.bf16.mxu1 %v8425_v1 }
 0x2ce   : > { %v2597_v36 = vpack.c.bf16 %v2373_v34, %v2365_v18  ;;  %v6683_v18 = vld [vmem:[%s7554_s6 + $0x284] ss:$8 sps:$4 sm:$0xff]  }
 0x2cf   : > { %3364 = vst [vmem:[%s7572_s10 + $0xc8] sm:$0xff] %v6093_v28  ;;  %v2598_v4 = vpack.c.bf16 %v2374_v0, %v2366_v59  ;;  %v6097_v41 = vpack.c.bf16 %v2374_v0, %v2373_v34  ;;  %v1810_v39 = vpop.f32.mrb[80].mxu1  ;;  %4696 = vmatpush1.bf16.msra.mxu0 %v6672_v32 }
 0x2d0   : > { %v1811_v42 = vadd.f32 %v1810_v39, %v8360_v5  ;;  %v1812_v43 = vpop.f32.mrb[81].mxu1  ;;  %4697 = vmatprep.subr.bf16.mxu0 %v6677_v26  ;;  %v6681_v26 = vld [vmem:[%s7554_s6 + $0x280] ss:$8 sps:$4 sm:$0xff]  }
 0x2d1   : > { %3368 = vst [vmem:[%s7572_s10 + $0xe8] sm:$0xff] %v6097_v41  ;;  %v1813_v3 = vadd.f32 %v1812_v43, %v8363_v22  ;;  %v1814_v47 = vpop.f32.mrb[82].mxu1  ;;  %4554 = vmatprep.mubr.bf16.mxu0 %v2598_v4 }
 0x2d2   : > { %v2381_v6 = vmax.f32 %v1811_v42, 0.0  ;;  %v1815_v51 = vadd.f32 %v1814_v47, %v8360_v5  ;;  %v1816_v52 = vpop.f32.mrb[83].mxu1  ;;  %4555 = vmatmul.mubr.bf16.gmra.mrb[12].mxu0 %v2597_v36  ;;  %v6686_v36 = vld [vmem:[%s7554_s6 + $0x294] ss:$8 sps:$4 sm:$0xff]   ;;  %v6689_v47 = vld [vmem:[%s7554_s6 + $0x2a4] ss:$8 sps:$4 sm:$0xff]  }
 0x2d3   : > { %v2382_v56 = vmax.f32 %v1813_v3, 0.0  ;;  %v1817_v20 = vadd.f32 %v1816_v52, %v8363_v22  ;;  %4698 = vmatpush1.bf16.msra.mxu0 %v6675_v12 }
 0x2d4   : > { %v2389_v35 = vmax.f32 %v1815_v51, 0.0  ;;  %2112 = vmatmul.mubr.bf16.gmra.mrb[188].mxu1 %v8437_v17  ;;  %4699 = vmatprep.subr.bf16.mxu0 %v6680_v11  ;;  %v6684_v11 = vld [vmem:[%s7554_s6 + $0x290] ss:$8 sps:$4 sm:$0xff]  }
 0x2d5   : > { %v6101_v19 = vpack.c.bf16 %v2382_v56, %v2381_v6  ;;  %v2390_v9 = vmax.f32 %v1817_v20, 0.0  ;;  %2154 = vmatprep.mubr.bf16.mxu1 %v8176_v45 }
 0x2d6   : > { %v2605_v59 = vpack.c.bf16 %v2389_v35, %v2381_v6 }
 0x2d7   : > { %3372 = vst [vmem:[%s7572_s10 + $0x108] sm:$0xff] %v6101_v19  ;;  %v2606_v24 = vpack.c.bf16 %v2390_v9, %v2382_v56  ;;  %v6105_v32 = vpack.c.bf16 %v2390_v9, %v2389_v35  ;;  %v1820_v34 = vpop.f32.mrb[84].mxu1  ;;  %4700 = vmatpush1.bf16.msra.mxu0 %v6678_v16  ;;  %v6687_v35 = vld [vmem:[%s7554_s6 + $0x2a0] ss:$8 sps:$4 sm:$0xff]  }
 0x2d8   : > { %v1821_v28 = vadd.f32 %v1820_v34, %v8360_v5  ;;  %v1822_v0 = vpop.f32.mrb[85].mxu1  ;;  %4701 = vmatprep.subr.bf16.mxu0 %v6683_v18 }
 0x2d9   : > { %3376 = vst [vmem:[%s7572_s10 + $0x128] sm:$0xff] %v6105_v32  ;;  %v1823_v4 = vadd.f32 %v1822_v0, %v8363_v22  ;;  %v1824_v41 = vpop.f32.mrb[86].mxu1  ;;  %4564 = vmatprep.mubr.bf16.mxu0 %v2606_v24 }
 0x2da   : > { %v2397_v45 = vmax.f32 %v1821_v28, 0.0  ;;  %v1825_v39 = vadd.f32 %v1824_v41, %v8360_v5  ;;  %v1826_v12 = vpop.f32.mrb[87].mxu1  ;;  %4565 = vmatmul.mubr.bf16.gmra.mrb[16].mxu0 %v2605_v59  ;;  %v6690_v28 = vld [vmem:[%s7554_s6 + $0x2b0] ss:$8 sps:$4 sm:$0xff]  }
 0x2db   : > { %v2398_v42 = vmax.f32 %v1823_v4, 0.0  ;;  %v1827_v43 = vadd.f32 %v1826_v12, %v8363_v22  ;;  %4702 = vmatpush1.bf16.msra.mxu0 %v6681_v26 }
 0x2dc   : > { %v2405_v3 = vmax.f32 %v1825_v39, 0.0  ;;  %2155 = vmatmul.mubr.bf16.vlgmr.msra.gmra.mrb[192].mxu1 %v8192_v50  ;;  %4703 = vmatprep.subr.bf16.mxu0 %v6686_v36  ;;  %v6692_v50 = vld [vmem:[%s7554_s6 + $0x2b4] ss:$8 sps:$4 sm:$0xff]   ;;  %v6695_v36 = vld [vmem:[%s7554_s6 + $0x2c4] ss:$8 sps:$4 sm:$0xff]  }
 0x2dd   : > { %v6109_v6 = vpack.c.bf16 %v2398_v42, %v2397_v45  ;;  %v2406_v51 = vmax.f32 %v1827_v43, 0.0  ;;  %2164 = vmatprep.mubr.bf16.mxu1 %v8199_v8  ;;  %v6693_v43 = vld [vmem:[%s7554_s6 + $0x2c0] ss:$8 sps:$4 sm:$0xff]  }
 0x2de   : > { %v2613_v52 = vpack.c.bf16 %v2405_v3, %v2397_v45 }
 0x2df   : > { %3380 = vst [vmem:[%s7572_s10 + $0x148] sm:$0xff] %v6109_v6  ;;  %v2614_v56 = vpack.c.bf16 %v2406_v51, %v2398_v42  ;;  %v6113_v20 = vpack.c.bf16 %v2406_v51, %v2405_v3  ;;  %v1830_v16 = vpop.f32.mrb[88].mxu1  ;;  %4704 = vmatpush1.bf16.msra.mxu0 %v6684_v11 }
 0x2e0   : > { %v1831_v18 = vadd.f32 %v1830_v16, %v8360_v5  ;;  %v1832_v19 = vpop.f32.mrb[89].mxu1  ;;  %4705 = vmatprep.subr.bf16.mxu0 %v6689_v47  ;;  %v6696_v16 = vld [vmem:[%s7554_s6 + $0x2d0] ss:$8 sps:$4 sm:$0xff]  }
 0x2e1   : > { %3384 = vst [vmem:[%s7572_s10 + $0x168] sm:$0xff] %v6113_v20  ;;  %v1833_v9 = vadd.f32 %v1832_v19, %v8363_v22  ;;  %v1834_v59 = vpop.f32.mrb[90].mxu1  ;;  %4574 = vmatprep.mubr.bf16.mxu0 %v2614_v56 }
 0x2e2   : > { %v2413_v8 = vmax.f32 %v1831_v18, 0.0  ;;  %v1835_v24 = vadd.f32 %v1834_v59, %v8360_v5  ;;  %v1836_v32 = vpop.f32.mrb[91].mxu1  ;;  %4575 = vmatmul.mubr.bf16.gmra.mrb[20].mxu0 %v2613_v52  ;;  %v6701_v18 = vld [vmem:[%s7554_s6 + $0x2e4] ss:$8 sps:$4 sm:$0xff]  }
 0x2e3   : > { %v2414_v34 = vmax.f32 %v1833_v9, 0.0  ;;  %v1837_v26 = vadd.f32 %v1836_v32, %v8363_v22  ;;  %4706 = vmatpush1.bf16.msra.mxu0 %v6687_v35  ;;  %v6699_v32 = vld [vmem:[%s7554_s6 + $0x2e0] ss:$8 sps:$4 sm:$0xff]  }
 0x2e4   : > { %v2421_v0 = vmax.f32 %v1835_v24, 0.0  ;;  %2165 = vmatmul.mubr.bf16.gmra.mrb[196].mxu1 %v8215_v25  ;;  %4707 = vmatprep.subr.bf16.mxu0 %v6692_v50  ;;  %v6698_v25 = vld [vmem:[%s7554_s6 + $0x2d4] ss:$8 sps:$4 sm:$0xff]  }
 0x2e5   : > { %v6117_v4 = vpack.c.bf16 %v2414_v34, %v2413_v8  ;;  %v2422_v41 = vmax.f32 %v1837_v26, 0.0  ;;  %2174 = vmatprep.mubr.bf16.mxu1 %v8219_v55 }
 0x2e6   : > { %v2621_v45 = vpack.c.bf16 %v2421_v0, %v2413_v8 }
 0x2e7   : > { %3388 = vst [vmem:[%s7572_s10 + $0x188] sm:$0xff] %v6117_v4  ;;  %v2622_v39 = vpack.c.bf16 %v2422_v41, %v2414_v34  ;;  %v6121_v12 = vpack.c.bf16 %v2422_v41, %v2421_v0  ;;  %v1840_v42 = vpop.f32.mrb[92].mxu1  ;;  %4708 = vmatpush1.bf16.msra.mxu0 %v6690_v28 }
 0x2e8   : > { %v1841_v11 = vadd.f32 %v1840_v42, %v8360_v5  ;;  %v1842_v3 = vpop.f32.mrb[93].mxu1  ;;  %4709 = vmatprep.subr.bf16.mxu0 %v6695_v36  ;;  %v6707_v42 = vld [vmem:[%s7554_s6 + $0x304] ss:$8 sps:$4 sm:$0xff]  }
 0x2e9   : > { %3392 = vst [vmem:[%s7572_s10 + $0x1a8] sm:$0xff] %v6121_v12  ;;  %v1843_v47 = vadd.f32 %v1842_v3, %v8363_v22  ;;  %v1844_v6 = vpop.f32.mrb[94].mxu1  ;;  %4584 = vmatprep.mubr.bf16.mxu0 %v2622_v39  ;;  %v6702_v39 = vld [vmem:[%s7554_s6 + $0x2f0] ss:$8 sps:$4 sm:$0xff]  }
 0x2ea   : > { %v2429_v55 = vmax.f32 %v1841_v11, 0.0  ;;  %v1845_v51 = vadd.f32 %v1844_v6, %v8360_v5  ;;  %v1846_v52 = vpop.f32.mrb[95].mxu1  ;;  %4585 = vmatmul.mubr.bf16.gmra.mrb[24].mxu0 %v2621_v45 }
 0x2eb   : > { %v2430_v56 = vmax.f32 %v1843_v47, 0.0  ;;  %v1847_v20 = vadd.f32 %v1846_v52, %v8363_v22  ;;  %4710 = vmatpush1.bf16.msra.mxu0 %v6693_v43 }
 0x2ec   : > { %v2437_v35 = vmax.f32 %v1845_v51, 0.0  ;;  %2175 = vmatmul.mubr.bf16.gmra.mrb[200].mxu1 %v8235_v10  ;;  %4711 = vmatprep.subr.bf16.mxu0 %v6698_v25  ;;  %v6704_v10 = vld [vmem:[%s7554_s6 + $0x2f4] ss:$8 sps:$4 sm:$0xff]  }
 0x2ed   : > { %v6125_v19 = vpack.c.bf16 %v2430_v56, %v2429_v55  ;;  %v2438_v50 = vmax.f32 %v1847_v20, 0.0  ;;  %2184 = vmatprep.mubr.bf16.mxu1 %v8239_v61 }
 0x2ee   : > { %v2629_v9 = vpack.c.bf16 %v2437_v35, %v2429_v55 }
 0x2ef   : > { %3396 = vst [vmem:[%s7572_s10 + $0x1c8] sm:$0xff] %v6125_v19  ;;  %v2630_v59 = vpack.c.bf16 %v2438_v50, %v2430_v56  ;;  %v6129_v8 = vpack.c.bf16 %v2438_v50, %v2437_v35  ;;  %v1850_v24 = vpop.f32.mrb[96].mxu1  ;;  %4712 = vmatpush1.bf16.msra.mxu0 %v6696_v16 }
 0x2f0   : > { %v1851_v34 = vadd.f32 %v1850_v24, %v8360_v5  ;;  %v1852_v26 = vpop.f32.mrb[97].mxu1  ;;  %4713 = vmatprep.subr.bf16.mxu0 %v6701_v18 }
 0x2f1   : > { %3400 = vst [vmem:[%s7572_s10 + $0x1e8] sm:$0xff] %v6129_v8  ;;  %v1853_v28 = vadd.f32 %v1852_v26, %v8363_v22  ;;  %v1854_v0 = vpop.f32.mrb[98].mxu1  ;;  %4594 = vmatprep.mubr.bf16.mxu0 %v2630_v59 }
 0x2f2   : > { %v2445_v61 = vmax.f32 %v1851_v34, 0.0  ;;  %v1855_v36 = vadd.f32 %v1854_v0, %v8360_v5  ;;  %v1856_v4 = vpop.f32.mrb[99].mxu1  ;;  %4595 = vmatmul.mubr.bf16.gmra.mrb[28].mxu0 %v2629_v9 }
 0x2f3   : > { %v2446_v41 = vmax.f32 %v1853_v28, 0.0  ;;  %v1857_v45 = vadd.f32 %v1856_v4, %v8363_v22  ;;  %4714 = vmatpush1.bf16.msra.mxu0 %v6699_v32 }
 0x2f4   : > { %v2453_v12 = vmax.f32 %v1855_v36, 0.0  ;;  %2185 = vmatmul.mubr.bf16.gmra.mrb[204].mxu1 %v8255_v60  ;;  %4715 = vmatprep.subr.bf16.mxu0 %v6704_v10 }
 0x2f5   : > { %v6133_v43 = vpack.c.bf16 %v2446_v41, %v2445_v61  ;;  %v2454_v11 = vmax.f32 %v1857_v45, 0.0  ;;  %2194 = vmatprep.mubr.bf16.mxu1 %v8259_v31 }
 0x2f6   : > { %v2637_v3 = vpack.c.bf16 %v2453_v12, %v2445_v61 }
 0x2f7   : > { %3404 = vst [vmem:[%s7572_s10 + $0x208] sm:$0xff] %v6133_v43  ;;  %v2638_v25 = vpack.c.bf16 %v2454_v11, %v2446_v41  ;;  %v6137_v47 = vpack.c.bf16 %v2454_v11, %v2453_v12  ;;  %v1860_v6 = vpop.f32.mrb[100].mxu1  ;;  %4716 = vmatpush1.bf16.msra.mxu0 %v6702_v39 }
 0x2f8   : > { %v1861_v55 = vadd.f32 %v1860_v6, %v8360_v5  ;;  %v1862_v51 = vpop.f32.mrb[101].mxu1  ;;  %4878 = vmatprep.subr.bf16.mxu0 %v6707_v42 }
 0x2f9   : > { %3408 = vst [vmem:[%s7572_s10 + $0x228] sm:$0xff] %v6137_v47  ;;  %v1863_v60 = vadd.f32 %v1862_v51, %v8363_v22  ;;  %v1864_v52 = vpop.f32.mrb[102].mxu1  ;;  %4604 = vmatprep.mubr.bf16.mxu0 %v2638_v25 }
 0x2fa   : > { %v2461_v56 = vmax.f32 %v1861_v55, 0.0  ;;  %v1865_v20 = vadd.f32 %v1864_v52, %v8360_v5  ;;  %v1866_v31 = vpop.f32.mrb[103].mxu1  ;;  %4605 = vmatmul.mubr.bf16.gmra.mrb[32].mxu0 %v2637_v3 }
 0x2fb   : > { %v2462_v16 = vmax.f32 %v1863_v60, 0.0  ;;  %v1867_v35 = vadd.f32 %v1866_v31, %v8363_v22 }
 0x2fc   : > { %v2469_v18 = vmax.f32 %v1865_v20, 0.0  ;;  %2195 = vmatmul.mubr.bf16.gmra.mrb[208].mxu1 %v8272_v14 }
 0x2fd   : > { %v6141_v19 = vpack.c.bf16 %v2462_v16, %v2461_v56  ;;  %v2470_v50 = vmax.f32 %v1867_v35, 0.0  ;;  %2204 = vmatprep.mubr.bf16.mxu1 %v8275_v27 }
 0x2fe   : > { %v2645_v9 = vpack.c.bf16 %v2469_v18, %v2461_v56 }
 0x2ff   : > { %3412 = vst [vmem:[%s7572_s10 + $0x248] sm:$0xff] %v6141_v19  ;;  %v2646_v59 = vpack.c.bf16 %v2470_v50, %v2462_v16  ;;  %v6145_v8 = vpack.c.bf16 %v2470_v50, %v2469_v18  ;;  %v1870_v24 = vpop.f32.mrb[104].mxu1 }
 0x300   : > { %v1871_v32 = vadd.f32 %v1870_v24, %v8360_v5  ;;  %v1872_v34 = vpop.f32.mrb[105].mxu1 }
 0x301   : > { %3416 = vst [vmem:[%s7572_s10 + $0x268] sm:$0xff] %v6145_v8  ;;  %v1873_v26 = vadd.f32 %v1872_v34, %v8363_v22  ;;  %v1874_v10 = vpop.f32.mrb[106].mxu1  ;;  %4614 = vmatprep.mubr.bf16.mxu0 %v2646_v59 }
 0x302   : > { %v2477_v28 = vmax.f32 %v1871_v32, 0.0  ;;  %v1875_v14 = vadd.f32 %v1874_v10, %v8360_v5  ;;  %v1876_v0 = vpop.f32.mrb[107].mxu1  ;;  %4615 = vmatmul.mubr.bf16.gmra.mrb[36].mxu0 %v2645_v9 }
 0x303   : > { %v2478_v27 = vmax.f32 %v1873_v26, 0.0  ;;  %v1877_v61 = vadd.f32 %v1876_v0, %v8363_v22 }
 0x304   : > { %v2485_v36 = vmax.f32 %v1875_v14, 0.0  ;;  %2205 = vmatmul.mubr.bf16.gmra.mrb[212].mxu1 %v8288_v30 }
 0x305   : > { %v6149_v4 = vpack.c.bf16 %v2478_v27, %v2477_v28  ;;  %v2486_v41 = vmax.f32 %v1877_v61, 0.0  ;;  %2214 = vmatprep.mubr.bf16.mxu1 %v8291_v2 }
 0x306   : > { %v2653_v45 = vpack.c.bf16 %v2485_v36, %v2477_v28 }
 0x307   : > { %3420 = vst [vmem:[%s7572_s10 + $0x288] sm:$0xff] %v6149_v4  ;;  %v2654_v39 = vpack.c.bf16 %v2486_v41, %v2478_v27  ;;  %v6153_v12 = vpack.c.bf16 %v2486_v41, %v2485_v36  ;;  %v1880_v42 = vpop.f32.mrb[108].mxu1 }
 0x308   : > { %v1881_v43 = vadd.f32 %v1880_v42, %v8360_v5  ;;  %v1882_v11 = vpop.f32.mrb[109].mxu1 }
 0x309   : > { %3424 = vst [vmem:[%s7572_s10 + $0x2a8] sm:$0xff] %v6153_v12  ;;  %v1883_v3 = vadd.f32 %v1882_v11, %v8363_v22  ;;  %v1884_v25 = vpop.f32.mrb[110].mxu1  ;;  %4624 = vmatprep.mubr.bf16.mxu0 %v2654_v39 }
 0x30a   : > { %v2493_v47 = vmax.f32 %v1881_v43, 0.0  ;;  %v1885_v30 = vadd.f32 %v1884_v25, %v8360_v5  ;;  %v1886_v6 = vpop.f32.mrb[111].mxu1  ;;  %4625 = vmatmul.mubr.bf16.gmra.mrb[40].mxu0 %v2653_v45 }
 0x30b   : > { %v2494_v2 = vmax.f32 %v1883_v3, 0.0  ;;  %v1887_v55 = vadd.f32 %v1886_v6, %v8363_v22 }
 0x30c   : > { %v2501_v51 = vmax.f32 %v1885_v30, 0.0  ;;  %2215 = vmatmul.mubr.bf16.gmra.mrb[216].mxu1 %v8304_v49 }
 0x30d   : > { %v6157_v60 = vpack.c.bf16 %v2494_v2, %v2493_v47  ;;  %v2502_v52 = vmax.f32 %v1887_v55, 0.0  ;;  %2224 = vmatprep.mubr.bf16.mxu1 %v8307_v15 }
 0x30e   : > { %v2661_v56 = vpack.c.bf16 %v2501_v51, %v2493_v47 }
 0x30f   : > { %3428 = vst [vmem:[%s7572_s10 + $0x2c8] sm:$0xff] %v6157_v60  ;;  %v2662_v20 = vpack.c.bf16 %v2502_v52, %v2494_v2  ;;  %v6161_v31 = vpack.c.bf16 %v2502_v52, %v2501_v51  ;;  %v1890_v16 = vpop.f32.mrb[112].mxu1 }
 0x310   : > { %v1891_v35 = vadd.f32 %v1890_v16, %v8360_v5  ;;  %v1892_v18 = vpop.f32.mrb[113].mxu1 }
 0x311   : > { %3432 = vst [vmem:[%s7572_s10 + $0x2e8] sm:$0xff] %v6161_v31  ;;  %v1893_v19 = vadd.f32 %v1892_v18, %v8363_v22  ;;  %v1894_v50 = vpop.f32.mrb[114].mxu1  ;;  %4634 = vmatprep.mubr.bf16.mxu0 %v2662_v20 }
 0x312   : > { %v2509_v9 = vmax.f32 %v1891_v35, 0.0  ;;  %v1895_v49 = vadd.f32 %v1894_v50, %v8360_v5  ;;  %v1896_v59 = vpop.f32.mrb[115].mxu1  ;;  %4635 = vmatmul.mubr.bf16.gmra.mrb[44].mxu0 %v2661_v56 }
 0x313   : > { %v2510_v15 = vmax.f32 %v1893_v19, 0.0  ;;  %v1897_v8 = vadd.f32 %v1896_v59, %v8363_v22 }
 0x314   : > { %v2517_v24 = vmax.f32 %v1895_v49, 0.0  ;;  %2225 = vmatmul.mubr.bf16.gmra.mrb[220].mxu1 %v8318_v40 }
 0x315   : > { %v6165_v32 = vpack.c.bf16 %v2510_v15, %v2509_v9  ;;  %v2518_v34 = vmax.f32 %v1897_v8, 0.0  ;;  %2234 = vmatprep.mubr.bf16.mxu1 %v8321_v62 }
 0x316   : > { %v2669_v26 = vpack.c.bf16 %v2517_v24, %v2509_v9  ;;  %v881_v9 = vsub.s32 4, %v8102_v37 }
 0x317   : > { %3436 = vst [vmem:[%s7572_s10 + $0x308] sm:$0xff] %v6165_v32  ;;  %v2670_v10 = vpack.c.bf16 %v2518_v34, %v2510_v15  ;;  %v6169_v28 = vpack.c.bf16 %v2518_v34, %v2517_v24  ;;  %v1900_v14 = vpop.f32.mrb[116].mxu1 }
 0x318   : > { %v1901_v0 = vadd.f32 %v1900_v14, %v8360_v5  ;;  %v1902_v27 = vpop.f32.mrb[117].mxu1 }
 0x319   : > { %3440 = vst [vmem:[%s7572_s10 + $0x328] sm:$0xff] %v6169_v28  ;;  %v1903_v61 = vadd.f32 %v1902_v27, %v8363_v22  ;;  %v1904_v36 = vpop.f32.mrb[118].mxu1  ;;  %4644 = vmatprep.mubr.bf16.mxu0 %v2670_v10 }
 0x31a   : > { %v2525_v4 = vmax.f32 %v1901_v0, 0.0  ;;  %v1905_v40 = vadd.f32 %v1904_v36, %v8360_v5  ;;  %v1906_v41 = vpop.f32.mrb[119].mxu1  ;;  %4645 = vmatmul.mubr.bf16.gmra.mrb[48].mxu0 %v2669_v26  ;;  %v8549_v26 = vld [vmem:[%s373_s5] sm:$0xff] }
 0x31b   : > { %v2526_v62 = vmax.f32 %v1903_v61, 0.0  ;;  %v1907_v45 = vadd.f32 %v1906_v41, %v8363_v22  ;;  %v8552_v10 = vrot.slane %v8549_v26, %v881_v9 }
 0x31c   : > { %v2533_v39 = vmax.f32 %v1905_v40, 0.0  ;;  %2235 = vmatmul.mubr.bf16.gmra.mrb[224].mxu1 %v8330_v53 }
 0x31d   : > { %v6173_v12 = vpack.c.bf16 %v2526_v62, %v2525_v4  ;;  %v2534_v42 = vmax.f32 %v1907_v45, 0.0  ;;  %2244 = vmatprep.mubr.bf16.mxu1 %v8333_v57 }
 0x31e   : > { %v2677_v43 = vpack.c.bf16 %v2533_v39, %v2525_v4 }
 0x31f   : > { %3444 = vst [vmem:[%s7572_s10 + $0x348] sm:$0xff] %v6173_v12  ;;  %v2678_v11 = vpack.c.bf16 %v2534_v42, %v2526_v62  ;;  %v6177_v3 = vpack.c.bf16 %v2534_v42, %v2533_v39  ;;  %v1910_v25 = vpop.f32.mrb[120].mxu1 }
 0x320   : > { %v1911_v47 = vadd.f32 %v1910_v25, %v8360_v5  ;;  %v1912_v30 = vpop.f32.mrb[121].mxu1 }
 0x321   : > { %3448 = vst [vmem:[%s7572_s10 + $0x368] sm:$0xff] %v6177_v3  ;;  %v1913_v6 = vadd.f32 %v1912_v30, %v8363_v22  ;;  %v1914_v2 = vpop.f32.mrb[122].mxu1  ;;  %4654 = vmatprep.mubr.bf16.mxu0 %v2678_v11  ;;  %v6705_v30 = vld [vmem:[%s7554_s6 + $0x300] ss:$8 sps:$4 sm:$0xff]  }
 0x322   : > { %v2541_v55 = vmax.f32 %v1911_v47, 0.0  ;;  %v1915_v53 = vadd.f32 %v1914_v2, %v8360_v5  ;;  %v1916_v51 = vpop.f32.mrb[123].mxu1  ;;  %4655 = vmatmul.mubr.bf16.gmra.mrb[52].mxu0 %v2677_v43 }
 0x323   : > { %v2542_v57 = vmax.f32 %v1913_v6, 0.0  ;;  %v1917_v60 = vadd.f32 %v1916_v51, %v8363_v22 }
 0x324   : > { %v2549_v52 = vmax.f32 %v1915_v53, 0.0  ;;  %2245 = vmatmul.mubr.bf16.gmra.mrb[228].mxu1 %v8342_v46  ;;  %v885_v46 = vsub.s32 5, %v8102_v37 }
 0x325   : > { %v6181_v56 = vpack.c.bf16 %v2542_v57, %v2541_v55  ;;  %v2550_v20 = vmax.f32 %v1917_v60, 0.0  ;;  %2254 = vmatprep.mubr.bf16.mxu1 %v8345_v13 }
 0x326   : > { %v2685_v31 = vpack.c.bf16 %v2549_v52, %v2541_v55  ;;  %v8555_v0 = vrot.slane %v8549_v26, %v885_v46  ;;  %v6710_v55 = vld [vmem:[%s7554_s6 + $0x314] ss:$8 sps:$4 sm:$0xff]  }
 0x327   : > { %3452 = vst [vmem:[%s7572_s10 + $0x388] sm:$0xff] %v6181_v56  ;;  %v2686_v16 = vpack.c.bf16 %v2550_v20, %v2542_v57  ;;  %v6185_v35 = vpack.c.bf16 %v2550_v20, %v2549_v52  ;;  %v1920_v18 = vpop.f32.mrb[124].mxu1  ;;  %v6708_v56 = vld [vmem:[%s7554_s6 + $0x310] ss:$8 sps:$4 sm:$0xff]  }
 0x328   : > { %v1921_v19 = vadd.f32 %v1920_v18, %v8360_v5  ;;  %v1922_v50 = vpop.f32.mrb[125].mxu1 }
 0x329   : > { %3456 = vst [vmem:[%s7572_s10 + $0x3a8] sm:$0xff] %v6185_v35  ;;  %v1923_v49 = vadd.f32 %v1922_v50, %v8363_v22  ;;  %v1924_v59 = vpop.f32.mrb[126].mxu1  ;;  %4664 = vmatprep.mubr.bf16.mxu0 %v2686_v16 }
 0x32a   : > { %v2557_v13 = vmax.f32 %v1921_v19, 0.0  ;;  %v1925_v15 = vadd.f32 %v1924_v59, %v8360_v5  ;;  %v1926_v8 = vpop.f32.mrb[127].mxu1  ;;  %4665 = vmatmul.mubr.bf16.gmra.mrb[56].mxu0 %v2685_v31  ;;  %v6713_v31 = vld [vmem:[%s7554_s6 + $0x324] ss:$8 sps:$4 sm:$0xff]  }
 0x32b   : > { %v2558_v24 = vmax.f32 %v1923_v49, 0.0  ;;  %v1927_v32 = vadd.f32 %v1926_v8, %v8363_v22  ;;  %v6711_v49 = vld [vmem:[%s7554_s6 + $0x320] ss:$8 sps:$4 sm:$0xff]  }
 0x32c   : > { %v2565_v34 = vmax.f32 %v1925_v15, 0.0  ;;  %2255 = vmatmul.mubr.bf16.gmra.mrb[232].mxu1 %v8356_v58 }
 0x32d   : > { %v6189_v28 = vpack.c.bf16 %v2558_v24, %v2557_v13  ;;  %v2566_v14 = vmax.f32 %v1927_v32, 0.0  ;;  %2264 = vmatprep.mubr.bf16.mxu1 %v8365_v33 }
 0x32e   : > { %v2693_v5 = vpack.c.bf16 %v2565_v34, %v2557_v13 }
 0x32f   : > { %3460 = vst [vmem:[%s7572_s10 + $0x3c8] sm:$0xff] %v6189_v28  ;;  %v2694_v22 = vpack.c.bf16 %v2566_v14, %v2558_v24  ;;  %v6193_v27 = vpack.c.bf16 %v2566_v14, %v2565_v34  ;;  %v1963_v61 = vpop.f32.mrb[128].mxu1  ;;  %v6714_v28 = vld [vmem:[%s7554_s6 + $0x330] ss:$8 sps:$4 sm:$0xff]  }
 0x330   : > { %v1964_v58 = vadd.f32 %v1963_v61, %v8552_v10  ;;  %v1965_v36 = vpop.f32.mrb[129].mxu1 }
 0x331   : > { %3464 = vst [vmem:[%s7572_s10 + $0x3e8] sm:$0xff] %v6193_v27  ;;  %v1966_v4 = vadd.f32 %v1965_v36, %v8555_v0  ;;  %v1967_v40 = vpop.f32.mrb[130].mxu1  ;;  %4674 = vmatprep.mubr.bf16.mxu0 %v2694_v22 }
 0x332   : > { %v2319_v41 = vmax.f32 %v1964_v58, 0.0  ;;  %v1968_v62 = vadd.f32 %v1967_v40, %v8552_v10  ;;  %v1969_v45 = vpop.f32.mrb[131].mxu1  ;;  %4675 = vmatmul.mubr.bf16.gmra.mrb[60].mxu0 %v2693_v5  ;;  %v6719_v5 = vld [vmem:[%s7554_s6 + $0x344] ss:$8 sps:$4 sm:$0xff]   ;;  %v6717_v40 = vld [vmem:[%s7554_s6 + $0x340] ss:$8 sps:$4 sm:$0xff]  }
 0x333   : > { %v2320_v33 = vmax.f32 %v1966_v4, 0.0  ;;  %v1970_v39 = vadd.f32 %v1969_v45, %v8555_v0 }
 0x334   : > { %v2327_v12 = vmax.f32 %v1968_v62, 0.0  ;;  %2265 = vmatmul.mubr.bf16.gmra.mrb[236].mxu1 %v8374_v54 }
 0x335   : > { %v6070_v42 = vpack.c.bf16 %v2320_v33, %v2319_v41  ;;  %v2328_v43 = vmax.f32 %v1970_v39, 0.0  ;;  %2274 = vmatprep.mubr.bf16.mxu1 %v8377_v29 }
 0x336   : > { %v2575_v11 = vpack.c.bf16 %v2327_v12, %v2319_v41 }
 0x337   : > { %3341 = vst [vmem:[%s7572_s10 + $0x10] sm:$0xff] %v6070_v42  ;;  %v2576_v3 = vpack.c.bf16 %v2328_v43, %v2320_v33  ;;  %v6074_v25 = vpack.c.bf16 %v2328_v43, %v2327_v12  ;;  %v1973_v47 = vpop.f32.mrb[132].mxu1 }
 0x338   : > { %v1974_v6 = vadd.f32 %v1973_v47, %v8552_v10  ;;  %v1975_v2 = vpop.f32.mrb[133].mxu1 }
 0x339   : > { %3345 = vst [vmem:[%s7572_s10 + $0x30] sm:$0xff] %v6074_v25  ;;  %v1976_v53 = vadd.f32 %v1975_v2, %v8555_v0  ;;  %v1977_v54 = vpop.f32.mrb[134].mxu1  ;;  %4717 = vmatprep.mubr.bf16.mxu0 %v2576_v3  ;;  %v6725_v25 = vld [vmem:[%s7554_s6 + $0x364] ss:$8 sps:$4 sm:$0xff]  }
 0x33a   : > { %v2335_v51 = vmax.f32 %v1974_v6, 0.0  ;;  %v1978_v29 = vadd.f32 %v1977_v54, %v8552_v10  ;;  %v1979_v57 = vpop.f32.mrb[135].mxu1  ;;  %4718 = vmatmul.mubr.bf16.vlgmr.msra.gmra.mrb[0].mxu0 %v2575_v11  ;;  %v6720_v11 = vld [vmem:[%s7554_s6 + $0x350] ss:$8 sps:$4 sm:$0xff]   ;;  %v6723_v54 = vld [vmem:[%s7554_s6 + $0x360] ss:$8 sps:$4 sm:$0xff]  }
 0x33b   : > { %v2336_v60 = vmax.f32 %v1976_v53, 0.0  ;;  %v1980_v52 = vadd.f32 %v1979_v57, %v8555_v0  ;;  %4879 = vmatpush1.bf16.msra.mxu0 %v6705_v30 }
 0x33c   : > { %v2343_v20 = vmax.f32 %v1978_v29, 0.0  ;;  %2275 = vmatmul.mubr.bf16.gmra.mrb[240].mxu1 %v8389_v48  ;;  %4880 = vmatprep.subr.bf16.mxu0 %v6710_v55  ;;  %v6716_v48 = vld [vmem:[%s7554_s6 + $0x334] ss:$8 sps:$4 sm:$0xff]  }
 0x33d   : > { %v6078_v16 = vpack.c.bf16 %v2336_v60, %v2335_v51  ;;  %v2344_v35 = vmax.f32 %v1980_v52, 0.0  ;;  %2284 = vmatprep.mubr.bf16.mxu1 %v8393_v7 }
 0x33e   : > { %v2583_v18 = vpack.c.bf16 %v2343_v20, %v2335_v51 }
 0x33f   : > { %3349 = vst [vmem:[%s7572_s10 + $0x50] sm:$0xff] %v6078_v16  ;;  %v2584_v19 = vpack.c.bf16 %v2344_v35, %v2336_v60  ;;  %v6082_v50 = vpack.c.bf16 %v2344_v35, %v2343_v20  ;;  %v1983_v9 = vpop.f32.mrb[136].mxu1  ;;  %4881 = vmatpush1.bf16.msra.mxu0 %v6708_v56  ;;  %v6726_v16 = vld [vmem:[%s7554_s6 + $0x370] ss:$8 sps:$4 sm:$0xff]  }
 0x340   : > { %v1984_v59 = vadd.f32 %v1983_v9, %v8552_v10  ;;  %v1985_v46 = vpop.f32.mrb[137].mxu1  ;;  %4882 = vmatprep.subr.bf16.mxu0 %v6713_v31 }
 0x341   : > { %3353 = vst [vmem:[%s7572_s10 + $0x70] sm:$0xff] %v6082_v50  ;;  %v1986_v13 = vadd.f32 %v1985_v46, %v8555_v0  ;;  %v1987_v15 = vpop.f32.mrb[138].mxu1  ;;  %4727 = vmatprep.mubr.bf16.mxu0 %v2584_v19 }
 0x342   : > { %v2351_v7 = vmax.f32 %v1984_v59, 0.0  ;;  %v1988_v8 = vadd.f32 %v1987_v15, %v8552_v10  ;;  %v1989_v24 = vpop.f32.mrb[139].mxu1  ;;  %4728 = vmatmul.mubr.bf16.gmra.mrb[4].mxu0 %v2583_v18  ;;  %v6731_v18 = vld [vmem:[%s7554_s6 + $0x384] ss:$8 sps:$4 sm:$0xff]  }
 0x343   : > { %v2352_v32 = vmax.f32 %v1986_v13, 0.0  ;;  %v1990_v34 = vadd.f32 %v1989_v24, %v8555_v0  ;;  %4883 = vmatpush1.bf16.msra.mxu0 %v6711_v49 }
 0x344   : > { %v2359_v14 = vmax.f32 %v1988_v8, 0.0  ;;  %2285 = vmatmul.mubr.bf16.gmra.mrb[244].mxu1 %v8405_v63  ;;  %4884 = vmatprep.subr.bf16.mxu0 %v6716_v48  ;;  %v6722_v63 = vld [vmem:[%s7554_s6 + $0x354] ss:$8 sps:$4 sm:$0xff]   ;;  %v6729_v48 = vld [vmem:[%s7554_s6 + $0x380] ss:$8 sps:$4 sm:$0xff]  }
 0x345   : > { %v6086_v22 = vpack.c.bf16 %v2352_v32, %v2351_v7  ;;  %v2360_v27 = vmax.f32 %v1990_v34, 0.0  ;;  %2294 = vmatprep.mubr.bf16.mxu1 %v8409_v44 }
 0x346   : > { %v2591_v61 = vpack.c.bf16 %v2359_v14, %v2351_v7  ;;  %v6734_v7 = vld [vmem:[%s7554_s6 + $0x394] ss:$8 sps:$4 sm:$0xff]  }
 0x347   : > { %3357 = vst [vmem:[%s7572_s10 + $0x90] sm:$0xff] %v6086_v22  ;;  %v2592_v58 = vpack.c.bf16 %v2360_v27, %v2352_v32  ;;  %v6090_v36 = vpack.c.bf16 %v2360_v27, %v2359_v14  ;;  %v1993_v4 = vpop.f32.mrb[140].mxu1  ;;  %4885 = vmatpush1.bf16.msra.mxu0 %v6714_v28  ;;  %v6737_v27 = vld [vmem:[%s7554_s6 + $0x3a4] ss:$8 sps:$4 sm:$0xff]  }
 0x348   : > { %v1994_v41 = vadd.f32 %v1993_v4, %v8552_v10  ;;  %v1995_v62 = vpop.f32.mrb[141].mxu1  ;;  %4886 = vmatprep.subr.bf16.mxu0 %v6719_v5  ;;  %v6732_v5 = vld [vmem:[%s7554_s6 + $0x390] ss:$8 sps:$4 sm:$0xff]  }
 0x349   : > { %3361 = vst [vmem:[%s7572_s10 + $0xb0] sm:$0xff] %v6090_v36  ;;  %v1996_v45 = vadd.f32 %v1995_v62, %v8555_v0  ;;  %v1997_v33 = vpop.f32.mrb[142].mxu1  ;;  %4737 = vmatprep.mubr.bf16.mxu0 %v2592_v58  ;;  %v6735_v62 = vld [vmem:[%s7554_s6 + $0x3a0] ss:$8 sps:$4 sm:$0xff]  }
 0x34a   : > { %v2367_v44 = vmax.f32 %v1994_v41, 0.0  ;;  %v1998_v39 = vadd.f32 %v1997_v33, %v8552_v10  ;;  %v1999_v12 = vpop.f32.mrb[143].mxu1  ;;  %4738 = vmatmul.mubr.bf16.gmra.mrb[8].mxu0 %v2591_v61  ;;  %v6740_v33 = vld [vmem:[%s7554_s6 + $0x3b4] ss:$8 sps:$4 sm:$0xff]  }
 0x34b   : > { %v2368_v42 = vmax.f32 %v1996_v45, 0.0  ;;  %v2000_v43 = vadd.f32 %v1999_v12, %v8555_v0  ;;  %4887 = vmatpush1.bf16.msra.mxu0 %v6717_v40 }
 0x34c   : > { %v2375_v3 = vmax.f32 %v1998_v39, 0.0  ;;  %2295 = vmatmul.mubr.bf16.gmra.mrb[248].mxu1 %v8421_v23  ;;  %4888 = vmatprep.subr.bf16.mxu0 %v6722_v63  ;;  %v6728_v23 = vld [vmem:[%s7554_s6 + $0x374] ss:$8 sps:$4 sm:$0xff]  }
 0x34d   : > { %v6094_v47 = vpack.c.bf16 %v2368_v42, %v2367_v44  ;;  %v2376_v30 = vmax.f32 %v2000_v43, 0.0  ;;  %2304 = vmatprep.mubr.bf16.mxu1 %v8425_v1 }
 0x34e   : > { %v2599_v6 = vpack.c.bf16 %v2375_v3, %v2367_v44 }
 0x34f   : > { %3365 = vst [vmem:[%s7572_s10 + $0xd0] sm:$0xff] %v6094_v47  ;;  %v2600_v2 = vpack.c.bf16 %v2376_v30, %v2368_v42  ;;  %v6098_v55 = vpack.c.bf16 %v2376_v30, %v2375_v3  ;;  %v2003_v53 = vpop.f32.mrb[144].mxu1  ;;  %4889 = vmatpush1.bf16.msra.mxu0 %v6720_v11  ;;  %v6743_v30 = vld [vmem:[%s7554_s6 + $0x3c4] ss:$8 sps:$4 sm:$0xff]  }
 0x350   : > { %v2004_v51 = vadd.f32 %v2003_v53, %v8552_v10  ;;  %v2005_v29 = vpop.f32.mrb[145].mxu1  ;;  %4890 = vmatprep.subr.bf16.mxu0 %v6725_v25  ;;  %v6738_v25 = vld [vmem:[%s7554_s6 + $0x3b0] ss:$8 sps:$4 sm:$0xff]  }
 0x351   : > { %3369 = vst [vmem:[%s7572_s10 + $0xf0] sm:$0xff] %v6098_v55  ;;  %v2006_v57 = vadd.f32 %v2005_v29, %v8555_v0  ;;  %v2007_v60 = vpop.f32.mrb[146].mxu1  ;;  %4747 = vmatprep.mubr.bf16.mxu0 %v2600_v2  ;;  %v6741_v29 = vld [vmem:[%s7554_s6 + $0x3c0] ss:$8 sps:$4 sm:$0xff]  }
 0x352   : > { %v2383_v1 = vmax.f32 %v2004_v51, 0.0  ;;  %v2008_v52 = vadd.f32 %v2007_v60, %v8552_v10  ;;  %v2009_v56 = vpop.f32.mrb[147].mxu1  ;;  %4748 = vmatmul.mubr.bf16.gmra.mrb[12].mxu0 %v2599_v6  ;;  %v6746_v60 = vld [vmem:[%s7554_s6 + $0x3d4] ss:$8 sps:$4 sm:$0xff]  }
 0x353   : > { %v2384_v20 = vmax.f32 %v2006_v57, 0.0  ;;  %v2010_v31 = vadd.f32 %v2009_v56, %v8555_v0  ;;  %4891 = vmatpush1.bf16.msra.mxu0 %v6723_v54 }
 0x354   : > { %v2391_v35 = vmax.f32 %v2008_v52, 0.0  ;;  %2305 = vmatmul.mubr.bf16.gmra.mrb[252].mxu1 %v8437_v17  ;;  %4892 = vmatprep.subr.bf16.mxu0 %v6728_v23 }
 0x355   : > { %v6102_v19 = vpack.c.bf16 %v2384_v20, %v2383_v1  ;;  %v2392_v50 = vmax.f32 %v2010_v31, 0.0 }
 0x356   : > { %v2607_v9 = vpack.c.bf16 %v2391_v35, %v2383_v1 }
 0x357   : > { %3373 = vst [vmem:[%s7572_s10 + $0x110] sm:$0xff] %v6102_v19  ;;  %v2608_v49 = vpack.c.bf16 %v2392_v50, %v2384_v20  ;;  %v6106_v59 = vpack.c.bf16 %v2392_v50, %v2391_v35  ;;  %v2013_v46 = vpop.f32.mrb[148].mxu1  ;;  %4893 = vmatpush1.bf16.msra.mxu0 %v6726_v16  ;;  %v6749_v50 = vld [vmem:[%s7554_s6 + $0x3e4] ss:$8 sps:$4 sm:$0xff]  }
 0x358   : > { %v2014_v13 = vadd.f32 %v2013_v46, %v8552_v10  ;;  %v2015_v15 = vpop.f32.mrb[149].mxu1  ;;  %4894 = vmatprep.subr.bf16.mxu0 %v6731_v18  ;;  %v6744_v18 = vld [vmem:[%s7554_s6 + $0x3d0] ss:$8 sps:$4 sm:$0xff]  }
 0x359   : > { %3377 = vst [vmem:[%s7572_s10 + $0x130] sm:$0xff] %v6106_v59  ;;  %v2016_v17 = vadd.f32 %v2015_v15, %v8555_v0  ;;  %v2017_v8 = vpop.f32.mrb[150].mxu1  ;;  %4757 = vmatprep.mubr.bf16.mxu0 %v2608_v49  ;;  %v6747_v15 = vld [vmem:[%s7554_s6 + $0x3e0] ss:$8 sps:$4 sm:$0xff]  }
 0x35a   : > { %v2399_v24 = vmax.f32 %v2014_v13, 0.0  ;;  %v2018_v32 = vadd.f32 %v2017_v8, %v8552_v10  ;;  %v2019_v34 = vpop.f32.mrb[151].mxu1  ;;  %4758 = vmatmul.mubr.bf16.gmra.mrb[16].mxu0 %v2607_v9  ;;  %v6752_v8 = vld [vmem:[%s7554_s6 + $0x3f4] ss:$8 sps:$4 sm:$0xff]  }
 0x35b   : > { %v2400_v28 = vmax.f32 %v2016_v17, 0.0  ;;  %v2020_v14 = vadd.f32 %v2019_v34, %v8555_v0  ;;  %4895 = vmatpush1.bf16.msra.mxu0 %v6729_v48 }
 0x35c   : > { %v2407_v22 = vmax.f32 %v2018_v32, 0.0  ;;  %4896 = vmatprep.subr.bf16.mxu0 %v6734_v7 }
 0x35d   : > { %v6110_v61 = vpack.c.bf16 %v2400_v28, %v2399_v24  ;;  %v2408_v58 = vmax.f32 %v2020_v14, 0.0 }
 0x35e   : > { %v2615_v36 = vpack.c.bf16 %v2407_v22, %v2399_v24 }
 0x35f   : > { %3381 = vst [vmem:[%s7572_s10 + $0x150] sm:$0xff] %v6110_v61  ;;  %v2616_v4 = vpack.c.bf16 %v2408_v58, %v2400_v28  ;;  %v6114_v40 = vpack.c.bf16 %v2408_v58, %v2407_v22  ;;  %v2023_v41 = vpop.f32.mrb[152].mxu1  ;;  %4897 = vmatpush1.bf16.msra.mxu0 %v6732_v5 }
 0x360   : > { %v2024_v63 = vadd.f32 %v2023_v41, %v8552_v10  ;;  %v2025_v45 = vpop.f32.mrb[153].mxu1  ;;  %4898 = vmatprep.subr.bf16.mxu0 %v6737_v27  ;;  %v6750_v27 = vld [vmem:[%s7554_s6 + $0x3f0] ss:$8 sps:$4 sm:$0xff]  }
 0x361   : > { %3385 = vst [vmem:[%s7572_s10 + $0x170] sm:$0xff] %v6114_v40  ;;  %v2026_v44 = vadd.f32 %v2025_v45, %v8555_v0  ;;  %v2027_v39 = vpop.f32.mrb[154].mxu1  ;;  %4767 = vmatprep.mubr.bf16.mxu0 %v2616_v4 }
 0x362   : > { %v2415_v12 = vmax.f32 %v2024_v63, 0.0  ;;  %v2028_v42 = vadd.f32 %v2027_v39, %v8552_v10  ;;  %v2029_v43 = vpop.f32.mrb[155].mxu1  ;;  %4768 = vmatmul.mubr.bf16.gmra.mrb[20].mxu0 %v2615_v36 }
 0x363   : > { %v2416_v11 = vmax.f32 %v2026_v44, 0.0  ;;  %v2030_v3 = vadd.f32 %v2029_v43, %v8555_v0  ;;  %4899 = vmatpush1.bf16.msra.mxu0 %v6735_v62 }
 0x364   : > { %v2423_v47 = vmax.f32 %v2028_v42, 0.0  ;;  %4900 = vmatprep.subr.bf16.mxu0 %v6740_v33 }
 0x365   : > { %v6118_v6 = vpack.c.bf16 %v2416_v11, %v2415_v12  ;;  %v2424_v2 = vmax.f32 %v2030_v3, 0.0 }
 0x366   : > { %v2623_v55 = vpack.c.bf16 %v2423_v47, %v2415_v12 }
 0x367   : > { %3389 = vst [vmem:[%s7572_s10 + $0x190] sm:$0xff] %v6118_v6  ;;  %v2624_v53 = vpack.c.bf16 %v2424_v2, %v2416_v11  ;;  %v6122_v54 = vpack.c.bf16 %v2424_v2, %v2423_v47  ;;  %v2033_v51 = vpop.f32.mrb[156].mxu1  ;;  %4901 = vmatpush1.bf16.msra.mxu0 %v6738_v25 }
 0x368   : > { %v2034_v23 = vadd.f32 %v2033_v51, %v8552_v10  ;;  %v2035_v57 = vpop.f32.mrb[157].mxu1  ;;  %4902 = vmatprep.subr.bf16.mxu0 %v6743_v30 }
 0x369   : > { %3393 = vst [vmem:[%s7572_s10 + $0x1b0] sm:$0xff] %v6122_v54  ;;  %v2036_v1 = vadd.f32 %v2035_v57, %v8555_v0  ;;  %v2037_v52 = vpop.f32.mrb[158].mxu1  ;;  %4777 = vmatprep.mubr.bf16.mxu0 %v2624_v53 }
 0x36a   : > { %v2431_v56 = vmax.f32 %v2034_v23, 0.0  ;;  %v2038_v20 = vadd.f32 %v2037_v52, %v8552_v10  ;;  %v2039_v31 = vpop.f32.mrb[159].mxu1  ;;  %4778 = vmatmul.mubr.bf16.gmra.mrb[24].mxu0 %v2623_v55 }
 0x36b   : > { %v2432_v16 = vmax.f32 %v2036_v1, 0.0  ;;  %v2040_v35 = vadd.f32 %v2039_v31, %v8555_v0  ;;  %4903 = vmatpush1.bf16.msra.mxu0 %v6741_v29 }
 0x36c   : > { %v2439_v19 = vmax.f32 %v2038_v20, 0.0  ;;  %4904 = vmatprep.subr.bf16.mxu0 %v6746_v60 }
 0x36d   : > { %v6126_v9 = vpack.c.bf16 %v2432_v16, %v2431_v56  ;;  %v2440_v49 = vmax.f32 %v2040_v35, 0.0 }
 0x36e   : > { %v2631_v59 = vpack.c.bf16 %v2439_v19, %v2431_v56 }
 0x36f   : > { %3397 = vst [vmem:[%s7572_s10 + $0x1d0] sm:$0xff] %v6126_v9  ;;  %v2632_v46 = vpack.c.bf16 %v2440_v49, %v2432_v16  ;;  %v6130_v48 = vpack.c.bf16 %v2440_v49, %v2439_v19  ;;  %v2043_v13 = vpop.f32.mrb[160].mxu1  ;;  %4905 = vmatpush1.bf16.msra.mxu0 %v6744_v18 }
 0x370   : > { %v2044_v7 = vadd.f32 %v2043_v13, %v8552_v10  ;;  %v2045_v17 = vpop.f32.mrb[161].mxu1  ;;  %4906 = vmatprep.subr.bf16.mxu0 %v6749_v50 }
 0x371   : > { %3401 = vst [vmem:[%s7572_s10 + $0x1f0] sm:$0xff] %v6130_v48  ;;  %v2046_v24 = vadd.f32 %v2045_v17, %v8555_v0  ;;  %v2047_v32 = vpop.f32.mrb[162].mxu1  ;;  %4787 = vmatprep.mubr.bf16.mxu0 %v2632_v46 }
 0x372   : > { %v2447_v34 = vmax.f32 %v2044_v7, 0.0  ;;  %v2048_v28 = vadd.f32 %v2047_v32, %v8552_v10  ;;  %v2049_v14 = vpop.f32.mrb[163].mxu1  ;;  %4788 = vmatmul.mubr.bf16.gmra.mrb[28].mxu0 %v2631_v59 }
 0x373   : > { %v2448_v5 = vmax.f32 %v2046_v24, 0.0  ;;  %v2050_v22 = vadd.f32 %v2049_v14, %v8555_v0  ;;  %4907 = vmatpush1.bf16.msra.mxu0 %v6747_v15 }
 0x374   : > { %v2455_v61 = vmax.f32 %v2048_v28, 0.0  ;;  %4908 = vmatprep.subr.bf16.mxu0 %v6752_v8 }
 0x375   : > { %v6134_v58 = vpack.c.bf16 %v2448_v5, %v2447_v34  ;;  %v2456_v36 = vmax.f32 %v2050_v22, 0.0 }
 0x376   : > { %v2639_v4 = vpack.c.bf16 %v2455_v61, %v2447_v34 }
 0x377   : > { %3405 = vst [vmem:[%s7572_s10 + $0x210] sm:$0xff] %v6134_v58  ;;  %v2640_v40 = vpack.c.bf16 %v2456_v36, %v2448_v5  ;;  %v6138_v41 = vpack.c.bf16 %v2456_v36, %v2455_v61  ;;  %v2053_v62 = vpop.f32.mrb[164].mxu1  ;;  %4909 = vmatpush1.bf16.msra.mxu0 %v6750_v27 }
 0x378   : > { %v2054_v63 = vadd.f32 %v2053_v62, %v8552_v10  ;;  %v2055_v45 = vpop.f32.mrb[165].mxu1 }
 0x379   : > { %3409 = vst [vmem:[%s7572_s10 + $0x230] sm:$0xff] %v6138_v41  ;;  %v2056_v33 = vadd.f32 %v2055_v45, %v8555_v0  ;;  %v2057_v44 = vpop.f32.mrb[166].mxu1  ;;  %4797 = vmatprep.mubr.bf16.mxu0 %v2640_v40 }
 0x37a   : > { %v2463_v39 = vmax.f32 %v2054_v63, 0.0  ;;  %v2058_v12 = vadd.f32 %v2057_v44, %v8552_v10  ;;  %v2059_v42 = vpop.f32.mrb[167].mxu1  ;;  %4798 = vmatmul.mubr.bf16.gmra.mrb[32].mxu0 %v2639_v4 }
 0x37b   : > { %v2464_v43 = vmax.f32 %v2056_v33, 0.0  ;;  %v2060_v11 = vadd.f32 %v2059_v42, %v8555_v0 }
 0x37c   : > { %v2471_v3 = vmax.f32 %v2058_v12, 0.0 }
 0x37d   : > { %v6142_v25 = vpack.c.bf16 %v2464_v43, %v2463_v39  ;;  %v2472_v47 = vmax.f32 %v2060_v11, 0.0 }
 0x37e   : > { %v2647_v30 = vpack.c.bf16 %v2471_v3, %v2463_v39 }
 0x37f   : > { %3413 = vst [vmem:[%s7572_s10 + $0x250] sm:$0xff] %v6142_v25  ;;  %v2648_v6 = vpack.c.bf16 %v2472_v47, %v2464_v43  ;;  %v6146_v2 = vpack.c.bf16 %v2472_v47, %v2471_v3  ;;  %v2063_v55 = vpop.f32.mrb[168].mxu1 }
 0x380   : > { %v2064_v53 = vadd.f32 %v2063_v55, %v8552_v10  ;;  %v2065_v54 = vpop.f32.mrb[169].mxu1 }
 0x381   : > { %3417 = vst [vmem:[%s7572_s10 + $0x270] sm:$0xff] %v6146_v2  ;;  %v2066_v51 = vadd.f32 %v2065_v54, %v8555_v0  ;;  %v2067_v29 = vpop.f32.mrb[170].mxu1  ;;  %4807 = vmatprep.mubr.bf16.mxu0 %v2648_v6 }
 0x382   : > { %v2479_v23 = vmax.f32 %v2064_v53, 0.0  ;;  %v2068_v57 = vadd.f32 %v2067_v29, %v8552_v10  ;;  %v2069_v60 = vpop.f32.mrb[171].mxu1  ;;  %4808 = vmatmul.mubr.bf16.gmra.mrb[36].mxu0 %v2647_v30 }
 0x383   : > { %v2480_v1 = vmax.f32 %v2066_v51, 0.0  ;;  %v2070_v52 = vadd.f32 %v2069_v60, %v8555_v0 }
 0x384   : > { %v2487_v56 = vmax.f32 %v2068_v57, 0.0 }
 0x385   : > { %v6150_v20 = vpack.c.bf16 %v2480_v1, %v2479_v23  ;;  %v2488_v31 = vmax.f32 %v2070_v52, 0.0 }
 0x386   : > { %v2655_v16 = vpack.c.bf16 %v2487_v56, %v2479_v23 }
 0x387   : > { %3421 = vst [vmem:[%s7572_s10 + $0x290] sm:$0xff] %v6150_v20  ;;  %v2656_v35 = vpack.c.bf16 %v2488_v31, %v2480_v1  ;;  %v6154_v18 = vpack.c.bf16 %v2488_v31, %v2487_v56  ;;  %v2073_v19 = vpop.f32.mrb[172].mxu1 }
 0x388   : > { %v2074_v50 = vadd.f32 %v2073_v19, %v8552_v10  ;;  %v2075_v9 = vpop.f32.mrb[173].mxu1 }
 0x389   : > { %3425 = vst [vmem:[%s7572_s10 + $0x2b0] sm:$0xff] %v6154_v18  ;;  %v2076_v49 = vadd.f32 %v2075_v9, %v8555_v0  ;;  %v2077_v59 = vpop.f32.mrb[174].mxu1  ;;  %4817 = vmatprep.mubr.bf16.mxu0 %v2656_v35 }
 0x38a   : > { %v2495_v46 = vmax.f32 %v2074_v50, 0.0  ;;  %v2078_v48 = vadd.f32 %v2077_v59, %v8552_v10  ;;  %v2079_v13 = vpop.f32.mrb[175].mxu1  ;;  %4818 = vmatmul.mubr.bf16.gmra.mrb[40].mxu0 %v2655_v16 }
 0x38b   : > { %v2496_v15 = vmax.f32 %v2076_v49, 0.0  ;;  %v2080_v7 = vadd.f32 %v2079_v13, %v8555_v0 }
 0x38c   : > { %v2503_v17 = vmax.f32 %v2078_v48, 0.0 }
 0x38d   : > { %v6158_v8 = vpack.c.bf16 %v2496_v15, %v2495_v46  ;;  %v2504_v24 = vmax.f32 %v2080_v7, 0.0  ;;  %v889_v7 = vsub.s32 6, %v8102_v37 }
 0x38e   : > { %v2663_v32 = vpack.c.bf16 %v2503_v17, %v2495_v46 }
 0x38f   : > { %3429 = vst [vmem:[%s7572_s10 + $0x2d0] sm:$0xff] %v6158_v8  ;;  %v2664_v34 = vpack.c.bf16 %v2504_v24, %v2496_v15  ;;  %v6162_v28 = vpack.c.bf16 %v2504_v24, %v2503_v17  ;;  %v2083_v14 = vpop.f32.mrb[176].mxu1  ;;  %v893_v24 = vsub.s32 7, %v8102_v37 }
 0x390   : > { %v2084_v5 = vadd.f32 %v2083_v14, %v8552_v10  ;;  %v2085_v22 = vpop.f32.mrb[177].mxu1 }
 0x391   : > { %3433 = vst [vmem:[%s7572_s10 + $0x2f0] sm:$0xff] %v6162_v28  ;;  %v2086_v27 = vadd.f32 %v2085_v22, %v8555_v0  ;;  %v2087_v61 = vpop.f32.mrb[178].mxu1  ;;  %4827 = vmatprep.mubr.bf16.mxu0 %v2664_v34 }
 0x392   : > { %v2511_v58 = vmax.f32 %v2084_v5, 0.0  ;;  %v2088_v36 = vadd.f32 %v2087_v61, %v8552_v10  ;;  %v2089_v4 = vpop.f32.mrb[179].mxu1  ;;  %4828 = vmatmul.mubr.bf16.gmra.mrb[44].mxu0 %v2663_v32 }
 0x393   : > { %v2512_v40 = vmax.f32 %v2086_v27, 0.0  ;;  %v2090_v41 = vadd.f32 %v2089_v4, %v8555_v0  ;;  %v8697_v27 = vrot.slane %v8549_v26, %v889_v7 }
 0x394   : > { %v2519_v62 = vmax.f32 %v2088_v36, 0.0  ;;  %v8700_v36 = vrot.slane %v8549_v26, %v893_v24 }
 0x395   : > { %v6166_v63 = vpack.c.bf16 %v2512_v40, %v2511_v58  ;;  %v2520_v45 = vmax.f32 %v2090_v41, 0.0 }
 0x396   : > { %v2671_v33 = vpack.c.bf16 %v2519_v62, %v2511_v58 }
 0x397   : > { %3437 = vst [vmem:[%s7572_s10 + $0x310] sm:$0xff] %v6166_v63  ;;  %v2672_v44 = vpack.c.bf16 %v2520_v45, %v2512_v40  ;;  %v6170_v39 = vpack.c.bf16 %v2520_v45, %v2519_v62  ;;  %v2093_v12 = vpop.f32.mrb[180].mxu1 }
 0x398   : > { %v2094_v42 = vadd.f32 %v2093_v12, %v8552_v10  ;;  %v2095_v43 = vpop.f32.mrb[181].mxu1 }
 0x399   : > { %3441 = vst [vmem:[%s7572_s10 + $0x330] sm:$0xff] %v6170_v39  ;;  %v2096_v11 = vadd.f32 %v2095_v43, %v8555_v0  ;;  %v2097_v3 = vpop.f32.mrb[182].mxu1  ;;  %4837 = vmatprep.mubr.bf16.mxu0 %v2672_v44 }
 0x39a   : > { %v2527_v25 = vmax.f32 %v2094_v42, 0.0  ;;  %v2098_v47 = vadd.f32 %v2097_v3, %v8552_v10  ;;  %v2099_v30 = vpop.f32.mrb[183].mxu1  ;;  %4838 = vmatmul.mubr.bf16.gmra.mrb[48].mxu0 %v2671_v33 }
 0x39b   : > { %v2528_v6 = vmax.f32 %v2096_v11, 0.0  ;;  %v2100_v2 = vadd.f32 %v2099_v30, %v8555_v0 }
 0x39c   : > { %v2535_v55 = vmax.f32 %v2098_v47, 0.0 }
 0x39d   : > { %v6174_v53 = vpack.c.bf16 %v2528_v6, %v2527_v25  ;;  %v2536_v54 = vmax.f32 %v2100_v2, 0.0 }
 0x39e   : > { %v2679_v51 = vpack.c.bf16 %v2535_v55, %v2527_v25 }
 0x39f   : > { %3445 = vst [vmem:[%s7572_s10 + $0x350] sm:$0xff] %v6174_v53  ;;  %v2680_v29 = vpack.c.bf16 %v2536_v54, %v2528_v6  ;;  %v6178_v23 = vpack.c.bf16 %v2536_v54, %v2535_v55  ;;  %v2103_v57 = vpop.f32.mrb[184].mxu1 }
 0x3a0   : > { %v2104_v60 = vadd.f32 %v2103_v57, %v8552_v10  ;;  %v2105_v1 = vpop.f32.mrb[185].mxu1 }
 0x3a1   : > { %3449 = vst [vmem:[%s7572_s10 + $0x370] sm:$0xff] %v6178_v23  ;;  %v2106_v52 = vadd.f32 %v2105_v1, %v8555_v0  ;;  %v2107_v56 = vpop.f32.mrb[186].mxu1  ;;  %4847 = vmatprep.mubr.bf16.mxu0 %v2680_v29 }
 0x3a2   : > { %v2543_v20 = vmax.f32 %v2104_v60, 0.0  ;;  %v2108_v31 = vadd.f32 %v2107_v56, %v8552_v10  ;;  %v2109_v16 = vpop.f32.mrb[187].mxu1  ;;  %4848 = vmatmul.mubr.bf16.gmra.mrb[52].mxu0 %v2679_v51 }
 0x3a3   : > { %v2544_v35 = vmax.f32 %v2106_v52, 0.0  ;;  %v2110_v18 = vadd.f32 %v2109_v16, %v8555_v0 }
 0x3a4   : > { %v2551_v19 = vmax.f32 %v2108_v31, 0.0 }
 0x3a5   : > { %v6182_v50 = vpack.c.bf16 %v2544_v35, %v2543_v20  ;;  %v2552_v9 = vmax.f32 %v2110_v18, 0.0 }
 0x3a6   : > { %v2687_v49 = vpack.c.bf16 %v2551_v19, %v2543_v20 }
 0x3a7   : > { %3453 = vst [vmem:[%s7572_s10 + $0x390] sm:$0xff] %v6182_v50  ;;  %v2688_v59 = vpack.c.bf16 %v2552_v9, %v2544_v35  ;;  %v6186_v46 = vpack.c.bf16 %v2552_v9, %v2551_v19  ;;  %v2113_v48 = vpop.f32.mrb[188].mxu1 }
 0x3a8   : > { %v2114_v13 = vadd.f32 %v2113_v48, %v8552_v10  ;;  %v2115_v15 = vpop.f32.mrb[189].mxu1 }
 0x3a9   : > { %3457 = vst [vmem:[%s7572_s10 + $0x3b0] sm:$0xff] %v6186_v46  ;;  %v2116_v17 = vadd.f32 %v2115_v15, %v8555_v0  ;;  %v2117_v8 = vpop.f32.mrb[190].mxu1  ;;  %4857 = vmatprep.mubr.bf16.mxu0 %v2688_v59 }
 0x3aa   : > { %v2559_v32 = vmax.f32 %v2114_v13, 0.0  ;;  %v2118_v34 = vadd.f32 %v2117_v8, %v8552_v10  ;;  %v2119_v28 = vpop.f32.mrb[191].mxu1  ;;  %4858 = vmatmul.mubr.bf16.gmra.mrb[56].mxu0 %v2687_v49 }
 0x3ab   : > { %v2560_v14 = vmax.f32 %v2116_v17, 0.0  ;;  %v2120_v5 = vadd.f32 %v2119_v28, %v8555_v0 }
 0x3ac   : > { %v2567_v22 = vmax.f32 %v2118_v34, 0.0 }
 0x3ad   : > { %v6190_v61 = vpack.c.bf16 %v2560_v14, %v2559_v32  ;;  %v2568_v58 = vmax.f32 %v2120_v5, 0.0 }
 0x3ae   : > { %v2695_v4 = vpack.c.bf16 %v2567_v22, %v2559_v32 }
 0x3af   : > { %3461 = vst [vmem:[%s7572_s10 + $0x3d0] sm:$0xff] %v6190_v61  ;;  %v2696_v40 = vpack.c.bf16 %v2568_v58, %v2560_v14  ;;  %v6194_v41 = vpack.c.bf16 %v2568_v58, %v2567_v22  ;;  %v2156_v10 = vpop.f32.mrb[192].mxu1 }
 0x3b0   : > { %v2157_v62 = vadd.f32 %v2156_v10, %v8697_v27  ;;  %v2158_v63 = vpop.f32.mrb[193].mxu1 }
 0x3b1   : > { %3465 = vst [vmem:[%s7572_s10 + $0x3f0] sm:$0xff] %v6194_v41  ;;  %v2159_v0 = vadd.f32 %v2158_v63, %v8700_v36  ;;  %v2160_v45 = vpop.f32.mrb[194].mxu1  ;;  %4867 = vmatprep.mubr.bf16.mxu0 %v2696_v40 }
 0x3b2   : > { %v2321_v33 = vmax.f32 %v2157_v62, 0.0  ;;  %v2161_v44 = vadd.f32 %v2160_v45, %v8697_v27  ;;  %v2162_v26 = vpop.f32.mrb[195].mxu1  ;;  %4868 = vmatmul.mubr.bf16.gmra.mrb[60].mxu0 %v2695_v4 }
 0x3b3   : > { %v2322_v39 = vmax.f32 %v2159_v0, 0.0  ;;  %v2163_v12 = vadd.f32 %v2162_v26, %v8700_v36 }
 0x3b4   : > { %v2329_v42 = vmax.f32 %v2161_v44, 0.0 }
 0x3b5   : > { %v6071_v43 = vpack.c.bf16 %v2322_v39, %v2321_v33  ;;  %v2330_v11 = vmax.f32 %v2163_v12, 0.0 }
 0x3b6   : > { %v2577_v3 = vpack.c.bf16 %v2329_v42, %v2321_v33 }
 0x3b7   : > { %3342 = vst [vmem:[%s7572_s10 + $0x18] sm:$0xff] %v6071_v43  ;;  %v2578_v25 = vpack.c.bf16 %v2330_v11, %v2322_v39  ;;  %v6075_v47 = vpack.c.bf16 %v2330_v11, %v2329_v42  ;;  %v2166_v30 = vpop.f32.mrb[196].mxu1 }
 0x3b8   : > { %v2167_v6 = vadd.f32 %v2166_v30, %v8697_v27  ;;  %v2168_v2 = vpop.f32.mrb[197].mxu1 }
 0x3b9   : > { %3346 = vst [vmem:[%s7572_s10 + $0x38] sm:$0xff] %v6075_v47  ;;  %v2169_v55 = vadd.f32 %v2168_v2, %v8700_v36  ;;  %v2170_v53 = vpop.f32.mrb[198].mxu1  ;;  %4910 = vmatprep.mubr.bf16.mxu0 %v2578_v25 }
 0x3ba   : > { %v2337_v54 = vmax.f32 %v2167_v6, 0.0  ;;  %v2171_v51 = vadd.f32 %v2170_v53, %v8697_v27  ;;  %v2172_v29 = vpop.f32.mrb[199].mxu1  ;;  %4911 = vmatmul.mubr.bf16.vlgmr.msra.gmra.mrb[0].mxu0 %v2577_v3 }
 0x3bb   : > { %v2338_v23 = vmax.f32 %v2169_v55, 0.0  ;;  %v2173_v57 = vadd.f32 %v2172_v29, %v8700_v36 }
 0x3bc   : > { %v2345_v60 = vmax.f32 %v2171_v51, 0.0 }
 0x3bd   : > { %v6079_v1 = vpack.c.bf16 %v2338_v23, %v2337_v54  ;;  %v2346_v52 = vmax.f32 %v2173_v57, 0.0 }
 0x3be   : > { %v2585_v56 = vpack.c.bf16 %v2345_v60, %v2337_v54 }
 0x3bf   : > { %3350 = vst [vmem:[%s7572_s10 + $0x58] sm:$0xff] %v6079_v1  ;;  %v2586_v20 = vpack.c.bf16 %v2346_v52, %v2338_v23  ;;  %v6083_v31 = vpack.c.bf16 %v2346_v52, %v2345_v60  ;;  %v2176_v16 = vpop.f32.mrb[200].mxu1 }
 0x3c0   : > { %v2177_v35 = vadd.f32 %v2176_v16, %v8697_v27  ;;  %v2178_v18 = vpop.f32.mrb[201].mxu1 }
 0x3c1   : > { %3354 = vst [vmem:[%s7572_s10 + $0x78] sm:$0xff] %v6083_v31  ;;  %v2179_v19 = vadd.f32 %v2178_v18, %v8700_v36  ;;  %v2180_v50 = vpop.f32.mrb[202].mxu1  ;;  %4920 = vmatprep.mubr.bf16.mxu0 %v2586_v20 }
 0x3c2   : > { %v2353_v9 = vmax.f32 %v2177_v35, 0.0  ;;  %v2181_v49 = vadd.f32 %v2180_v50, %v8697_v27  ;;  %v2182_v59 = vpop.f32.mrb[203].mxu1  ;;  %4921 = vmatmul.mubr.bf16.gmra.mrb[4].mxu0 %v2585_v56 }
 0x3c3   : > { %v2354_v46 = vmax.f32 %v2179_v19, 0.0  ;;  %v2183_v48 = vadd.f32 %v2182_v59, %v8700_v36 }
 0x3c4   : > { %v2361_v13 = vmax.f32 %v2181_v49, 0.0 }
 0x3c5   : > { %v6087_v15 = vpack.c.bf16 %v2354_v46, %v2353_v9  ;;  %v2362_v7 = vmax.f32 %v2183_v48, 0.0 }
 0x3c6   : > { %v2593_v17 = vpack.c.bf16 %v2361_v13, %v2353_v9 }
 0x3c7   : > { %3358 = vst [vmem:[%s7572_s10 + $0x98] sm:$0xff] %v6087_v15  ;;  %v2594_v8 = vpack.c.bf16 %v2362_v7, %v2354_v46  ;;  %v6091_v24 = vpack.c.bf16 %v2362_v7, %v2361_v13  ;;  %v2186_v32 = vpop.f32.mrb[204].mxu1 }
 0x3c8   : > { %v2187_v34 = vadd.f32 %v2186_v32, %v8697_v27  ;;  %v2188_v28 = vpop.f32.mrb[205].mxu1 }
 0x3c9   : > { %3362 = vst [vmem:[%s7572_s10 + $0xb8] sm:$0xff] %v6091_v24  ;;  %v2189_v14 = vadd.f32 %v2188_v28, %v8700_v36  ;;  %v2190_v5 = vpop.f32.mrb[206].mxu1  ;;  %4930 = vmatprep.mubr.bf16.mxu0 %v2594_v8 }
 0x3ca   : > { %v2369_v22 = vmax.f32 %v2187_v34, 0.0  ;;  %v2191_v61 = vadd.f32 %v2190_v5, %v8697_v27  ;;  %v2192_v58 = vpop.f32.mrb[207].mxu1  ;;  %4931 = vmatmul.mubr.bf16.gmra.mrb[8].mxu0 %v2593_v17 }
 0x3cb   : > { %v2370_v4 = vmax.f32 %v2189_v14, 0.0  ;;  %v2193_v40 = vadd.f32 %v2192_v58, %v8700_v36 }
 0x3cc   : > { %v2377_v41 = vmax.f32 %v2191_v61, 0.0 }
 0x3cd   : > { %v6095_v10 = vpack.c.bf16 %v2370_v4, %v2369_v22  ;;  %v2378_v62 = vmax.f32 %v2193_v40, 0.0 }
 0x3ce   : > { %v2601_v63 = vpack.c.bf16 %v2377_v41, %v2369_v22 }
 0x3cf   : > { %3366 = vst [vmem:[%s7572_s10 + $0xd8] sm:$0xff] %v6095_v10  ;;  %v2602_v0 = vpack.c.bf16 %v2378_v62, %v2370_v4  ;;  %v6099_v45 = vpack.c.bf16 %v2378_v62, %v2377_v41  ;;  %v2196_v33 = vpop.f32.mrb[208].mxu1 }
 0x3d0   : > { %v2197_v44 = vadd.f32 %v2196_v33, %v8697_v27  ;;  %v2198_v26 = vpop.f32.mrb[209].mxu1 }
 0x3d1   : > { %3370 = vst [vmem:[%s7572_s10 + $0xf8] sm:$0xff] %v6099_v45  ;;  %v2199_v39 = vadd.f32 %v2198_v26, %v8700_v36  ;;  %v2200_v12 = vpop.f32.mrb[210].mxu1  ;;  %4940 = vmatprep.mubr.bf16.mxu0 %v2602_v0 }
 0x3d2   : > { %v2385_v42 = vmax.f32 %v2197_v44, 0.0  ;;  %v2201_v43 = vadd.f32 %v2200_v12, %v8697_v27  ;;  %v2202_v11 = vpop.f32.mrb[211].mxu1  ;;  %4941 = vmatmul.mubr.bf16.gmra.mrb[12].mxu0 %v2601_v63 }
 0x3d3   : > { %v2386_v3 = vmax.f32 %v2199_v39, 0.0  ;;  %v2203_v25 = vadd.f32 %v2202_v11, %v8700_v36 }
 0x3d4   : > { %v2393_v47 = vmax.f32 %v2201_v43, 0.0 }
 0x3d5   : > { %v6103_v30 = vpack.c.bf16 %v2386_v3, %v2385_v42  ;;  %v2394_v6 = vmax.f32 %v2203_v25, 0.0 }
 0x3d6   : > { %v2609_v2 = vpack.c.bf16 %v2393_v47, %v2385_v42 }
 0x3d7   : > { %3374 = vst [vmem:[%s7572_s10 + $0x118] sm:$0xff] %v6103_v30  ;;  %v2610_v55 = vpack.c.bf16 %v2394_v6, %v2386_v3  ;;  %v6107_v53 = vpack.c.bf16 %v2394_v6, %v2393_v47  ;;  %v2206_v54 = vpop.f32.mrb[212].mxu1 }
 0x3d8   : > { %v2207_v51 = vadd.f32 %v2206_v54, %v8697_v27  ;;  %v2208_v29 = vpop.f32.mrb[213].mxu1 }
 0x3d9   : > { %3378 = vst [vmem:[%s7572_s10 + $0x138] sm:$0xff] %v6107_v53  ;;  %v2209_v23 = vadd.f32 %v2208_v29, %v8700_v36  ;;  %v2210_v57 = vpop.f32.mrb[214].mxu1  ;;  %4950 = vmatprep.mubr.bf16.mxu0 %v2610_v55 }
 0x3da   : > { %v2401_v60 = vmax.f32 %v2207_v51, 0.0  ;;  %v2211_v1 = vadd.f32 %v2210_v57, %v8697_v27  ;;  %v2212_v52 = vpop.f32.mrb[215].mxu1  ;;  %4951 = vmatmul.mubr.bf16.gmra.mrb[16].mxu0 %v2609_v2 }
 0x3db   : > { %v2402_v56 = vmax.f32 %v2209_v23, 0.0  ;;  %v2213_v20 = vadd.f32 %v2212_v52, %v8700_v36 }
 0x3dc   : > { %v2409_v31 = vmax.f32 %v2211_v1, 0.0 }
 0x3dd   : > { %v6111_v16 = vpack.c.bf16 %v2402_v56, %v2401_v60  ;;  %v2410_v35 = vmax.f32 %v2213_v20, 0.0 }
 0x3de   : > { %v2617_v18 = vpack.c.bf16 %v2409_v31, %v2401_v60 }
 0x3df   : > { %3382 = vst [vmem:[%s7572_s10 + $0x158] sm:$0xff] %v6111_v16  ;;  %v2618_v19 = vpack.c.bf16 %v2410_v35, %v2402_v56  ;;  %v6115_v50 = vpack.c.bf16 %v2410_v35, %v2409_v31  ;;  %v2216_v9 = vpop.f32.mrb[216].mxu1 }
 0x3e0   : > { %v2217_v49 = vadd.f32 %v2216_v9, %v8697_v27  ;;  %v2218_v59 = vpop.f32.mrb[217].mxu1 }
 0x3e1   : > { %3386 = vst [vmem:[%s7572_s10 + $0x178] sm:$0xff] %v6115_v50  ;;  %v2219_v46 = vadd.f32 %v2218_v59, %v8700_v36  ;;  %v2220_v48 = vpop.f32.mrb[218].mxu1  ;;  %4960 = vmatprep.mubr.bf16.mxu0 %v2618_v19 }
 0x3e2   : > { %v2417_v13 = vmax.f32 %v2217_v49, 0.0  ;;  %v2221_v15 = vadd.f32 %v2220_v48, %v8697_v27  ;;  %v2222_v7 = vpop.f32.mrb[219].mxu1  ;;  %4961 = vmatmul.mubr.bf16.gmra.mrb[20].mxu0 %v2617_v18 }
 0x3e3   : > { %v2418_v17 = vmax.f32 %v2219_v46, 0.0  ;;  %v2223_v8 = vadd.f32 %v2222_v7, %v8700_v36 }
 0x3e4   : > { %v2425_v24 = vmax.f32 %v2221_v15, 0.0 }
 0x3e5   : > { %v6119_v32 = vpack.c.bf16 %v2418_v17, %v2417_v13  ;;  %v2426_v34 = vmax.f32 %v2223_v8, 0.0 }
 0x3e6   : > { %v2625_v28 = vpack.c.bf16 %v2425_v24, %v2417_v13 }
 0x3e7   : > { %3390 = vst [vmem:[%s7572_s10 + $0x198] sm:$0xff] %v6119_v32  ;;  %v2626_v14 = vpack.c.bf16 %v2426_v34, %v2418_v17  ;;  %v6123_v5 = vpack.c.bf16 %v2426_v34, %v2425_v24  ;;  %v2226_v22 = vpop.f32.mrb[220].mxu1 }
 0x3e8   : > { %v2227_v61 = vadd.f32 %v2226_v22, %v8697_v27  ;;  %v2228_v58 = vpop.f32.mrb[221].mxu1 }
 0x3e9   : > { %3394 = vst [vmem:[%s7572_s10 + $0x1b8] sm:$0xff] %v6123_v5  ;;  %v2229_v4 = vadd.f32 %v2228_v58, %v8700_v36  ;;  %v2230_v40 = vpop.f32.mrb[222].mxu1  ;;  %4970 = vmatprep.mubr.bf16.mxu0 %v2626_v14 }
 0x3ea   : > { %v2433_v41 = vmax.f32 %v2227_v61, 0.0  ;;  %v2231_v10 = vadd.f32 %v2230_v40, %v8697_v27  ;;  %v2232_v62 = vpop.f32.mrb[223].mxu1  ;;  %4971 = vmatmul.mubr.bf16.gmra.mrb[24].mxu0 %v2625_v28 }
 0x3eb   : > { %v2434_v63 = vmax.f32 %v2229_v4, 0.0  ;;  %v2233_v0 = vadd.f32 %v2232_v62, %v8700_v36 }
 0x3ec   : > { %v2441_v45 = vmax.f32 %v2231_v10, 0.0 }
 0x3ed   : > { %v6127_v33 = vpack.c.bf16 %v2434_v63, %v2433_v41  ;;  %v2442_v44 = vmax.f32 %v2233_v0, 0.0 }
 0x3ee   : > { %v2633_v26 = vpack.c.bf16 %v2441_v45, %v2433_v41 }
 0x3ef   : > { %3398 = vst [vmem:[%s7572_s10 + $0x1d8] sm:$0xff] %v6127_v33  ;;  %v2634_v39 = vpack.c.bf16 %v2442_v44, %v2434_v63  ;;  %v6131_v12 = vpack.c.bf16 %v2442_v44, %v2441_v45  ;;  %v2236_v42 = vpop.f32.mrb[224].mxu1 }
 0x3f0   : > { %v2237_v43 = vadd.f32 %v2236_v42, %v8697_v27  ;;  %v2238_v11 = vpop.f32.mrb[225].mxu1 }
 0x3f1   : > { %3402 = vst [vmem:[%s7572_s10 + $0x1f8] sm:$0xff] %v6131_v12  ;;  %v2239_v3 = vadd.f32 %v2238_v11, %v8700_v36  ;;  %v2240_v25 = vpop.f32.mrb[226].mxu1  ;;  %4980 = vmatprep.mubr.bf16.mxu0 %v2634_v39 }
 0x3f2   : > { %v2449_v47 = vmax.f32 %v2237_v43, 0.0  ;;  %v2241_v30 = vadd.f32 %v2240_v25, %v8697_v27  ;;  %v2242_v6 = vpop.f32.mrb[227].mxu1  ;;  %4981 = vmatmul.mubr.bf16.gmra.mrb[28].mxu0 %v2633_v26 }
 0x3f3   : > { %v2450_v2 = vmax.f32 %v2239_v3, 0.0  ;;  %v2243_v55 = vadd.f32 %v2242_v6, %v8700_v36 }
 0x3f4   : > { %v2457_v53 = vmax.f32 %v2241_v30, 0.0 }
 0x3f5   : > { %v6135_v54 = vpack.c.bf16 %v2450_v2, %v2449_v47  ;;  %v2458_v51 = vmax.f32 %v2243_v55, 0.0 }
 0x3f6   : > { %v2641_v29 = vpack.c.bf16 %v2457_v53, %v2449_v47 }
 0x3f7   : > { %3406 = vst [vmem:[%s7572_s10 + $0x218] sm:$0xff] %v6135_v54  ;;  %v2642_v23 = vpack.c.bf16 %v2458_v51, %v2450_v2  ;;  %v6139_v57 = vpack.c.bf16 %v2458_v51, %v2457_v53  ;;  %v2246_v60 = vpop.f32.mrb[228].mxu1 }
 0x3f8   : > { %v2247_v1 = vadd.f32 %v2246_v60, %v8697_v27  ;;  %v2248_v52 = vpop.f32.mrb[229].mxu1 }
 0x3f9   : > { %3410 = vst [vmem:[%s7572_s10 + $0x238] sm:$0xff] %v6139_v57  ;;  %v2249_v56 = vadd.f32 %v2248_v52, %v8700_v36  ;;  %v2250_v20 = vpop.f32.mrb[230].mxu1  ;;  %4990 = vmatprep.mubr.bf16.mxu0 %v2642_v23 }
 0x3fa   : > { %v2465_v31 = vmax.f32 %v2247_v1, 0.0  ;;  %v2251_v16 = vadd.f32 %v2250_v20, %v8697_v27  ;;  %v2252_v35 = vpop.f32.mrb[231].mxu1  ;;  %4991 = vmatmul.mubr.bf16.gmra.mrb[32].mxu0 %v2641_v29 }
 0x3fb   : > { %v2466_v18 = vmax.f32 %v2249_v56, 0.0  ;;  %v2253_v19 = vadd.f32 %v2252_v35, %v8700_v36 }
 0x3fc   : > { %v2473_v50 = vmax.f32 %v2251_v16, 0.0 }
 0x3fd   : > { %v6143_v9 = vpack.c.bf16 %v2466_v18, %v2465_v31  ;;  %v2474_v49 = vmax.f32 %v2253_v19, 0.0 }
 0x3fe   : > { %v2649_v59 = vpack.c.bf16 %v2473_v50, %v2465_v31 }
 0x3ff   : > { %3414 = vst [vmem:[%s7572_s10 + $0x258] sm:$0xff] %v6143_v9  ;;  %v2650_v46 = vpack.c.bf16 %v2474_v49, %v2466_v18  ;;  %v6147_v48 = vpack.c.bf16 %v2474_v49, %v2473_v50  ;;  %v2256_v13 = vpop.f32.mrb[232].mxu1 }
 0x400   : > { %v2257_v15 = vadd.f32 %v2256_v13, %v8697_v27  ;;  %v2258_v7 = vpop.f32.mrb[233].mxu1 }
 0x401   : > { %3418 = vst [vmem:[%s7572_s10 + $0x278] sm:$0xff] %v6147_v48  ;;  %v2259_v17 = vadd.f32 %v2258_v7, %v8700_v36  ;;  %v2260_v8 = vpop.f32.mrb[234].mxu1  ;;  %5000 = vmatprep.mubr.bf16.mxu0 %v2650_v46 }
 0x402   : > { %v2481_v24 = vmax.f32 %v2257_v15, 0.0  ;;  %v2261_v32 = vadd.f32 %v2260_v8, %v8697_v27  ;;  %v2262_v34 = vpop.f32.mrb[235].mxu1  ;;  %5001 = vmatmul.mubr.bf16.gmra.mrb[36].mxu0 %v2649_v59 }
 0x403   : > { %v2482_v28 = vmax.f32 %v2259_v17, 0.0  ;;  %v2263_v14 = vadd.f32 %v2262_v34, %v8700_v36 }
 0x404   : > { %v2489_v5 = vmax.f32 %v2261_v32, 0.0 }
 0x405   : > { %v6151_v22 = vpack.c.bf16 %v2482_v28, %v2481_v24  ;;  %v2490_v61 = vmax.f32 %v2263_v14, 0.0 }
 0x406   : > { %v2657_v58 = vpack.c.bf16 %v2489_v5, %v2481_v24 }
 0x407   : > { %3422 = vst [vmem:[%s7572_s10 + $0x298] sm:$0xff] %v6151_v22  ;;  %v2658_v4 = vpack.c.bf16 %v2490_v61, %v2482_v28  ;;  %v6155_v40 = vpack.c.bf16 %v2490_v61, %v2489_v5  ;;  %v2266_v41 = vpop.f32.mrb[236].mxu1 }
 0x408   : > { %v2267_v10 = vadd.f32 %v2266_v41, %v8697_v27  ;;  %v2268_v62 = vpop.f32.mrb[237].mxu1 }
 0x409   : > { %3426 = vst [vmem:[%s7572_s10 + $0x2b8] sm:$0xff] %v6155_v40  ;;  %v2269_v63 = vadd.f32 %v2268_v62, %v8700_v36  ;;  %v2270_v0 = vpop.f32.mrb[238].mxu1  ;;  %5010 = vmatprep.mubr.bf16.mxu0 %v2658_v4 }
 0x40a   : > { %v2497_v45 = vmax.f32 %v2267_v10, 0.0  ;;  %v2271_v33 = vadd.f32 %v2270_v0, %v8697_v27  ;;  %v2272_v44 = vpop.f32.mrb[239].mxu1  ;;  %5011 = vmatmul.mubr.bf16.gmra.mrb[40].mxu0 %v2657_v58 }
 0x40b   : > { %v2498_v26 = vmax.f32 %v2269_v63, 0.0  ;;  %v2273_v39 = vadd.f32 %v2272_v44, %v8700_v36 }
 0x40c   : > { %v2505_v12 = vmax.f32 %v2271_v33, 0.0 }
 0x40d   : > { %v6159_v42 = vpack.c.bf16 %v2498_v26, %v2497_v45  ;;  %v2506_v43 = vmax.f32 %v2273_v39, 0.0 }
 0x40e   : > { %v2665_v11 = vpack.c.bf16 %v2505_v12, %v2497_v45 }
 0x40f   : > { %3430 = vst [vmem:[%s7572_s10 + $0x2d8] sm:$0xff] %v6159_v42  ;;  %v2666_v3 = vpack.c.bf16 %v2506_v43, %v2498_v26  ;;  %v6163_v25 = vpack.c.bf16 %v2506_v43, %v2505_v12  ;;  %v2276_v47 = vpop.f32.mrb[240].mxu1 }
 0x410   : > { %v2277_v30 = vadd.f32 %v2276_v47, %v8697_v27  ;;  %v2278_v6 = vpop.f32.mrb[241].mxu1 }
 0x411   : > { %3434 = vst [vmem:[%s7572_s10 + $0x2f8] sm:$0xff] %v6163_v25  ;;  %v2279_v2 = vadd.f32 %v2278_v6, %v8700_v36  ;;  %v2280_v55 = vpop.f32.mrb[242].mxu1  ;;  %5020 = vmatprep.mubr.bf16.mxu0 %v2666_v3 }
 0x412   : > { %v2513_v53 = vmax.f32 %v2277_v30, 0.0  ;;  %v2281_v54 = vadd.f32 %v2280_v55, %v8697_v27  ;;  %v2282_v51 = vpop.f32.mrb[243].mxu1  ;;  %5021 = vmatmul.mubr.bf16.gmra.mrb[44].mxu0 %v2665_v11 }
 0x413   : > { %v2514_v29 = vmax.f32 %v2279_v2, 0.0  ;;  %v2283_v23 = vadd.f32 %v2282_v51, %v8700_v36 }
 0x414   : > { %v2521_v57 = vmax.f32 %v2281_v54, 0.0  ;;  %v3469_v54 = vld [vmem:[%s7570_s27 + $0x10] sm:$0xff] }
 0x415   : > { %v6167_v60 = vpack.c.bf16 %v2514_v29, %v2513_v53  ;;  %v2522_v1 = vmax.f32 %v2283_v23, 0.0  ;;  %v3470_v23 = vld [vmem:[%s7570_s27 + $0x18] sm:$0xff] }
 0x416   : > { %v2673_v52 = vpack.c.bf16 %v2521_v57, %v2513_v53  ;;  %v3468_v53 = vld [vmem:[%s7570_s27 + $0x8] sm:$0xff] }
 0x417   : > { %3438 = vst [vmem:[%s7572_s10 + $0x318] sm:$0xff] %v6167_v60  ;;  %v2674_v56 = vpack.c.bf16 %v2522_v1, %v2514_v29  ;;  %v6171_v20 = vpack.c.bf16 %v2522_v1, %v2521_v57  ;;  %v2286_v31 = vpop.f32.mrb[244].mxu1 }
 0x418   : > { %v2287_v16 = vadd.f32 %v2286_v31, %v8697_v27  ;;  %v2288_v35 = vpop.f32.mrb[245].mxu1  ;;  %v3472_v31 = vld [vmem:[%s7570_s27 + $0x28] sm:$0xff] }
 0x419   : > { %3442 = vst [vmem:[%s7572_s10 + $0x338] sm:$0xff] %v6171_v20  ;;  %v2289_v18 = vadd.f32 %v2288_v35, %v8700_v36  ;;  %v2290_v19 = vpop.f32.mrb[246].mxu1  ;;  %5030 = vmatprep.mubr.bf16.mxu0 %v2674_v56  ;;  %v3471_v20 = vld [vmem:[%s7570_s27 + $0x20] sm:$0xff]  ;;  %v3473_v35 = vld [vmem:[%s7570_s27 + $0x30] sm:$0xff] }
 0x41a   : > { %v2529_v50 = vmax.f32 %v2287_v16, 0.0  ;;  %v2291_v9 = vadd.f32 %v2290_v19, %v8697_v27  ;;  %v2292_v49 = vpop.f32.mrb[247].mxu1  ;;  %5031 = vmatmul.mubr.bf16.gmra.mrb[48].mxu0 %v2673_v52 }
 0x41b   : > { %v2530_v59 = vmax.f32 %v2289_v18, 0.0  ;;  %v2293_v46 = vadd.f32 %v2292_v49, %v8700_v36 }
 0x41c   : > { %v2537_v48 = vmax.f32 %v2291_v9, 0.0 }
 0x41d   : > { %v6175_v13 = vpack.c.bf16 %v2530_v59, %v2529_v50  ;;  %v2538_v15 = vmax.f32 %v2293_v46, 0.0 }
 0x41e   : > { %v2681_v7 = vpack.c.bf16 %v2537_v48, %v2529_v50  ;;  %v3474_v50 = vld [vmem:[%s7570_s27 + $0x38] sm:$0xff] }
 0x41f   : > { %3446 = vst [vmem:[%s7572_s10 + $0x358] sm:$0xff] %v6175_v13  ;;  %v2682_v17 = vpack.c.bf16 %v2538_v15, %v2530_v59  ;;  %v6179_v8 = vpack.c.bf16 %v2538_v15, %v2537_v48  ;;  %v2296_v24 = vpop.f32.mrb[248].mxu1  ;;  %v3475_v13 = vld [vmem:[%s7570_s27 + $0x40] sm:$0xff]  ;;  %v3476_v15 = vld [vmem:[%s7570_s27 + $0x48] sm:$0xff] }
 0x420   : > { %v2297_v32 = vadd.f32 %v2296_v24, %v8697_v27  ;;  %v2298_v34 = vpop.f32.mrb[249].mxu1 }
 0x421   : > { %3450 = vst [vmem:[%s7572_s10 + $0x378] sm:$0xff] %v6179_v8  ;;  %v2299_v28 = vadd.f32 %v2298_v34, %v8700_v36  ;;  %v2300_v14 = vpop.f32.mrb[250].mxu1  ;;  %5040 = vmatprep.mubr.bf16.mxu0 %v2682_v17  ;;  %v3477_v17 = vld [vmem:[%s7570_s27 + $0x50] sm:$0xff] }
 0x422   : > { %v2545_v5 = vmax.f32 %v2297_v32, 0.0  ;;  %v2301_v22 = vadd.f32 %v2300_v14, %v8697_v27  ;;  %v2302_v61 = vpop.f32.mrb[251].mxu1  ;;  %5041 = vmatmul.mubr.bf16.gmra.mrb[52].mxu0 %v2681_v7  ;;  %v3478_v32 = vld [vmem:[%s7570_s27 + $0x58] sm:$0xff] }
 0x423   : > { %v2546_v58 = vmax.f32 %v2299_v28, 0.0  ;;  %v2303_v4 = vadd.f32 %v2302_v61, %v8700_v36  ;;  %v3479_v61 = vld [vmem:[%s7570_s27 + $0x60] sm:$0xff] }
 0x424   : > { %v2553_v40 = vmax.f32 %v2301_v22, 0.0 }
 0x425   : > { %v6183_v41 = vpack.c.bf16 %v2546_v58, %v2545_v5  ;;  %v2554_v10 = vmax.f32 %v2303_v4, 0.0 }
 0x426   : > { %v2689_v62 = vpack.c.bf16 %v2553_v40, %v2545_v5 }
 0x427   : > { %3454 = vst [vmem:[%s7572_s10 + $0x398] sm:$0xff] %v6183_v41  ;;  %v2690_v63 = vpack.c.bf16 %v2554_v10, %v2546_v58  ;;  %v6187_v0 = vpack.c.bf16 %v2554_v10, %v2553_v40  ;;  %v2306_v45 = vpop.f32.mrb[252].mxu1  ;;  %v3480_v58 = vld [vmem:[%s7570_s27 + $0x68] sm:$0xff]  ;;  %v3481_v40 = vld [vmem:[%s7570_s27 + $0x70] sm:$0xff] }
 0x428   : > { %v2307_v33 = vadd.f32 %v2306_v45, %v8697_v27  ;;  %v2308_v44 = vpop.f32.mrb[253].mxu1 }
 0x429   : > { %3458 = vst [vmem:[%s7572_s10 + $0x3b8] sm:$0xff] %v6187_v0  ;;  %v2309_v26 = vadd.f32 %v2308_v44, %v8700_v36  ;;  %v2310_v39 = vpop.f32.mrb[254].mxu1  ;;  %5050 = vmatprep.mubr.bf16.mxu0 %v2690_v63 }
 0x42a   : > { %v2561_v12 = vmax.f32 %v2307_v33, 0.0  ;;  %v2311_v42 = vadd.f32 %v2310_v39, %v8697_v27  ;;  %v2312_v43 = vpop.f32.mrb[255].mxu1  ;;  %5051 = vmatmul.mubr.bf16.gmra.mrb[56].mxu0 %v2689_v62  ;;  %v3467_v27 = vld [vmem:[%s7570_s27] sm:$0xff]  ;;  %v3482_v62 = vld [vmem:[%s7570_s27 + $0x78] sm:$0xff]  ;;  %v3484_v39 = vld [vmem:[%s7570_s27 + $0x88] sm:$0xff] }
 0x42b   : > { %v2562_v11 = vmax.f32 %v2309_v26, 0.0  ;;  %v2313_v3 = vadd.f32 %v2312_v43, %v8700_v36  ;;  %v3483_v26 = vld [vmem:[%s7570_s27 + $0x80] sm:$0xff] }
 0x42c   : > { %v2569_v25 = vmax.f32 %v2311_v42, 0.0  ;;  %v3485_v42 = vld [vmem:[%s7570_s27 + $0x90] sm:$0xff] }
 0x42d   : > { %v6191_v47 = vpack.c.bf16 %v2562_v11, %v2561_v12  ;;  %v2570_v30 = vmax.f32 %v2313_v3, 0.0  ;;  %v3486_v3 = vld [vmem:[%s7570_s27 + $0x98] sm:$0xff] }
 0x42e   : > { %v2697_v6 = vpack.c.bf16 %v2569_v25, %v2561_v12 }
 0x42f   : > { %3462 = vst [vmem:[%s7572_s10 + $0x3d8] sm:$0xff] %v6191_v47  ;;  %v2698_v2 = vpack.c.bf16 %v2570_v30, %v2562_v11  ;;  %v6195_v55 = vpack.c.bf16 %v2570_v30, %v2569_v25 }
 0x431   : > { %3466 = vst [vmem:[%s7572_s10 + $0x3f8] sm:$0xff] %v6195_v55  ;;  %5060 = vmatprep.mubr.bf16.mxu0 %v2698_v2  ;;  %v3487_v55 = vld [vmem:[%s7570_s27 + $0xa0] sm:$0xff] }
 0x432   : > { %5061 = vmatmul.mubr.bf16.gmra.mrb[60].mxu0 %v2697_v6 }
 0x48d   : > { %v4912_v36 = vpop.f32.mrb[0].mxu0 }
 0x48e   : > { %v5071_v51 = vadd.f32 %v4912_v36, %v3467_v27  ;;  %v4914_v29 = vpop.f32.mrb[1].mxu0  ;;  %v3488_v27 = vld [vmem:[%s7570_s27 + $0xa8] sm:$0xff]  ;;  %v3489_v36 = vld [vmem:[%s7570_s27 + $0xb0] sm:$0xff] }
 0x48f   : > { %v5072_v57 = vadd.f32 %v4914_v29, %v3468_v53  ;;  %v4916_v60 = vpop.f32.mrb[2].mxu0  ;;  %v3490_v29 = vld [vmem:[%s7570_s27 + $0xb8] sm:$0xff] }
 0x490   : > { %5135 = vst [vmem:[%s7570_s27] sm:$0xff] %v5071_v51  ;;  %v5073_v1 = vadd.f32 %v4916_v60, %v3469_v54  ;;  %v4918_v52 = vpop.f32.mrb[3].mxu0 }
 0x491   : > { %5136 = vst [vmem:[%s7570_s27 + $0x8] sm:$0xff] %v5072_v57  ;;  %v5074_v56 = vadd.f32 %v4918_v52, %v3470_v23 }
 0x492   : > { %5137 = vst [vmem:[%s7570_s27 + $0x10] sm:$0xff] %v5073_v1 }
 0x493   : > { %5138 = vst [vmem:[%s7570_s27 + $0x18] sm:$0xff] %v5074_v56  ;;  %v3491_v56 = vld [vmem:[%s7570_s27 + $0xc0] sm:$0xff] }
 0x495   : > { %v4922_v16 = vpop.f32.mrb[4].mxu0 }
 0x496   : > { %v5075_v18 = vadd.f32 %v4922_v16, %v3471_v20  ;;  %v4924_v19 = vpop.f32.mrb[5].mxu0  ;;  %v3492_v20 = vld [vmem:[%s7570_s27 + $0xc8] sm:$0xff]  ;;  %v3493_v16 = vld [vmem:[%s7570_s27 + $0xd0] sm:$0xff] }
 0x497   : > { %v5076_v9 = vadd.f32 %v4924_v19, %v3472_v31  ;;  %v4926_v49 = vpop.f32.mrb[6].mxu0  ;;  %v3494_v19 = vld [vmem:[%s7570_s27 + $0xd8] sm:$0xff] }
 0x498   : > { %5139 = vst [vmem:[%s7570_s27 + $0x20] sm:$0xff] %v5075_v18  ;;  %v5077_v59 = vadd.f32 %v4926_v49, %v3473_v35  ;;  %v4928_v46 = vpop.f32.mrb[7].mxu0 }
 0x499   : > { %5140 = vst [vmem:[%s7570_s27 + $0x28] sm:$0xff] %v5076_v9  ;;  %v5078_v48 = vadd.f32 %v4928_v46, %v3474_v50 }
 0x49a   : > { %5141 = vst [vmem:[%s7570_s27 + $0x30] sm:$0xff] %v5077_v59 }
 0x49b   : > { %5142 = vst [vmem:[%s7570_s27 + $0x38] sm:$0xff] %v5078_v48  ;;  %v3495_v48 = vld [vmem:[%s7570_s27 + $0xe0] sm:$0xff] }
 0x49d   : > { %v4932_v7 = vpop.f32.mrb[8].mxu0 }
 0x49e   : > { %v5079_v8 = vadd.f32 %v4932_v7, %v3475_v13  ;;  %v4934_v24 = vpop.f32.mrb[9].mxu0  ;;  %v3496_v13 = vld [vmem:[%s7570_s27 + $0xe8] sm:$0xff]  ;;  %v3497_v7 = vld [vmem:[%s7570_s27 + $0xf0] sm:$0xff] }
 0x49f   : > { %v5080_v34 = vadd.f32 %v4934_v24, %v3476_v15  ;;  %v4936_v28 = vpop.f32.mrb[10].mxu0  ;;  %v3498_v24 = vld [vmem:[%s7570_s27 + $0xf8] sm:$0xff] }
 0x4a0   : > { %5143 = vst [vmem:[%s7570_s27 + $0x40] sm:$0xff] %v5079_v8  ;;  %v5081_v14 = vadd.f32 %v4936_v28, %v3477_v17  ;;  %v4938_v5 = vpop.f32.mrb[11].mxu0 }
 0x4a1   : > { %5144 = vst [vmem:[%s7570_s27 + $0x48] sm:$0xff] %v5080_v34  ;;  %v5082_v22 = vadd.f32 %v4938_v5, %v3478_v32 }
 0x4a2   : > { %5145 = vst [vmem:[%s7570_s27 + $0x50] sm:$0xff] %v5081_v14 }
 0x4a3   : > { %5146 = vst [vmem:[%s7570_s27 + $0x58] sm:$0xff] %v5082_v22  ;;  %v3499_v22 = vld [vmem:[%s7570_s27 + $0x100] sm:$0xff] }
 0x4a5   : > { %v4942_v4 = vpop.f32.mrb[12].mxu0 }
 0x4a6   : > { %v5083_v41 = vadd.f32 %v4942_v4, %v3479_v61  ;;  %v4944_v10 = vpop.f32.mrb[13].mxu0  ;;  %v3500_v61 = vld [vmem:[%s7570_s27 + $0x108] sm:$0xff]  ;;  %v3501_v4 = vld [vmem:[%s7570_s27 + $0x110] sm:$0xff] }
 0x4a7   : > { %v5084_v63 = vadd.f32 %v4944_v10, %v3480_v58  ;;  %v4946_v0 = vpop.f32.mrb[14].mxu0  ;;  %v3502_v10 = vld [vmem:[%s7570_s27 + $0x118] sm:$0xff] }
 0x4a8   : > { %5147 = vst [vmem:[%s7570_s27 + $0x60] sm:$0xff] %v5083_v41  ;;  %v5085_v45 = vadd.f32 %v4946_v0, %v3481_v40  ;;  %v4948_v33 = vpop.f32.mrb[15].mxu0 }
 0x4a9   : > { %5148 = vst [vmem:[%s7570_s27 + $0x68] sm:$0xff] %v5084_v63  ;;  %v5086_v44 = vadd.f32 %v4948_v33, %v3482_v62 }
 0x4aa   : > { %5149 = vst [vmem:[%s7570_s27 + $0x70] sm:$0xff] %v5085_v45 }
 0x4ab   : > { %5150 = vst [vmem:[%s7570_s27 + $0x78] sm:$0xff] %v5086_v44  ;;  %v3503_v44 = vld [vmem:[%s7570_s27 + $0x120] sm:$0xff] }
 0x4ad   : > { %v4952_v12 = vpop.f32.mrb[16].mxu0 }
 0x4ae   : > { %v5087_v43 = vadd.f32 %v4952_v12, %v3483_v26  ;;  %v4954_v11 = vpop.f32.mrb[17].mxu0  ;;  %v3504_v26 = vld [vmem:[%s7570_s27 + $0x128] sm:$0xff]  ;;  %v3505_v12 = vld [vmem:[%s7570_s27 + $0x130] sm:$0xff] }
 0x4af   : > { %v5088_v25 = vadd.f32 %v4954_v11, %v3484_v39  ;;  %v4956_v47 = vpop.f32.mrb[18].mxu0  ;;  %v3506_v11 = vld [vmem:[%s7570_s27 + $0x138] sm:$0xff] }
 0x4b0   : > { %5151 = vst [vmem:[%s7570_s27 + $0x80] sm:$0xff] %v5087_v43  ;;  %v5089_v30 = vadd.f32 %v4956_v47, %v3485_v42  ;;  %v4958_v6 = vpop.f32.mrb[19].mxu0 }
 0x4b1   : > { %5152 = vst [vmem:[%s7570_s27 + $0x88] sm:$0xff] %v5088_v25  ;;  %v5090_v2 = vadd.f32 %v4958_v6, %v3486_v3 }
 0x4b2   : > { %5153 = vst [vmem:[%s7570_s27 + $0x90] sm:$0xff] %v5089_v30 }
 0x4b3   : > { %5154 = vst [vmem:[%s7570_s27 + $0x98] sm:$0xff] %v5090_v2  ;;  %v3507_v2 = vld [vmem:[%s7570_s27 + $0x140] sm:$0xff] }
 0x4b5   : > { %v4962_v53 = vpop.f32.mrb[20].mxu0 }
 0x4b6   : > { %v5091_v54 = vadd.f32 %v4962_v53, %v3487_v55  ;;  %v4964_v51 = vpop.f32.mrb[21].mxu0  ;;  %v3508_v55 = vld [vmem:[%s7570_s27 + $0x148] sm:$0xff]  ;;  %v3509_v53 = vld [vmem:[%s7570_s27 + $0x150] sm:$0xff] }
 0x4b7   : > { %v5092_v23 = vadd.f32 %v4964_v51, %v3488_v27  ;;  %v4966_v57 = vpop.f32.mrb[22].mxu0  ;;  %v3510_v51 = vld [vmem:[%s7570_s27 + $0x158] sm:$0xff] }
 0x4b8   : > { %5155 = vst [vmem:[%s7570_s27 + $0xa0] sm:$0xff] %v5091_v54  ;;  %v5093_v60 = vadd.f32 %v4966_v57, %v3489_v36  ;;  %v4968_v1 = vpop.f32.mrb[23].mxu0 }
 0x4b9   : > { %5156 = vst [vmem:[%s7570_s27 + $0xa8] sm:$0xff] %v5092_v23  ;;  %v5094_v52 = vadd.f32 %v4968_v1, %v3490_v29 }
 0x4ba   : > { %5157 = vst [vmem:[%s7570_s27 + $0xb0] sm:$0xff] %v5093_v60 }
 0x4bb   : > { %5158 = vst [vmem:[%s7570_s27 + $0xb8] sm:$0xff] %v5094_v52  ;;  %v3511_v52 = vld [vmem:[%s7570_s27 + $0x160] sm:$0xff] }
 0x4bd   : > { %v4972_v31 = vpop.f32.mrb[24].mxu0 }
 0x4be   : > { %v5095_v35 = vadd.f32 %v4972_v31, %v3491_v56  ;;  %v4974_v18 = vpop.f32.mrb[25].mxu0  ;;  %v3512_v56 = vld [vmem:[%s7570_s27 + $0x168] sm:$0xff]  ;;  %v3513_v31 = vld [vmem:[%s7570_s27 + $0x170] sm:$0xff] }
 0x4bf   : > { %v5096_v50 = vadd.f32 %v4974_v18, %v3492_v20  ;;  %v4976_v9 = vpop.f32.mrb[26].mxu0  ;;  %v3514_v18 = vld [vmem:[%s7570_s27 + $0x178] sm:$0xff] }
 0x4c0   : > { %5159 = vst [vmem:[%s7570_s27 + $0xc0] sm:$0xff] %v5095_v35  ;;  %v5097_v49 = vadd.f32 %v4976_v9, %v3493_v16  ;;  %v4978_v59 = vpop.f32.mrb[27].mxu0 }
 0x4c1   : > { %5160 = vst [vmem:[%s7570_s27 + $0xc8] sm:$0xff] %v5096_v50  ;;  %v5098_v46 = vadd.f32 %v4978_v59, %v3494_v19 }
 0x4c2   : > { %5161 = vst [vmem:[%s7570_s27 + $0xd0] sm:$0xff] %v5097_v49 }
 0x4c3   : > { %5162 = vst [vmem:[%s7570_s27 + $0xd8] sm:$0xff] %v5098_v46  ;;  %v3515_v46 = vld [vmem:[%s7570_s27 + $0x180] sm:$0xff] }
 0x4c5   : > { %v4982_v15 = vpop.f32.mrb[28].mxu0 }
 0x4c6   : > { %v5099_v17 = vadd.f32 %v4982_v15, %v3495_v48  ;;  %v4984_v8 = vpop.f32.mrb[29].mxu0  ;;  %v3516_v48 = vld [vmem:[%s7570_s27 + $0x188] sm:$0xff]  ;;  %v3517_v15 = vld [vmem:[%s7570_s27 + $0x190] sm:$0xff] }
 0x4c7   : > { %v5100_v32 = vadd.f32 %v4984_v8, %v3496_v13  ;;  %v4986_v34 = vpop.f32.mrb[30].mxu0  ;;  %v3518_v8 = vld [vmem:[%s7570_s27 + $0x198] sm:$0xff] }
 0x4c8   : > { %5163 = vst [vmem:[%s7570_s27 + $0xe0] sm:$0xff] %v5099_v17  ;;  %v5101_v28 = vadd.f32 %v4986_v34, %v3497_v7  ;;  %v4988_v14 = vpop.f32.mrb[31].mxu0 }
 0x4c9   : > { %5164 = vst [vmem:[%s7570_s27 + $0xe8] sm:$0xff] %v5100_v32  ;;  %v5102_v5 = vadd.f32 %v4988_v14, %v3498_v24 }
 0x4ca   : > { %5165 = vst [vmem:[%s7570_s27 + $0xf0] sm:$0xff] %v5101_v28 }
 0x4cb   : > { %5166 = vst [vmem:[%s7570_s27 + $0xf8] sm:$0xff] %v5102_v5  ;;  %v3519_v5 = vld [vmem:[%s7570_s27 + $0x1a0] sm:$0xff] }
 0x4cd   : > { %v4992_v58 = vpop.f32.mrb[32].mxu0 }
 0x4ce   : > { %v5103_v40 = vadd.f32 %v4992_v58, %v3499_v22  ;;  %v4994_v41 = vpop.f32.mrb[33].mxu0  ;;  %v3520_v22 = vld [vmem:[%s7570_s27 + $0x1a8] sm:$0xff]  ;;  %v3521_v58 = vld [vmem:[%s7570_s27 + $0x1b0] sm:$0xff] }
 0x4cf   : > { %v5104_v62 = vadd.f32 %v4994_v41, %v3500_v61  ;;  %v4996_v63 = vpop.f32.mrb[34].mxu0  ;;  %v3522_v41 = vld [vmem:[%s7570_s27 + $0x1b8] sm:$0xff] }
 0x4d0   : > { %5167 = vst [vmem:[%s7570_s27 + $0x100] sm:$0xff] %v5103_v40  ;;  %v5105_v0 = vadd.f32 %v4996_v63, %v3501_v4  ;;  %v4998_v45 = vpop.f32.mrb[35].mxu0 }
 0x4d1   : > { %5168 = vst [vmem:[%s7570_s27 + $0x108] sm:$0xff] %v5104_v62  ;;  %v5106_v33 = vadd.f32 %v4998_v45, %v3502_v10 }
 0x4d2   : > { %5169 = vst [vmem:[%s7570_s27 + $0x110] sm:$0xff] %v5105_v0 }
 0x4d3   : > { %5170 = vst [vmem:[%s7570_s27 + $0x118] sm:$0xff] %v5106_v33  ;;  %v3523_v33 = vld [vmem:[%s7570_s27 + $0x1c0] sm:$0xff] }
 0x4d5   : > { %v5002_v39 = vpop.f32.mrb[36].mxu0 }
 0x4d6   : > { %v5107_v42 = vadd.f32 %v5002_v39, %v3503_v44  ;;  %v5004_v43 = vpop.f32.mrb[37].mxu0  ;;  %v3524_v44 = vld [vmem:[%s7570_s27 + $0x1c8] sm:$0xff]  ;;  %v3525_v39 = vld [vmem:[%s7570_s27 + $0x1d0] sm:$0xff] }
 0x4d7   : > { %v5108_v3 = vadd.f32 %v5004_v43, %v3504_v26  ;;  %v5006_v25 = vpop.f32.mrb[38].mxu0  ;;  %v3526_v43 = vld [vmem:[%s7570_s27 + $0x1d8] sm:$0xff] }
 0x4d8   : > { %5171 = vst [vmem:[%s7570_s27 + $0x120] sm:$0xff] %v5107_v42  ;;  %v5109_v47 = vadd.f32 %v5006_v25, %v3505_v12  ;;  %v5008_v30 = vpop.f32.mrb[39].mxu0 }
 0x4d9   : > { %5172 = vst [vmem:[%s7570_s27 + $0x128] sm:$0xff] %v5108_v3  ;;  %v5110_v6 = vadd.f32 %v5008_v30, %v3506_v11 }
 0x4da   : > { %5173 = vst [vmem:[%s7570_s27 + $0x130] sm:$0xff] %v5109_v47 }
 0x4db   : > { %5174 = vst [vmem:[%s7570_s27 + $0x138] sm:$0xff] %v5110_v6  ;;  %v3527_v6 = vld [vmem:[%s7570_s27 + $0x1e0] sm:$0xff] }
 0x4dd   : > { %v5012_v27 = vpop.f32.mrb[40].mxu0 }
 0x4de   : > { %v5111_v36 = vadd.f32 %v5012_v27, %v3507_v2  ;;  %v5014_v54 = vpop.f32.mrb[41].mxu0  ;;  %v3528_v2 = vld [vmem:[%s7570_s27 + $0x1e8] sm:$0xff]  ;;  %v3529_v27 = vld [vmem:[%s7570_s27 + $0x1f0] sm:$0xff] }
 0x4df   : > { %v5112_v29 = vadd.f32 %v5014_v54, %v3508_v55  ;;  %v5016_v23 = vpop.f32.mrb[42].mxu0  ;;  %v3530_v54 = vld [vmem:[%s7570_s27 + $0x1f8] sm:$0xff] }
 0x4e0   : > { %5175 = vst [vmem:[%s7570_s27 + $0x140] sm:$0xff] %v5111_v36  ;;  %v5113_v57 = vadd.f32 %v5016_v23, %v3509_v53  ;;  %v5018_v60 = vpop.f32.mrb[43].mxu0 }
 0x4e1   : > { %5176 = vst [vmem:[%s7570_s27 + $0x148] sm:$0xff] %v5112_v29  ;;  %v5114_v1 = vadd.f32 %v5018_v60, %v3510_v51 }
 0x4e2   : > { %5177 = vst [vmem:[%s7570_s27 + $0x150] sm:$0xff] %v5113_v57 }
 0x4e3   : > { %5178 = vst [vmem:[%s7570_s27 + $0x158] sm:$0xff] %v5114_v1  ;;  %v5203_v1 = vld [vmem:[%s7570_s27] sm:$0xff] (!%p6050_p1) }
 0x4e5   : > { %v5022_v20 = vpop.f32.mrb[44].mxu0 }
 0x4e6   : > { %v5115_v16 = vadd.f32 %v5022_v20, %v3511_v52  ;;  %v5024_v35 = vpop.f32.mrb[45].mxu0  ;;  %v5267_v52 = vld [vmem:[#allocation9] sm:$0x3] (!%p6050_p1) }
 0x4e7   : > { %v5116_v19 = vadd.f32 %v5024_v35, %v3512_v56  ;;  %v5026_v50 = vpop.f32.mrb[46].mxu0  ;;  %v5204_v56 = vld [vmem:[%s7570_s27 + $0x8] sm:$0xff] (!%p6050_p1)  ;;  %v8933_v20 = vrot.slane (!%p6050_p1), %v5267_v52, %v865_v21  ;;  %v5206_v35 = vld [vmem:[%s7570_s27 + $0x18] sm:$0xff] (!%p6050_p1) }
 0x4e8   : > { %5179 = vst [vmem:[%s7570_s27 + $0x160] sm:$0xff] %v5115_v16  ;;  %v5117_v9 = vadd.f32 %v5026_v50, %v3513_v31  ;;  %v5028_v49 = vpop.f32.mrb[47].mxu0  ;;  %v8937_v31 = vrot.slane (!%p6050_p1), %v5267_v52, %v869_v38  ;;  %v5205_v16 = vld [vmem:[%s7570_s27 + $0x10] sm:$0xff] (!%p6050_p1) }
 0x4e9   : > { %5180 = vst [vmem:[%s7570_s27 + $0x168] sm:$0xff] %v5116_v19  ;;  %v5118_v59 = vadd.f32 %v5028_v49, %v3514_v18  ;;  %v5207_v18 = vld [vmem:[%s7570_s27 + $0x20] sm:$0xff] (!%p6050_p1)  ;;  %v5208_v19 = vld [vmem:[%s7570_s27 + $0x28] sm:$0xff] (!%p6050_p1)  ;;  %v5209_v50 = vld [vmem:[%s7570_s27 + $0x30] sm:$0xff] (!%p6050_p1)  ;;  %v5279_v49 = vadd.f32 (!%p6050_p1), %v8933_v20, %v5203_v1  ;;  %v5281_v37 = vadd.f32 (!%p6050_p1), %v8933_v20, %v5205_v16 }
 0x4ea   : > { %5181 = vst [vmem:[%s7570_s27 + $0x170] sm:$0xff] %v5117_v9  ;;  %v5210_v9 = vld [vmem:[%s7570_s27 + $0x38] sm:$0xff] (!%p6050_p1)  ;;  %v5280_v21 = vadd.f32 (!%p6050_p1), %v8937_v31, %v5204_v56  ;;  %v5282_v38 = vadd.f32 (!%p6050_p1), %v8937_v31, %v5206_v35  ;;  %v5235_v16 = vld [vmem:[%s7570_s27 + $0x100] sm:$0xff] (!%p6050_p1)  ;;  %v5236_v35 = vld [vmem:[%s7570_s27 + $0x108] sm:$0xff] (!%p6050_p1) }
 0x4eb   : > { %5182 = vst [vmem:[%s7570_s27 + $0x178] sm:$0xff] %v5118_v59  ;;  %v5211_v59 = vld [vmem:[%s7570_s27 + $0x40] sm:$0xff] (!%p6050_p1)  ;;  %5343 = vst [vmem:[%s7570_s27] sm:$0xff] (!%p6050_p1), %v5279_v49  ;;  %v5238_v49 = vld [vmem:[%s7570_s27 + $0x118] sm:$0xff] (!%p6050_p1) }
 0x4ec   : > { %5344 = vst [vmem:[%s7570_s27 + $0x8] sm:$0xff] (!%p6050_p1), %v5280_v21  ;;  %5345 = vst [vmem:[%s7570_s27 + $0x10] sm:$0xff] (!%p6050_p1), %v5281_v37  ;;  %v5239_v21 = vld [vmem:[%s7570_s27 + $0x120] sm:$0xff] (!%p6050_p1)  ;;  %v5240_v37 = vld [vmem:[%s7570_s27 + $0x128] sm:$0xff] (!%p6050_p1) }
 0x4ed   : > { %v5032_v13 = vpop.f32.mrb[48].mxu0  ;;  %5346 = vst [vmem:[%s7570_s27 + $0x18] sm:$0xff] (!%p6050_p1), %v5282_v38  ;;  %v5314_v38 = vadd.f32 (!%p6050_p1), %v8937_v31, %v5238_v49 }
 0x4ee   : > { %v5119_v7 = vadd.f32 %v5032_v13, %v3515_v46  ;;  %v5034_v17 = vpop.f32.mrb[49].mxu0  ;;  %v5212_v46 = vld [vmem:[%s7570_s27 + $0x48] sm:$0xff] (!%p6050_p1)  ;;  %v5283_v13 = vadd.f32 (!%p6050_p1), %v8933_v20, %v5207_v18  ;;  %v5237_v18 = vld [vmem:[%s7570_s27 + $0x110] sm:$0xff] (!%p6050_p1) }
 0x4ef   : > { %v5120_v24 = vadd.f32 %v5034_v17, %v3516_v48  ;;  %v5036_v32 = vpop.f32.mrb[50].mxu0  ;;  %v5213_v48 = vld [vmem:[%s7570_s27 + $0x50] sm:$0xff] (!%p6050_p1)  ;;  %v5286_v17 = vadd.f32 (!%p6050_p1), %v8937_v31, %v5210_v9  ;;  %v5313_v9 = vadd.f32 (!%p6050_p1), %v8933_v20, %v5237_v18  ;;  %5378 = vst [vmem:[%s7570_s27 + $0x118] sm:$0xff] (!%p6050_p1), %v5314_v38 }
 0x4f0   : > { %5183 = vst [vmem:[%s7570_s27 + $0x180] sm:$0xff] %v5119_v7  ;;  %v5121_v34 = vadd.f32 %v5036_v32, %v3517_v15  ;;  %v5038_v28 = vpop.f32.mrb[51].mxu0  ;;  %v5284_v15 = vadd.f32 (!%p6050_p1), %v8937_v31, %v5208_v19  ;;  %v5285_v7 = vadd.f32 (!%p6050_p1), %v8933_v20, %v5209_v50  ;;  %v5216_v32 = vld [vmem:[%s7570_s27 + $0x68] sm:$0xff] (!%p6050_p1)  ;;  %5347 = vst [vmem:[%s7570_s27 + $0x20] sm:$0xff] (!%p6050_p1), %v5283_v13  ;;  %v5242_v13 = vld [vmem:[%s7570_s27 + $0x138] sm:$0xff] (!%p6050_p1) }
 0x4f1   : > { %5184 = vst [vmem:[%s7570_s27 + $0x188] sm:$0xff] %v5120_v24  ;;  %v5122_v14 = vadd.f32 %v5038_v28, %v3518_v8  ;;  %v5214_v8 = vld [vmem:[%s7570_s27 + $0x58] sm:$0xff] (!%p6050_p1)  ;;  %v5215_v24 = vld [vmem:[%s7570_s27 + $0x60] sm:$0xff] (!%p6050_p1)  ;;  %v5288_v28 = vadd.f32 (!%p6050_p1), %v8937_v31, %v5212_v46  ;;  %5350 = vst [vmem:[%s7570_s27 + $0x38] sm:$0xff] (!%p6050_p1), %v5286_v17  ;;  %v5311_v19 = vadd.f32 (!%p6050_p1), %v8933_v20, %v5235_v16 }
 0x4f2   : > { %5185 = vst [vmem:[%s7570_s27 + $0x190] sm:$0xff] %v5121_v34  ;;  %v5287_v34 = vadd.f32 (!%p6050_p1), %v8933_v20, %v5211_v59  ;;  %5348 = vst [vmem:[%s7570_s27 + $0x28] sm:$0xff] (!%p6050_p1), %v5284_v15  ;;  %v5312_v50 = vadd.f32 (!%p6050_p1), %v8937_v31, %v5236_v35  ;;  %v5315_v59 = vadd.f32 (!%p6050_p1), %v8933_v20, %v5239_v21  ;;  %v5243_v15 = vld [vmem:[%s7570_s27 + $0x140] sm:$0xff] (!%p6050_p1) }
 0x4f3   : > { %5186 = vst [vmem:[%s7570_s27 + $0x198] sm:$0xff] %v5122_v14  ;;  %v5289_v14 = vadd.f32 (!%p6050_p1), %v8933_v20, %v5213_v48  ;;  %5349 = vst [vmem:[%s7570_s27 + $0x30] sm:$0xff] (!%p6050_p1), %v5285_v7  ;;  %v5316_v46 = vadd.f32 (!%p6050_p1), %v8937_v31, %v5240_v37  ;;  %v5241_v48 = vld [vmem:[%s7570_s27 + $0x130] sm:$0xff] (!%p6050_p1)  ;;  %v5318_v17 = vadd.f32 (!%p6050_p1), %v8937_v31, %v5242_v13 }
 0x4f4   : > { %5351 = vst [vmem:[%s7570_s27 + $0x40] sm:$0xff] (!%p6050_p1), %v5287_v34  ;;  %5352 = vst [vmem:[%s7570_s27 + $0x48] sm:$0xff] (!%p6050_p1), %v5288_v28  ;;  %v5317_v7 = vadd.f32 (!%p6050_p1), %v8933_v20, %v5241_v48  ;;  %v5246_v34 = vld [vmem:[%s7570_s27 + $0x158] sm:$0xff] (!%p6050_p1) }
 0x4f5   : > { %v5042_v61 = vpop.f32.mrb[52].mxu0  ;;  %5353 = vst [vmem:[%s7570_s27 + $0x50] sm:$0xff] (!%p6050_p1), %v5289_v14  ;;  %5375 = vst [vmem:[%s7570_s27 + $0x100] sm:$0xff] (!%p6050_p1), %v5311_v19 }
 0x4f6   : > { %v5123_v4 = vadd.f32 %v5042_v61, %v3519_v5  ;;  %v5044_v40 = vpop.f32.mrb[53].mxu0  ;;  %v5290_v5 = vadd.f32 (!%p6050_p1), %v8937_v31, %v5214_v8  ;;  %v5218_v61 = vld [vmem:[%s7570_s27 + $0x78] sm:$0xff] (!%p6050_p1)  ;;  %5376 = vst [vmem:[%s7570_s27 + $0x108] sm:$0xff] (!%p6050_p1), %v5312_v50  ;;  %5377 = vst [vmem:[%s7570_s27 + $0x110] sm:$0xff] (!%p6050_p1), %v5313_v9  ;;  %v5319_v8 = vadd.f32 (!%p6050_p1), %v8933_v20, %v5243_v15 }
 0x4f7   : > { %v5124_v10 = vadd.f32 %v5044_v40, %v3520_v22  ;;  %v5046_v62 = vpop.f32.mrb[54].mxu0  ;;  %v5217_v22 = vld [vmem:[%s7570_s27 + $0x70] sm:$0xff] (!%p6050_p1)  ;;  %v5292_v40 = vadd.f32 (!%p6050_p1), %v8937_v31, %v5216_v32  ;;  %5379 = vst [vmem:[%s7570_s27 + $0x120] sm:$0xff] (!%p6050_p1), %v5315_v59  ;;  %5380 = vst [vmem:[%s7570_s27 + $0x128] sm:$0xff] (!%p6050_p1), %v5316_v46 }
 0x4f8   : > { %5187 = vst [vmem:[%s7570_s27 + $0x1a0] sm:$0xff] %v5123_v4  ;;  %v5125_v63 = vadd.f32 %v5046_v62, %v3521_v58  ;;  %v5048_v0 = vpop.f32.mrb[55].mxu0  ;;  %v5219_v58 = vld [vmem:[%s7570_s27 + $0x80] sm:$0xff] (!%p6050_p1)  ;;  %v5291_v4 = vadd.f32 (!%p6050_p1), %v8933_v20, %v5215_v24  ;;  %v5220_v62 = vld [vmem:[%s7570_s27 + $0x88] sm:$0xff] (!%p6050_p1)  ;;  %5354 = vst [vmem:[%s7570_s27 + $0x58] sm:$0xff] (!%p6050_p1), %v5290_v5  ;;  %v5322_v5 = vadd.f32 (!%p6050_p1), %v8937_v31, %v5246_v34 }
 0x4f9   : > { %5188 = vst [vmem:[%s7570_s27 + $0x1a8] sm:$0xff] %v5124_v10  ;;  %v5126_v45 = vadd.f32 %v5048_v0, %v3522_v41  ;;  %v5293_v41 = vadd.f32 (!%p6050_p1), %v8933_v20, %v5217_v22  ;;  %v5294_v10 = vadd.f32 (!%p6050_p1), %v8937_v31, %v5218_v61  ;;  %v5222_v0 = vld [vmem:[%s7570_s27 + $0x98] sm:$0xff] (!%p6050_p1)  ;;  %5356 = vst [vmem:[%s7570_s27 + $0x68] sm:$0xff] (!%p6050_p1), %v5292_v40  ;;  %v5244_v24 = vld [vmem:[%s7570_s27 + $0x148] sm:$0xff] (!%p6050_p1) }
 0x4fa   : > { %5189 = vst [vmem:[%s7570_s27 + $0x1b0] sm:$0xff] %v5125_v63  ;;  %v5221_v63 = vld [vmem:[%s7570_s27 + $0x90] sm:$0xff] (!%p6050_p1)  ;;  %5355 = vst [vmem:[%s7570_s27 + $0x60] sm:$0xff] (!%p6050_p1), %v5291_v4  ;;  %v5320_v28 = vadd.f32 (!%p6050_p1), %v8937_v31, %v5244_v24  ;;  %v5247_v22 = vld [vmem:[%s7570_s27 + $0x160] sm:$0xff] (!%p6050_p1) }
 0x4fb   : > { %5190 = vst [vmem:[%s7570_s27 + $0x1b8] sm:$0xff] %v5126_v45  ;;  %v5295_v45 = vadd.f32 (!%p6050_p1), %v8933_v20, %v5219_v58  ;;  %5357 = vst [vmem:[%s7570_s27 + $0x70] sm:$0xff] (!%p6050_p1), %v5293_v41  ;;  %v5245_v32 = vld [vmem:[%s7570_s27 + $0x150] sm:$0xff] (!%p6050_p1)  ;;  %v5248_v61 = vld [vmem:[%s7570_s27 + $0x168] sm:$0xff] (!%p6050_p1)  ;;  %v5323_v4 = vadd.f32 (!%p6050_p1), %v8933_v20, %v5247_v22 }
 0x4fc   : > { %5358 = vst [vmem:[%s7570_s27 + $0x78] sm:$0xff] (!%p6050_p1), %v5294_v10  ;;  %v5321_v14 = vadd.f32 (!%p6050_p1), %v8933_v20, %v5245_v32  ;;  %v5249_v58 = vld [vmem:[%s7570_s27 + $0x170] sm:$0xff] (!%p6050_p1)  ;;  %5381 = vst [vmem:[%s7570_s27 + $0x130] sm:$0xff] (!%p6050_p1), %v5317_v7  ;;  %v5324_v40 = vadd.f32 (!%p6050_p1), %v8937_v31, %v5248_v61  ;;  %v5250_v10 = vld [vmem:[%s7570_s27 + $0x178] sm:$0xff] (!%p6050_p1) }
 0x4fd   : > { %v5052_v26 = vpop.f32.mrb[56].mxu0  ;;  %5359 = vst [vmem:[%s7570_s27 + $0x80] sm:$0xff] (!%p6050_p1), %v5295_v45  ;;  %5382 = vst [vmem:[%s7570_s27 + $0x138] sm:$0xff] (!%p6050_p1), %v5318_v17  ;;  %v5325_v41 = vadd.f32 (!%p6050_p1), %v8933_v20, %v5249_v58 }
 0x4fe   : > { %v5127_v12 = vadd.f32 %v5052_v26, %v3523_v33  ;;  %v5054_v42 = vpop.f32.mrb[57].mxu0  ;;  %v5296_v33 = vadd.f32 (!%p6050_p1), %v8937_v31, %v5220_v62  ;;  %v5298_v26 = vadd.f32 (!%p6050_p1), %v8937_v31, %v5222_v0  ;;  %5383 = vst [vmem:[%s7570_s27 + $0x140] sm:$0xff] (!%p6050_p1), %v5319_v8  ;;  %v5251_v62 = vld [vmem:[%s7570_s27 + $0x180] sm:$0xff] (!%p6050_p1)  ;;  %5384 = vst [vmem:[%s7570_s27 + $0x148] sm:$0xff] (!%p6050_p1), %v5320_v28 }
 0x4ff   : > { %v5128_v11 = vadd.f32 %v5054_v42, %v3524_v44  ;;  %v5056_v3 = vpop.f32.mrb[58].mxu0  ;;  %v5297_v44 = vadd.f32 (!%p6050_p1), %v8933_v20, %v5221_v63  ;;  %v5225_v42 = vld [vmem:[%s7570_s27 + $0xb0] sm:$0xff] (!%p6050_p1)  ;;  %v5252_v63 = vld [vmem:[%s7570_s27 + $0x188] sm:$0xff] (!%p6050_p1)  ;;  %5385 = vst [vmem:[%s7570_s27 + $0x150] sm:$0xff] (!%p6050_p1), %v5321_v14  ;;  %5386 = vst [vmem:[%s7570_s27 + $0x158] sm:$0xff] (!%p6050_p1), %v5322_v5  ;;  %v5326_v0 = vadd.f32 (!%p6050_p1), %v8937_v31, %v5250_v10 }
 0x500   : > { %5191 = vst [vmem:[%s7570_s27 + $0x1c0] sm:$0xff] %v5127_v12  ;;  %v5129_v25 = vadd.f32 %v5056_v3, %v3525_v39  ;;  %v5058_v47 = vpop.f32.mrb[59].mxu0  ;;  %v5223_v39 = vld [vmem:[%s7570_s27 + $0xa0] sm:$0xff] (!%p6050_p1)  ;;  %v5224_v12 = vld [vmem:[%s7570_s27 + $0xa8] sm:$0xff] (!%p6050_p1)  ;;  %v5301_v3 = vadd.f32 (!%p6050_p1), %v8933_v20, %v5225_v42  ;;  %5360 = vst [vmem:[%s7570_s27 + $0x88] sm:$0xff] (!%p6050_p1), %v5296_v33  ;;  %v5327_v45 = vadd.f32 (!%p6050_p1), %v8933_v20, %v5251_v62 }
 0x501   : > { %5192 = vst [vmem:[%s7570_s27 + $0x1c8] sm:$0xff] %v5128_v11  ;;  %v5130_v30 = vadd.f32 %v5058_v47, %v3526_v43  ;;  %v5299_v43 = vadd.f32 (!%p6050_p1), %v8933_v20, %v5223_v39  ;;  %v5300_v11 = vadd.f32 (!%p6050_p1), %v8937_v31, %v5224_v12  ;;  %v5227_v47 = vld [vmem:[%s7570_s27 + $0xc0] sm:$0xff] (!%p6050_p1)  ;;  %5361 = vst [vmem:[%s7570_s27 + $0x90] sm:$0xff] (!%p6050_p1), %v5297_v44  ;;  %v5253_v44 = vld [vmem:[%s7570_s27 + $0x190] sm:$0xff] (!%p6050_p1) }
 0x502   : > { %5193 = vst [vmem:[%s7570_s27 + $0x1d0] sm:$0xff] %v5129_v25  ;;  %v5226_v25 = vld [vmem:[%s7570_s27 + $0xb8] sm:$0xff] (!%p6050_p1)  ;;  %5362 = vst [vmem:[%s7570_s27 + $0x98] sm:$0xff] (!%p6050_p1), %v5298_v26  ;;  %v5328_v33 = vadd.f32 (!%p6050_p1), %v8937_v31, %v5252_v63  ;;  %v5255_v39 = vld [vmem:[%s7570_s27 + $0x1a0] sm:$0xff] (!%p6050_p1)  ;;  %v5329_v12 = vadd.f32 (!%p6050_p1), %v8933_v20, %v5253_v44 }
 0x503   : > { %5194 = vst [vmem:[%s7570_s27 + $0x1d8] sm:$0xff] %v5130_v30  ;;  %v5228_v30 = vld [vmem:[%s7570_s27 + $0xc8] sm:$0xff] (!%p6050_p1)  ;;  %5363 = vst [vmem:[%s7570_s27 + $0xa0] sm:$0xff] (!%p6050_p1), %v5299_v43  ;;  %v5254_v26 = vld [vmem:[%s7570_s27 + $0x198] sm:$0xff] (!%p6050_p1)  ;;  %v5331_v43 = vadd.f32 (!%p6050_p1), %v8933_v20, %v5255_v39 }
 0x504   : > { %5364 = vst [vmem:[%s7570_s27 + $0xa8] sm:$0xff] (!%p6050_p1), %v5300_v11  ;;  %5365 = vst [vmem:[%s7570_s27 + $0xb0] sm:$0xff] (!%p6050_p1), %v5301_v3  ;;  %v5330_v42 = vadd.f32 (!%p6050_p1), %v8937_v31, %v5254_v26  ;;  %v5256_v11 = vld [vmem:[%s7570_s27 + $0x1a8] sm:$0xff] (!%p6050_p1)  ;;  %v5257_v3 = vld [vmem:[%s7570_s27 + $0x1b0] sm:$0xff] (!%p6050_p1) }
 0x505   : > { %v5062_v55 = vpop.f32.mrb[60].mxu0  ;;  %5202 = sbr.rel (%p6050_p1) target bundleno = 1302 (0x516), region = 68  ;;  %5387 = vst [vmem:[%s7570_s27 + $0x160] sm:$0xff] (!%p6050_p1), %v5323_v4  ;;  %5388 = vst [vmem:[%s7570_s27 + $0x168] sm:$0xff] (!%p6050_p1), %v5324_v40 }
 0x506   : > { %v5131_v53 = vadd.f32 %v5062_v55, %v3527_v6  ;;  %v5064_v36 = vpop.f32.mrb[61].mxu0  ;;  %v5302_v6 = vadd.f32 (!%p6050_p1), %v8937_v31, %v5226_v25  ;;  %v5304_v55 = vadd.f32 (!%p6050_p1), %v8937_v31, %v5228_v30  ;;  %5389 = vst [vmem:[%s7570_s27 + $0x170] sm:$0xff] (!%p6050_p1), %v5325_v41  ;;  %v5258_v25 = vld [vmem:[%s7570_s27 + $0x1b8] sm:$0xff] (!%p6050_p1)  ;;  %5390 = vst [vmem:[%s7570_s27 + $0x178] sm:$0xff] (!%p6050_p1), %v5326_v0 }
 0x507   : > { %v5132_v51 = vadd.f32 %v5064_v36, %v3528_v2  ;;  %v5066_v29 = vpop.f32.mrb[62].mxu0  ;;  %v5303_v2 = vadd.f32 (!%p6050_p1), %v8933_v20, %v5227_v47  ;;  %v5231_v36 = vld [vmem:[%s7570_s27 + $0xe0] sm:$0xff] (!%p6050_p1)  ;;  %5391 = vst [vmem:[%s7570_s27 + $0x180] sm:$0xff] (!%p6050_p1), %v5327_v45  ;;  %5392 = vst [vmem:[%s7570_s27 + $0x188] sm:$0xff] (!%p6050_p1), %v5328_v33  ;;  %v5332_v47 = vadd.f32 (!%p6050_p1), %v8937_v31, %v5256_v11 }
 0x508   : > { %5195 = vst [vmem:[%s7570_s27 + $0x1e0] sm:$0xff] %v5131_v53  ;;  %v5133_v23 = vadd.f32 %v5066_v29, %v3529_v27  ;;  %v5068_v57 = vpop.f32.mrb[63].mxu0  ;;  %v5229_v27 = vld [vmem:[%s7570_s27 + $0xd0] sm:$0xff] (!%p6050_p1)  ;;  %v5230_v53 = vld [vmem:[%s7570_s27 + $0xd8] sm:$0xff] (!%p6050_p1)  ;;  %v5307_v29 = vadd.f32 (!%p6050_p1), %v8933_v20, %v5231_v36  ;;  %5366 = vst [vmem:[%s7570_s27 + $0xb8] sm:$0xff] (!%p6050_p1), %v5302_v6  ;;  %v5333_v30 = vadd.f32 (!%p6050_p1), %v8933_v20, %v5257_v3 }
 0x509   : > { %5196 = vst [vmem:[%s7570_s27 + $0x1e8] sm:$0xff] %v5132_v51  ;;  %v5134_v60 = vadd.f32 %v5068_v57, %v3530_v54  ;;  %v5305_v54 = vadd.f32 (!%p6050_p1), %v8933_v20, %v5229_v27  ;;  %v5306_v51 = vadd.f32 (!%p6050_p1), %v8937_v31, %v5230_v53  ;;  %v5233_v57 = vld [vmem:[%s7570_s27 + $0xf0] sm:$0xff] (!%p6050_p1)  ;;  %5367 = vst [vmem:[%s7570_s27 + $0xc0] sm:$0xff] (!%p6050_p1), %v5303_v2  ;;  %v5259_v2 = vld [vmem:[%s7570_s27 + $0x1c0] sm:$0xff] (!%p6050_p1) }
 0x50a   : > { %5197 = vst [vmem:[%s7570_s27 + $0x1f0] sm:$0xff] %v5133_v23  ;;  %v5232_v23 = vld [vmem:[%s7570_s27 + $0xe8] sm:$0xff] (!%p6050_p1)  ;;  %5368 = vst [vmem:[%s7570_s27 + $0xc8] sm:$0xff] (!%p6050_p1), %v5304_v55  ;;  %v5309_v52 = vadd.f32 (!%p6050_p1), %v8933_v20, %v5233_v57  ;;  %v5334_v6 = vadd.f32 (!%p6050_p1), %v8937_v31, %v5258_v25  ;;  %v5261_v27 = vld [vmem:[%s7570_s27 + $0x1d0] sm:$0xff] (!%p6050_p1)  ;;  %v5335_v53 = vadd.f32 (!%p6050_p1), %v8933_v20, %v5259_v2 }
 0x50b   : > { %5198 = vst [vmem:[%s7570_s27 + $0x1f8] sm:$0xff] %v5134_v60  ;;  %v5234_v60 = vld [vmem:[%s7570_s27 + $0xf8] sm:$0xff] (!%p6050_p1)  ;;  %v5308_v1 = vadd.f32 (!%p6050_p1), %v8937_v31, %v5232_v23  ;;  %5369 = vst [vmem:[%s7570_s27 + $0xd0] sm:$0xff] (!%p6050_p1), %v5305_v54  ;;  %v5260_v55 = vld [vmem:[%s7570_s27 + $0x1c8] sm:$0xff] (!%p6050_p1)  ;;  %v5337_v54 = vadd.f32 (!%p6050_p1), %v8933_v20, %v5261_v27 }
 0x50c   : > { %v5310_v56 = vadd.f32 %v8937_v31, %v5234_v60  ;;  %5370 = vst [vmem:[%s7570_s27 + $0xd8] sm:$0xff] %v5306_v51  ;;  %5371 = vst [vmem:[%s7570_s27 + $0xe0] sm:$0xff] %v5307_v29  ;;  %v5336_v36 = vadd.f32 %v8937_v31, %v5260_v55  ;;  %v5262_v51 = vld [vmem:[%s7570_s27 + $0x1d8] sm:$0xff] }
 0x50d   : > { %5372 = vst [vmem:[%s7570_s27 + $0xe8] sm:$0xff] %v5308_v1  ;;  %5373 = vst [vmem:[%s7570_s27 + $0xf0] sm:$0xff] %v5309_v52  ;;  %v5338_v57 = vadd.f32 %v8937_v31, %v5262_v51 }
 0x50e   : > { %5374 = vst [vmem:[%s7570_s27 + $0xf8] sm:$0xff] %v5310_v56  ;;  %5393 = vst [vmem:[%s7570_s27 + $0x190] sm:$0xff] %v5329_v12 }
 0x50f   : > { %5394 = vst [vmem:[%s7570_s27 + $0x198] sm:$0xff] %v5330_v42  ;;  %5395 = vst [vmem:[%s7570_s27 + $0x1a0] sm:$0xff] %v5331_v43  ;;  %v5263_v29 = vld [vmem:[%s7570_s27 + $0x1e0] sm:$0xff] }
 0x510   : > { %v5264_v23 = vld [vmem:[%s7570_s27 + $0x1e8] sm:$0xff]  ;;  %5396 = vst [vmem:[%s7570_s27 + $0x1a8] sm:$0xff] %v5332_v47  ;;  %5397 = vst [vmem:[%s7570_s27 + $0x1b0] sm:$0xff] %v5333_v30  ;;  %v5339_v60 = vadd.f32 %v8933_v20, %v5263_v29 }
 0x511   : > { %5398 = vst [vmem:[%s7570_s27 + $0x1b8] sm:$0xff] %v5334_v6  ;;  %v5340_v1 = vadd.f32 %v8937_v31, %v5264_v23  ;;  %v5265_v52 = vld [vmem:[%s7570_s27 + $0x1f0] sm:$0xff]  ;;  %5399 = vst [vmem:[%s7570_s27 + $0x1c0] sm:$0xff] %v5335_v53 }
 0x512   : > { %v5266_v56 = vld [vmem:[%s7570_s27 + $0x1f8] sm:$0xff]  ;;  %5400 = vst [vmem:[%s7570_s27 + $0x1c8] sm:$0xff] %v5336_v36  ;;  %5401 = vst [vmem:[%s7570_s27 + $0x1d0] sm:$0xff] %v5337_v54  ;;  %v5341_v16 = vadd.f32 %v8933_v20, %v5265_v52 }
 0x513   : > { %v5342_v35 = vadd.f32 %v8937_v31, %v5266_v56  ;;  %5402 = vst [vmem:[%s7570_s27 + $0x1d8] sm:$0xff] %v5338_v57  ;;  %5403 = vst [vmem:[%s7570_s27 + $0x1e0] sm:$0xff] %v5339_v60 }
 0x514   : > { %5404 = vst [vmem:[%s7570_s27 + $0x1e8] sm:$0xff] %v5340_v1  ;;  %5405 = vst [vmem:[%s7570_s27 + $0x1f0] sm:$0xff] %v5341_v16 }
 0x515   : > { %5406 = vst [vmem:[%s7570_s27 + $0x1f8] sm:$0xff] %v5342_v35 }
 0x516 PF: > { %s9346_s24 = sld [smem:[#allocation26_spill]]  ;;  %s9347_s13 = sld [smem:[#allocation39_spill]] }
 0x517   : > { %s5427_s29 = sshll.u32 %s7570_s27, 4  ;;  %s9140_s30 = scalar_lea.sflag [#allocation5], %s340_s1  ;;  %s9136_s29 = int_to_ptr.vmem [resolvable:$true] %s5427_s29 }
 0x518   : > { %s6934_s15 = scalar_lea.vmem %s9136_s29, 8192  ;;  %p9348_p10 = scmp.ne.s32.totalorder %s9323_s12, 0 }
 0x519   : > { %p6935_p12 = scmp.ne.s32.totalorder %s9136_s29, %s6934_s15  ;;  %s7139_s16 = smov [#allocation12]  }
 0x51a   : > { %s6938_s20 = sshll.u32 %s7139_s16, 4  ;;  %s6939_s20 = int_to_ptr.vmem [resolvable:$false] %s6938_s20 }
 0x51b   : > { %p6936_p11 = pnand %p6935_p12, %p9348_p10  ;;  %s6940_s6 = scalar_lea.vmem %s6939_s20, 16384 }
 0x51c   : > { %s6197_s0 = sshll.u32 %s9346_s24, 13  ;;  %p6941_p13 = scmp.lt.s32.totalorder %s9136_s29, %s6939_s20 }
 0x51d   : > { %s9133_s23 = scalar_lea.hbm %s9347_s13, %s6197_s0  ;;  %p6937_p7 = pneg %p6936_p11 }
 0x51e   : > { %p6942_p6 = scmp.lt.s32.totalorder %s6940_s6, %s6934_s15 }
 0x520   : > { %p6943_p8 = por %p6942_p6, %p6941_p13 }
 0x522   : > { %p6944_p4 = pnand %p6943_p8, %p6937_p7 }
 0x524   : > { %6947 = shalt.err (!%p6944_p4)
}
 0x525   : > { %s6948_s1 = scalar_lea.hbm %s9133_s23, 8192  ;;  %s6952_s21 = scalar_lea.hbm %s9347_s13, 16384 }
 0x526   : > { %p6949_p5 = scmp.ne.s32.totalorder %s9133_s23, %s6948_s1  ;;  %p6953_p9 = scmp.lt.u32.totalorder %s9133_s23, %s9347_s13 }
 0x527   : > { %p6954_p3 = scmp.lt.u32.totalorder %s6952_s21, %s6948_s1  ;;  %p6956_p12 = scmp.lt.u32.totalorder %s6948_s1, %s9133_s23 }
 0x528   : > { %p6950_p2 = pnand %p6949_p5, %p9348_p10 }
 0x529   : > { %p6955_p1 = por %p6954_p3, %p6953_p9 }
 0x52a   : > { %p6951_p0 = pneg %p6950_p2 }
 0x52b   : > { %p6957_p11 = por %p6956_p12, %p6955_p1 }
 0x52d   : > { %p6958_p7 = pnand %p6957_p11, %p6951_p0 }
 0x52f   : > { %6961 = shalt.err (!%p6958_p7)
}
 0x530   : > { %s7140_s9 = smov 256   ;;  %s9349_s0 = sld [smem:[#allocation25_spill]] }
 0x531   : > { %s7141_s19 = smov 16   ;;  %s6198_s15 = sshll.u32 %s9346_s24, 9 }
 0x532   : > { %6403 = dma.vmem_to_hbm [thread:$0]  (%p9348_p10), %s9136_s29, 8192, %s9133_s23, %s9140_s30, %s7140_s9, %s7140_s9, %s7141_s19  }
 0x533   : > { %s5446_s20 = sshll.u32 %s7572_s10, 4  ;;  %s9350_s5 = sld [smem:[#allocation40_spill]]  ;;  %s9167_s20 = int_to_ptr.vmem [resolvable:$true] %s5446_s20 }
 0x534   : > { %s9176_s27 = scalar_lea.sflag [#allocation14], %s419_s4  ;;  %s6962_s12 = scalar_lea.vmem %s9167_s20, 16384 }
 0x535   : > { %p6963_p10 = scmp.ne.s32.totalorder %s9167_s20, %s6962_s12  ;;  %p9351_p13 = scmp.ne.s32.totalorder %s9328_s11, 0 }
 0x536   : > { %s6057_s14 = sshll.u32 %s9349_s0, 3  ;;  %s7142_s10 = smov [#allocation13]  }
 0x537   : > { %s5443_s16 = sadd.s32 %s6198_s15, %s6057_s14  ;;  %p6964_p6 = pnand %p6963_p10, %p9351_p13 }
 0x538   : > { %s6059_s6 = sshll.u32 %s5443_s16, 6  ;;  %s6966_s24 = sshll.u32 %s7142_s10, 4  ;;  %s6967_s24 = int_to_ptr.vmem [resolvable:$false] %s6966_s24 }
 0x539   : > { %s9172_s21 = scalar_lea.hbm %s9350_s5, %s6059_s6  ;;  %p6965_p8 = pneg %p6964_p6 }
 0x53a   : > { %s6968_s23 = scalar_lea.vmem %s6967_s24, 32768  ;;  %p6969_p4 = scmp.lt.s32.totalorder %s9167_s20, %s6967_s24 }
 0x53b   : > { %p6970_p5 = scmp.lt.s32.totalorder %s6968_s23, %s6962_s12 }
 0x53d   : > { %p6971_p2 = por %p6970_p5, %p6969_p4 }
 0x53f   : > { %p6972_p0 = pnand %p6971_p2, %p6965_p8 }
 0x541   : > { %6975 = shalt.err (!%p6972_p0)
}
 0x542   : > { %s6976_s4 = scalar_lea.hbm %s9172_s21, 16384  ;;  %s6980_s17 = scalar_lea.hbm %s9350_s5, 65536 }
 0x543   : > { %p6977_p9 = scmp.ne.s32.totalorder %s9172_s21, %s6976_s4  ;;  %p6981_p12 = scmp.lt.u32.totalorder %s9172_s21, %s9350_s5 }
 0x544   : > { %p6982_p11 = scmp.lt.u32.totalorder %s6980_s17, %s6976_s4  ;;  %p6984_p10 = scmp.lt.u32.totalorder %s6976_s4, %s9172_s21 }
 0x545   : > { %p6978_p3 = pnand %p6977_p9, %p9351_p13 }
 0x546   : > { %p6983_p7 = por %p6982_p11, %p6981_p12 }
 0x547   : > { %p6979_p1 = pneg %p6978_p3 }
 0x548   : > { %p6985_p6 = por %p6984_p10, %p6983_p7 }
 0x54a   : > { %p6986_p8 = pnand %p6985_p6, %p6979_p1 }
 0x54c   : > { %6989 = shalt.err (!%p6986_p8)
}
 0x54d   : > { %s7143_s19 = smov 512   ;;  %s7144_s14 = smov 1024  }
 0x54e   : > { %s7145_s15 = smov 32  }
 0x54f   : > { %6404 = dma.vmem_to_hbm [thread:$0]  (%p9351_p13), %s9167_s20, 16384, %s9172_s21, %s9176_s27, %s7143_s19, %s7144_s14, %s7145_s15  }
 0x550 PF: > { %s9352_s16 = sld [smem:[#allocation28_spill]]  ;;  %s9353_s6 = sld [smem:[#allocation23_spill]] }
 0x551   : > { %s9354_s1 = sld [smem:[#allocation33_spill]] }
 0x556   : > { %p6434_p4 = scmp.ge.s32.totalorder %s9352_s16, 2  ;;  %s5461_s7 = sand.u32 1, %s9353_s6  }
 0x557   : > { %p9355_p5 = scmp.ne.s32.totalorder %s9354_s1, 0  ;;  %s5462_s12 = scalar_lea.sflag [#allocation5], %s5461_s7 }
 0x559   : > { %p6425_p2 = pnand %p6434_p4, %p9355_p5 }
 0x55b   : > { %7063 = dma.done.wait (!%p6425_p2), %s5462_s12, 8192  }
 0x55c   : > { %7065 = vsyncadd (!%p6425_p2), %s5462_s12, 4294959104  ;;  %s9356_s10 = sld [smem:[#allocation21_spill]]  ;;  %s9357_s24 = sld [smem:[#allocation35_spill]] }
 0x562   : > { %s5470_s23 = sand.u32 1, %s9356_s10   ;;  %p9358_p0 = scmp.ne.s32.totalorder %s9357_s24, 0 }
 0x563   : > { %s5471_s4 = scalar_lea.sflag [#allocation14], %s5470_s23 }
 0x564   : > { %p6428_p9 = pnand %p6434_p4, %p9358_p0 }
 0x566   : > { %7067 = dma.done.wait (!%p6428_p9), %s5471_s4, 16384  }
 0x567   : > { %7069 = vsyncadd (!%p6428_p9), %s5471_s4, 4294950912  ;;  %s30_s10 = sadd.s32 1, %s9352_s16   ;;  %s9360_s20 = sld [smem:[#allocation22_spill]] }
 0x568   : > { %p9208_p13 = scmp.ge.s32.totalorder %s30_s10, 6   ;;  %s9361_s23 = sld [smem:[#allocation34_spill]] }
 0x569   : > { %s9362_s27 = sld [smem:[#allocation32_spill]]  ;;  %s9363_s29 = sld [smem:[#allocation24_spill]] }
 0x56a   : > { %s9364_s30 = sld [smem:[#allocation31_spill]]  ;;  %s9365_s7 = sld [smem:[#allocation27_spill]] }
 0x56b   : > { %s9366_s17 = sld [smem:[#allocation29_spill]]  ;;  %s9367_s9 = sld [smem:[#allocation30_spill]] }
 0x56c   : > { %s9368_s21 = smov %s7076_s22  ;;  %s9370_s24 = smov %s7088_s25 }
 0x56d   : > { %s9369_s22 = smov %s9360_s20  ;;  %s9371_s25 = smov %s7092_s26 }
 0x56e   :  { %29 = sbr.rel (!%p9208_p13) target bundleno = 21 (0x15), region = 149 }
 0x56f   : > { %s9372_s26 = smov %s9362_s27  ;;  %s9373_s27 = smov %s7100_s28 }
 0x570   : > { %s9374_s28 = smov %s9363_s29  ;;  %s9375_s29 = smov %s9364_s30 }
 0x571   : > { %s9376_s30 = smov %s7116_s8  ;;  %s9377_s8 = smov %s9366_s17 }
 0x575   :  { %5476 = vsyncpa [#allocation4], 1 }
 0x576   :  { %5478 = vsyncpa [#allocation4 + $0x1], 1 }
 0x577   :  { %5479 = vsyncpa [#allocation7], 1 }
 0x578   :  { %5481 = vsyncpa [#allocation7 + $0x1], 1 }
 0x579   :  { %5482 = vsyncpa [#allocation10], 1 }
 0x57a   :  { %5483 = vsyncpa [#allocation5], 1 }
 0x57b   :  { %5485 = vsyncpa [#allocation5 + $0x1], 1 }
 0x57c   :  { %5486 = vsyncpa [#allocation14], 1 }
 0x57d   :  { %5488 = vsyncpa [#allocation14 + $0x1], 1 }

</bundles_post_ra>
